<compile_context>
chip_gen: v7x
topology: tpu7x:2x2x1
jax: 0.10.0
libtpu: 0.0.40
codegen_flags: <defaults>
</compile_context>

<pallas_src>
import functools

import jax
import jax.numpy as jnp
from jax import lax
from jax.experimental import pallas as pl
from jax.experimental.pallas import tpu as pltpu


def _gates_to_state(gates, c, H):
    """PyTorch LSTM gate order [i, f, g, o]; gates: (B, 4H) float32."""
    i_g = jax.nn.sigmoid(gates[:, 0 * H:1 * H])
    f_g = jax.nn.sigmoid(gates[:, 1 * H:2 * H])
    g_g = jnp.tanh(gates[:, 2 * H:3 * H])
    o_g = jax.nn.sigmoid(gates[:, 3 * H:4 * H])
    c_new = f_g * c + i_g * g_g
    h_new = o_g * jnp.tanh(c_new)
    return h_new, c_new


def dsn_kernel(
    x_ref,       # (T*Bp, Din)  bf16, time-major, batch padded to Bp
    w_ih_ref,    # (Din, 8H)    bf16  [Wih_fwd | Wih_bwd]
    b_ih_ref,    # (1, 8H)      f32   [b_fwd | b_bwd]  (b_ih + b_hh folded)
    whh_f_ref,   # (H, 4H)      bf16
    whh_b_ref,   # (H, 4H)      bf16
    wfc_ref,     # (1, 2H)      f32   fc weight row [wfc_fwd | wfc_bwd]
    bfc_ref,     # (1, 1)       f32
    out_ref,     # (T*Bp, 1)    f32
    gx_ref,      # VMEM scratch (T*Bp, 8H) bf16  precomputed input gates
    hcat_ref,    # VMEM scratch (T*Bp, 2H) f32   [h_fwd | h_bwd] per row
    *,
    T,
):
    TB = x_ref.shape[0]
    H = whh_f_ref.shape[0]
    Bp = TB // T  # padded batch rows per timestep (multiple of 16)

    # ---- 1) input projection: one bf16 MXU matmul for all steps/directions ----
    gx = (
        jnp.dot(x_ref[...], w_ih_ref[...], preferred_element_type=jnp.float32)
        + b_ih_ref[...]
    )
    gx_ref[...] = gx.astype(jnp.bfloat16)

    whh_f = whh_f_ref[...]  # bf16, loop-invariant
    whh_b = whh_b_ref[...]
    zeros = jnp.zeros((Bp, H), jnp.float32)

    # ---- 2+3) merged, unrolled bidirectional recurrence ----
    def step(t, carry):
        hf, cf, hb, cb = carry
        rf = pl.multiple_of(t * Bp, Bp)               # forward row block
        rb = pl.multiple_of((T - 1 - t) * Bp, Bp)     # backward row block

        gates_f = gx_ref[pl.ds(rf, Bp), 0 * H:4 * H].astype(jnp.float32) + jnp.dot(
            hf.astype(jnp.bfloat16), whh_f, preferred_element_type=jnp.float32)
        gates_b = gx_ref[pl.ds(rb, Bp), 4 * H:8 * H].astype(jnp.float32) + jnp.dot(
            hb.astype(jnp.bfloat16), whh_b, preferred_element_type=jnp.float32)

        hf, cf = _gates_to_state(gates_f, cf, H)
        hb, cb = _gates_to_state(gates_b, cb, H)

        hcat_ref[pl.ds(rf, Bp), 0:H] = hf          # forward half of h_cat
        hcat_ref[pl.ds(rb, Bp), H:2 * H] = hb      # backward half of h_cat
        return hf, cf, hb, cb

    lax.fori_loop(0, T, step, (zeros, zeros, zeros, zeros),
                  unroll=(True if T <= 16 else 4))

    # ---- 4) fc head + sigmoid on VPU + XLU (no N=1 MXU matmul) ----
    prod = hcat_ref[...] * wfc_ref[...]                      # VPU, f32
    logits = jnp.sum(prod, axis=-1, keepdims=True) + bfc_ref[...]  # XLU reduce
    out_ref[...] = jax.nn.sigmoid(logits)                    # EUP


@jax.jit
def dsn_forward(x, params):
    """x: (B, T, Din) float32  ->  p: (B, T, 1) float32."""
    B, T, Din = x.shape
    H = params["whh_f"].shape[0]
    Bp = ((B + 15) // 16) * 16  # bf16 sublane packing: pad batch to 16

    x_tm = jnp.transpose(x, (1, 0, 2))                    # (T, B, Din)
    x_tm = jnp.pad(x_tm, ((0, 0), (0, Bp - B), (0, 0)))   # (T, Bp, Din)
    x2 = x_tm.reshape(T * Bp, Din).astype(jnp.bfloat16)

    # Fuse both directions' input weights/biases for the single big matmul.
    w_ih = jnp.concatenate([params["wih_f"], params["wih_b"]],
                           axis=1).astype(jnp.bfloat16)          # (Din, 8H)
    b_ih = jnp.concatenate([params["b_f"], params["b_b"]], axis=1)  # (1, 8H) f32
    whh_f = params["whh_f"].astype(jnp.bfloat16)
    whh_b = params["whh_b"].astype(jnp.bfloat16)
    wfc_row = jnp.transpose(params["wfc"])                   # (1, 2H) f32

    out2 = pl.pallas_call(
        functools.partial(dsn_kernel, T=T),
        out_shape=jax.ShapeDtypeStruct((T * Bp, 1), jnp.float32),
        in_specs=[pl.BlockSpec(memory_space=pltpu.MemorySpace.VMEM)] * 7,
        out_specs=pl.BlockSpec(memory_space=pltpu.MemorySpace.VMEM),
        scratch_shapes=[
            pltpu.VMEM((T * Bp, 8 * H), jnp.bfloat16),  # gates_x (bf16 = half)
            pltpu.VMEM((T * Bp, 2 * H), jnp.float32),   # concatenated hidden
        ],
        compiler_params=pltpu.CompilerParams(vmem_limit_bytes=32 * 1024 * 1024),
    )(x2, w_ih, b_ih, whh_f, whh_b, wfc_row, params["bfc"])

    out_tm = out2.reshape(T, Bp, 1)[:, :B, :]             # drop batch padding
    return jnp.transpose(out_tm, (1, 0, 2))               # (B, T, 1)


def make_params(key, in_dim, hid_dim):
    """Deterministic init matching torch shapes:
       W_ih: (4H, Din), W_hh: (4H, H), biases (4H,) per direction;
       fc: (1, 2H) + (1,). Stored pre-transposed for the kernel."""
    ks = jax.random.split(key, 11)
    s_rnn = 1.0 / jnp.sqrt(hid_dim)
    s_fc = 1.0 / jnp.sqrt(2 * hid_dim)

    def u(k, shape, s):
        return jax.random.uniform(k, shape, jnp.float32, -s, s)

    params = {
        # forward direction
        "wih_f": u(ks[0], (in_dim, 4 * hid_dim), s_rnn),
        "whh_f": u(ks[1], (hid_dim, 4 * hid_dim), s_rnn),
        "b_f": (u(ks[2], (1, 4 * hid_dim), s_rnn)
                + u(ks[3], (1, 4 * hid_dim), s_rnn)),
        # backward direction
        "wih_b": u(ks[4], (in_dim, 4 * hid_dim), s_rnn),
        "whh_b": u(ks[5], (hid_dim, 4 * hid_dim), s_rnn),
        "b_b": (u(ks[6], (1, 4 * hid_dim), s_rnn)
                + u(ks[7], (1, 4 * hid_dim), s_rnn)),
        # fc head
        "wfc": u(ks[8], (2 * hid_dim, 1), s_fc),
        "bfc": u(ks[9], (1, 1), s_fc),
    }
    return params


def dsn_reference(x, params):
    """Pure-JAX f32 reference with pinned (HIGHEST) matmul precision."""
    B, T, Din = x.shape
    H = params["whh_f"].shape[0]

    def scan_dir(wih, whh, b, xs):
        def step(carry, x_t):
            h, c = carry
            gates = (jnp.dot(x_t, wih, precision=lax.Precision.HIGHEST)
                     + jnp.dot(h, whh, precision=lax.Precision.HIGHEST) + b)
            h, c = _gates_to_state(gates, c, H)
            return (h, c), h
        h0 = jnp.zeros((B, H), jnp.float32)
        c0 = jnp.zeros((B, H), jnp.float32)
        _, hs = lax.scan(step, (h0, c0), xs)
        return hs  # (T, B, H)

    x_tm = jnp.transpose(x, (1, 0, 2))
    hf = scan_dir(params["wih_f"], params["whh_f"], params["b_f"], x_tm)
    hb = scan_dir(params["wih_b"], params["whh_b"], params["b_b"],
                  x_tm[::-1])[::-1]
    hcat = jnp.concatenate([hf, hb], axis=-1)             # (T, B, 2H)
    logit = jnp.einsum("tbh,ho->tbo", hcat, params["wfc"],
                       precision=lax.Precision.HIGHEST) + params["bfc"]
    return jnp.transpose(jax.nn.sigmoid(logit), (1, 0, 2))


if __name__ == "__main__":
    # small shapes consistent with the module: (batch, seq, in_dim)
    B, T, IN_DIM, HID_DIM = 2, 8, 128, 128

    key = jax.random.PRNGKey(0)
    k_x, k_p = jax.random.split(key)
    x = jax.random.normal(k_x, (B, T, IN_DIM), jnp.float32)
    params = make_params(k_p, IN_DIM, HID_DIM)

    p = dsn_forward(x, params)
    p = jax.block_until_ready(p)

    assert p.shape == (B, T, 1), p.shape

    p_ref = jax.block_until_ready(dsn_reference(x, params))
    # bf16 MXU operands / bf16 gx scratch with f32 accumulation & f32 gate math
    assert jnp.max(jnp.abs(p - p_ref)) < 2e-2, "mismatch vs JAX reference"

    print("KERNEL_OK")
</pallas_src>

<mosaic_0001>
module attributes {stable_mosaic.version = 11 : i64} {
  func.func @dsn_kernel(%arg0: memref<128x128xbf16, #tpu.memory_space<vmem>>, %arg1: memref<128x1024xbf16, #tpu.memory_space<vmem>>, %arg2: memref<1x1024xf32, #tpu.memory_space<vmem>>, %arg3: memref<128x512xbf16, #tpu.memory_space<vmem>>, %arg4: memref<128x512xbf16, #tpu.memory_space<vmem>>, %arg5: memref<1x256xf32, #tpu.memory_space<vmem>>, %arg6: memref<1x1xf32, #tpu.memory_space<vmem>>, %arg7: memref<128x1xf32, #tpu.memory_space<vmem>>, %arg8: memref<128x1024xbf16, #tpu.memory_space<vmem>>, %arg9: memref<128x256xf32, #tpu.memory_space<vmem>>) attributes {dimension_semantics = [], scalar_prefetch = 0 : i64, scratch_operands = 2 : i64, tpu.core_type = #tpu.core_type<tc>} {
    %c0 = arith.constant 0 : index
    %c0_0 = arith.constant 0 : index
    %0 = vector.load %arg0[%c0, %c0_0] : memref<128x128xbf16, #tpu.memory_space<vmem>>, vector<128x128xbf16>
    %c0_1 = arith.constant 0 : index
    %c0_2 = arith.constant 0 : index
    %1 = vector.load %arg1[%c0_1, %c0_2] : memref<128x1024xbf16, #tpu.memory_space<vmem>>, vector<128x1024xbf16>
    %cst = arith.constant dense<0.000000e+00> : vector<128x1024xf32>
    %2 = tpu.matmul %0, %1, %cst {dimension_numbers = #tpu.dot_dimension_numbers<[1], [0], [0], [1], [0, 0, 1, 1], [], []>} : vector<128x128xbf16>, vector<128x1024xbf16>, vector<128x1024xf32> -> vector<128x1024xf32>
    %c0_3 = arith.constant 0 : index
    %c0_4 = arith.constant 0 : index
    %3 = vector.load %arg2[%c0_3, %c0_4] : memref<1x1024xf32, #tpu.memory_space<vmem>>, vector<1x1024xf32>
    %4 = vector.broadcast %3 : vector<1x1024xf32> to vector<128x1024xf32>
    %5 = arith.addf %2, %4 : vector<128x1024xf32>
    %6 = arith.truncf %5 : vector<128x1024xf32> to vector<128x1024xbf16>
    %c0_5 = arith.constant 0 : index
    %c0_6 = arith.constant 0 : index
    %7 = vector.load %arg8[%c0_5, %c0_6] : memref<128x1024xbf16, #tpu.memory_space<vmem>>, vector<128x1024xbf16>
    tpu.vector_store %arg8[%c0_5, %c0_6], %6 {strides = array<i32>} : memref<128x1024xbf16, #tpu.memory_space<vmem>>, vector<128x1024xbf16>,
    %c0_7 = arith.constant 0 : index
    %c0_8 = arith.constant 0 : index
    %8 = vector.load %arg3[%c0_7, %c0_8] : memref<128x512xbf16, #tpu.memory_space<vmem>>, vector<128x512xbf16>
    %c0_9 = arith.constant 0 : index
    %c0_10 = arith.constant 0 : index
    %9 = vector.load %arg4[%c0_9, %c0_10] : memref<128x512xbf16, #tpu.memory_space<vmem>>, vector<128x512xbf16>
    %cst_11 = arith.constant 0.000000e+00 : f32
    %10 = vector.broadcast %cst_11 : f32 to vector<16x128xf32>
    %c0_i32 = arith.constant 0 : i32
    %c16_i32 = arith.constant 16 : i32
    %11 = arith.muli %c0_i32, %c16_i32 : i32
    %12 = tpu.assume_multiple %11, 16 : i32
    %c7_i32 = arith.constant 7 : i32
    %13 = arith.subi %c7_i32, %c0_i32 : i32
    %c16_i32_12 = arith.constant 16 : i32
    %14 = arith.muli %13, %c16_i32_12 : i32
    %15 = tpu.assume_multiple %14, 16 : i32
    %16 = arith.index_cast %12 : i32 to index
    %c0_13 = arith.constant 0 : index
    %17 = vector.load %arg8[%16, %c0_13] : memref<128x1024xbf16, #tpu.memory_space<vmem>>, vector<16x512xbf16>
    %18 = arith.extf %17 : vector<16x512xbf16> to vector<16x512xf32>
    %19 = arith.truncf %10 : vector<16x128xf32> to vector<16x128xbf16>
    %cst_14 = arith.constant dense<0.000000e+00> : vector<16x512xf32>
    %20 = tpu.matmul %19, %8, %cst_14 {dimension_numbers = #tpu.dot_dimension_numbers<[1], [0], [0], [1], [0, 0, 1, 1], [], []>} : vector<16x128xbf16>, vector<128x512xbf16>, vector<16x512xf32> -> vector<16x512xf32>
    %21 = arith.addf %18, %20 : vector<16x512xf32>
    %22 = arith.index_cast %15 : i32 to index
    %c512 = arith.constant 512 : index
    %23 = vector.load %arg8[%22, %c512] : memref<128x1024xbf16, #tpu.memory_space<vmem>>, vector<16x512xbf16>
    %24 = arith.extf %23 : vector<16x512xbf16> to vector<16x512xf32>
    %25 = arith.truncf %10 : vector<16x128xf32> to vector<16x128xbf16>
    %cst_15 = arith.constant dense<0.000000e+00> : vector<16x512xf32>
    %26 = tpu.matmul %25, %9, %cst_15 {dimension_numbers = #tpu.dot_dimension_numbers<[1], [0], [0], [1], [0, 0, 1, 1], [], []>} : vector<16x128xbf16>, vector<128x512xbf16>, vector<16x512xf32> -> vector<16x512xf32>
    %27 = arith.addf %24, %26 : vector<16x512xf32>
    %28 = vector.extract_strided_slice %21 {offsets = [0, 0], sizes = [16, 128], strides = [1, 1]} : vector<16x512xf32> to vector<16x128xf32>
    %29 = arith.negf %28 : vector<16x128xf32>
    %30 = math.exp %29 : vector<16x128xf32>
    %cst_16 = arith.constant 1.000000e+00 : f32
    %31 = vector.broadcast %cst_16 : f32 to vector<16x128xf32>
    %32 = arith.addf %31, %30 : vector<16x128xf32>
    %33 = arith.divf %31, %32 : vector<16x128xf32>
    %34 = vector.extract_strided_slice %21 {offsets = [0, 128], sizes = [16, 128], strides = [1, 1]} : vector<16x512xf32> to vector<16x128xf32>
    %35 = arith.negf %34 : vector<16x128xf32>
    %36 = math.exp %35 : vector<16x128xf32>
    %cst_17 = arith.constant 1.000000e+00 : f32
    %37 = vector.broadcast %cst_17 : f32 to vector<16x128xf32>
    %38 = arith.addf %37, %36 : vector<16x128xf32>
    %39 = arith.divf %37, %38 : vector<16x128xf32>
    %40 = vector.extract_strided_slice %21 {offsets = [0, 256], sizes = [16, 128], strides = [1, 1]} : vector<16x512xf32> to vector<16x128xf32>
    %41 = math.tanh %40 : vector<16x128xf32>
    %42 = vector.extract_strided_slice %21 {offsets = [0, 384], sizes = [16, 128], strides = [1, 1]} : vector<16x512xf32> to vector<16x128xf32>
    %43 = arith.negf %42 : vector<16x128xf32>
    %44 = math.exp %43 : vector<16x128xf32>
    %cst_18 = arith.constant 1.000000e+00 : f32
    %45 = vector.broadcast %cst_18 : f32 to vector<16x128xf32>
    %46 = arith.addf %45, %44 : vector<16x128xf32>
    %47 = arith.divf %45, %46 : vector<16x128xf32>
    %48 = arith.mulf %39, %10 : vector<16x128xf32>
    %49 = arith.mulf %33, %41 : vector<16x128xf32>
    %50 = arith.addf %48, %49 : vector<16x128xf32>
    %51 = math.tanh %50 : vector<16x128xf32>
    %52 = arith.mulf %47, %51 : vector<16x128xf32>
    %53 = vector.extract_strided_slice %27 {offsets = [0, 0], sizes = [16, 128], strides = [1, 1]} : vector<16x512xf32> to vector<16x128xf32>
    %54 = arith.negf %53 : vector<16x128xf32>
    %55 = math.exp %54 : vector<16x128xf32>
    %cst_19 = arith.constant 1.000000e+00 : f32
    %56 = vector.broadcast %cst_19 : f32 to vector<16x128xf32>
    %57 = arith.addf %56, %55 : vector<16x128xf32>
    %58 = arith.divf %56, %57 : vector<16x128xf32>
    %59 = vector.extract_strided_slice %27 {offsets = [0, 128], sizes = [16, 128], strides = [1, 1]} : vector<16x512xf32> to vector<16x128xf32>
    %60 = arith.negf %59 : vector<16x128xf32>
    %61 = math.exp %60 : vector<16x128xf32>
    %cst_20 = arith.constant 1.000000e+00 : f32
    %62 = vector.broadcast %cst_20 : f32 to vector<16x128xf32>
    %63 = arith.addf %62, %61 : vector<16x128xf32>
    %64 = arith.divf %62, %63 : vector<16x128xf32>
    %65 = vector.extract_strided_slice %27 {offsets = [0, 256], sizes = [16, 128], strides = [1, 1]} : vector<16x512xf32> to vector<16x128xf32>
    %66 = math.tanh %65 : vector<16x128xf32>
    %67 = vector.extract_strided_slice %27 {offsets = [0, 384], sizes = [16, 128], strides = [1, 1]} : vector<16x512xf32> to vector<16x128xf32>
    %68 = arith.negf %67 : vector<16x128xf32>
    %69 = math.exp %68 : vector<16x128xf32>
    %cst_21 = arith.constant 1.000000e+00 : f32
    %70 = vector.broadcast %cst_21 : f32 to vector<16x128xf32>
    %71 = arith.addf %70, %69 : vector<16x128xf32>
    %72 = arith.divf %70, %71 : vector<16x128xf32>
    %73 = arith.mulf %64, %10 : vector<16x128xf32>
    %74 = arith.mulf %58, %66 : vector<16x128xf32>
    %75 = arith.addf %73, %74 : vector<16x128xf32>
    %76 = math.tanh %75 : vector<16x128xf32>
    %77 = arith.mulf %72, %76 : vector<16x128xf32>
    %78 = arith.index_cast %12 : i32 to index
    %c0_22 = arith.constant 0 : index
    %79 = vector.load %arg9[%78, %c0_22] : memref<128x256xf32, #tpu.memory_space<vmem>>, vector<16x128xf32>
    tpu.vector_store %arg9[%78, %c0_22], %52 {strides = array<i32>} : memref<128x256xf32, #tpu.memory_space<vmem>>, vector<16x128xf32>,
    %80 = arith.index_cast %15 : i32 to index
    %c128 = arith.constant 128 : index
    %81 = vector.load %arg9[%80, %c128] : memref<128x256xf32, #tpu.memory_space<vmem>>, vector<16x128xf32>
    tpu.vector_store %arg9[%80, %c128], %77 {strides = array<i32>} : memref<128x256xf32, #tpu.memory_space<vmem>>, vector<16x128xf32>,
    %c1_i32 = arith.constant 1 : i32
    %c16_i32_23 = arith.constant 16 : i32
    %82 = arith.muli %c1_i32, %c16_i32_23 : i32
    %83 = tpu.assume_multiple %82, 16 : i32
    %c7_i32_24 = arith.constant 7 : i32
    %84 = arith.subi %c7_i32_24, %c1_i32 : i32
    %c16_i32_25 = arith.constant 16 : i32
    %85 = arith.muli %84, %c16_i32_25 : i32
    %86 = tpu.assume_multiple %85, 16 : i32
    %87 = arith.index_cast %83 : i32 to index
    %c0_26 = arith.constant 0 : index
    %88 = vector.load %arg8[%87, %c0_26] : memref<128x1024xbf16, #tpu.memory_space<vmem>>, vector<16x512xbf16>
    %89 = arith.extf %88 : vector<16x512xbf16> to vector<16x512xf32>
    %90 = arith.truncf %52 : vector<16x128xf32> to vector<16x128xbf16>
    %cst_27 = arith.constant dense<0.000000e+00> : vector<16x512xf32>
    %91 = tpu.matmul %90, %8, %cst_27 {dimension_numbers = #tpu.dot_dimension_numbers<[1], [0], [0], [1], [0, 0, 1, 1], [], []>} : vector<16x128xbf16>, vector<128x512xbf16>, vector<16x512xf32> -> vector<16x512xf32>
    %92 = arith.addf %89, %91 : vector<16x512xf32>
    %93 = arith.index_cast %86 : i32 to index
    %c512_28 = arith.constant 512 : index
    %94 = vector.load %arg8[%93, %c512_28] : memref<128x1024xbf16, #tpu.memory_space<vmem>>, vector<16x512xbf16>
    %95 = arith.extf %94 : vector<16x512xbf16> to vector<16x512xf32>
    %96 = arith.truncf %77 : vector<16x128xf32> to vector<16x128xbf16>
    %cst_29 = arith.constant dense<0.000000e+00> : vector<16x512xf32>
    %97 = tpu.matmul %96, %9, %cst_29 {dimension_numbers = #tpu.dot_dimension_numbers<[1], [0], [0], [1], [0, 0, 1, 1], [], []>} : vector<16x128xbf16>, vector<128x512xbf16>, vector<16x512xf32> -> vector<16x512xf32>
    %98 = arith.addf %95, %97 : vector<16x512xf32>
    %99 = vector.extract_strided_slice %92 {offsets = [0, 0], sizes = [16, 128], strides = [1, 1]} : vector<16x512xf32> to vector<16x128xf32>
    %100 = arith.negf %99 : vector<16x128xf32>
    %101 = math.exp %100 : vector<16x128xf32>
    %cst_30 = arith.constant 1.000000e+00 : f32
    %102 = vector.broadcast %cst_30 : f32 to vector<16x128xf32>
    %103 = arith.addf %102, %101 : vector<16x128xf32>
    %104 = arith.divf %102, %103 : vector<16x128xf32>
    %105 = vector.extract_strided_slice %92 {offsets = [0, 128], sizes = [16, 128], strides = [1, 1]} : vector<16x512xf32> to vector<16x128xf32>
    %106 = arith.negf %105 : vector<16x128xf32>
    %107 = math.exp %106 : vector<16x128xf32>
    %cst_31 = arith.constant 1.000000e+00 : f32
    %108 = vector.broadcast %cst_31 : f32 to vector<16x128xf32>
    %109 = arith.addf %108, %107 : vector<16x128xf32>
    %110 = arith.divf %108, %109 : vector<16x128xf32>
    %111 = vector.extract_strided_slice %92 {offsets = [0, 256], sizes = [16, 128], strides = [1, 1]} : vector<16x512xf32> to vector<16x128xf32>
    %112 = math.tanh %111 : vector<16x128xf32>
    %113 = vector.extract_strided_slice %92 {offsets = [0, 384], sizes = [16, 128], strides = [1, 1]} : vector<16x512xf32> to vector<16x128xf32>
    %114 = arith.negf %113 : vector<16x128xf32>
    %115 = math.exp %114 : vector<16x128xf32>
    %cst_32 = arith.constant 1.000000e+00 : f32
    %116 = vector.broadcast %cst_32 : f32 to vector<16x128xf32>
    %117 = arith.addf %116, %115 : vector<16x128xf32>
    %118 = arith.divf %116, %117 : vector<16x128xf32>
    %119 = arith.mulf %110, %50 : vector<16x128xf32>
    %120 = arith.mulf %104, %112 : vector<16x128xf32>
    %121 = arith.addf %119, %120 : vector<16x128xf32>
    %122 = math.tanh %121 : vector<16x128xf32>
    %123 = arith.mulf %118, %122 : vector<16x128xf32>
    %124 = vector.extract_strided_slice %98 {offsets = [0, 0], sizes = [16, 128], strides = [1, 1]} : vector<16x512xf32> to vector<16x128xf32>
    %125 = arith.negf %124 : vector<16x128xf32>
    %126 = math.exp %125 : vector<16x128xf32>
    %cst_33 = arith.constant 1.000000e+00 : f32
    %127 = vector.broadcast %cst_33 : f32 to vector<16x128xf32>
    %128 = arith.addf %127, %126 : vector<16x128xf32>
    %129 = arith.divf %127, %128 : vector<16x128xf32>
    %130 = vector.extract_strided_slice %98 {offsets = [0, 128], sizes = [16, 128], strides = [1, 1]} : vector<16x512xf32> to vector<16x128xf32>
    %131 = arith.negf %130 : vector<16x128xf32>
    %132 = math.exp %131 : vector<16x128xf32>
    %cst_34 = arith.constant 1.000000e+00 : f32
    %133 = vector.broadcast %cst_34 : f32 to vector<16x128xf32>
    %134 = arith.addf %133, %132 : vector<16x128xf32>
    %135 = arith.divf %133, %134 : vector<16x128xf32>
    %136 = vector.extract_strided_slice %98 {offsets = [0, 256], sizes = [16, 128], strides = [1, 1]} : vector<16x512xf32> to vector<16x128xf32>
    %137 = math.tanh %136 : vector<16x128xf32>
    %138 = vector.extract_strided_slice %98 {offsets = [0, 384], sizes = [16, 128], strides = [1, 1]} : vector<16x512xf32> to vector<16x128xf32>
    %139 = arith.negf %138 : vector<16x128xf32>
    %140 = math.exp %139 : vector<16x128xf32>
    %cst_35 = arith.constant 1.000000e+00 : f32
    %141 = vector.broadcast %cst_35 : f32 to vector<16x128xf32>
    %142 = arith.addf %141, %140 : vector<16x128xf32>
    %143 = arith.divf %141, %142 : vector<16x128xf32>
    %144 = arith.mulf %135, %75 : vector<16x128xf32>
    %145 = arith.mulf %129, %137 : vector<16x128xf32>
    %146 = arith.addf %144, %145 : vector<16x128xf32>
    %147 = math.tanh %146 : vector<16x128xf32>
    %148 = arith.mulf %143, %147 : vector<16x128xf32>
    %149 = arith.index_cast %83 : i32 to index
    %c0_36 = arith.constant 0 : index
    %150 = vector.load %arg9[%149, %c0_36] : memref<128x256xf32, #tpu.memory_space<vmem>>, vector<16x128xf32>
    tpu.vector_store %arg9[%149, %c0_36], %123 {strides = array<i32>} : memref<128x256xf32, #tpu.memory_space<vmem>>, vector<16x128xf32>,
    %151 = arith.index_cast %86 : i32 to index
    %c128_37 = arith.constant 128 : index
    %152 = vector.load %arg9[%151, %c128_37] : memref<128x256xf32, #tpu.memory_space<vmem>>, vector<16x128xf32>
    tpu.vector_store %arg9[%151, %c128_37], %148 {strides = array<i32>} : memref<128x256xf32, #tpu.memory_space<vmem>>, vector<16x128xf32>,
    %c2_i32 = arith.constant 2 : i32
    %c16_i32_38 = arith.constant 16 : i32
    %153 = arith.muli %c2_i32, %c16_i32_38 : i32
    %154 = tpu.assume_multiple %153, 16 : i32
    %c7_i32_39 = arith.constant 7 : i32
    %155 = arith.subi %c7_i32_39, %c2_i32 : i32
    %c16_i32_40 = arith.constant 16 : i32
    %156 = arith.muli %155, %c16_i32_40 : i32
    %157 = tpu.assume_multiple %156, 16 : i32
    %158 = arith.index_cast %154 : i32 to index
    %c0_41 = arith.constant 0 : index
    %159 = vector.load %arg8[%158, %c0_41] : memref<128x1024xbf16, #tpu.memory_space<vmem>>, vector<16x512xbf16>
    %160 = arith.extf %159 : vector<16x512xbf16> to vector<16x512xf32>
    %161 = arith.truncf %123 : vector<16x128xf32> to vector<16x128xbf16>
    %cst_42 = arith.constant dense<0.000000e+00> : vector<16x512xf32>
    %162 = tpu.matmul %161, %8, %cst_42 {dimension_numbers = #tpu.dot_dimension_numbers<[1], [0], [0], [1], [0, 0, 1, 1], [], []>} : vector<16x128xbf16>, vector<128x512xbf16>, vector<16x512xf32> -> vector<16x512xf32>
    %163 = arith.addf %160, %162 : vector<16x512xf32>
    %164 = arith.index_cast %157 : i32 to index
    %c512_43 = arith.constant 512 : index
    %165 = vector.load %arg8[%164, %c512_43] : memref<128x1024xbf16, #tpu.memory_space<vmem>>, vector<16x512xbf16>
    %166 = arith.extf %165 : vector<16x512xbf16> to vector<16x512xf32>
    %167 = arith.truncf %148 : vector<16x128xf32> to vector<16x128xbf16>
    %cst_44 = arith.constant dense<0.000000e+00> : vector<16x512xf32>
    %168 = tpu.matmul %167, %9, %cst_44 {dimension_numbers = #tpu.dot_dimension_numbers<[1], [0], [0], [1], [0, 0, 1, 1], [], []>} : vector<16x128xbf16>, vector<128x512xbf16>, vector<16x512xf32> -> vector<16x512xf32>
    %169 = arith.addf %166, %168 : vector<16x512xf32>
    %170 = vector.extract_strided_slice %163 {offsets = [0, 0], sizes = [16, 128], strides = [1, 1]} : vector<16x512xf32> to vector<16x128xf32>
    %171 = arith.negf %170 : vector<16x128xf32>
    %172 = math.exp %171 : vector<16x128xf32>
    %cst_45 = arith.constant 1.000000e+00 : f32
    %173 = vector.broadcast %cst_45 : f32 to vector<16x128xf32>
    %174 = arith.addf %173, %172 : vector<16x128xf32>
    %175 = arith.divf %173, %174 : vector<16x128xf32>
    %176 = vector.extract_strided_slice %163 {offsets = [0, 128], sizes = [16, 128], strides = [1, 1]} : vector<16x512xf32> to vector<16x128xf32>
    %177 = arith.negf %176 : vector<16x128xf32>
    %178 = math.exp %177 : vector<16x128xf32>
    %cst_46 = arith.constant 1.000000e+00 : f32
    %179 = vector.broadcast %cst_46 : f32 to vector<16x128xf32>
    %180 = arith.addf %179, %178 : vector<16x128xf32>
    %181 = arith.divf %179, %180 : vector<16x128xf32>
    %182 = vector.extract_strided_slice %163 {offsets = [0, 256], sizes = [16, 128], strides = [1, 1]} : vector<16x512xf32> to vector<16x128xf32>
    %183 = math.tanh %182 : vector<16x128xf32>
    %184 = vector.extract_strided_slice %163 {offsets = [0, 384], sizes = [16, 128], strides = [1, 1]} : vector<16x512xf32> to vector<16x128xf32>
    %185 = arith.negf %184 : vector<16x128xf32>
    %186 = math.exp %185 : vector<16x128xf32>
    %cst_47 = arith.constant 1.000000e+00 : f32
    %187 = vector.broadcast %cst_47 : f32 to vector<16x128xf32>
    %188 = arith.addf %187, %186 : vector<16x128xf32>
    %189 = arith.divf %187, %188 : vector<16x128xf32>
    %190 = arith.mulf %181, %121 : vector<16x128xf32>
    %191 = arith.mulf %175, %183 : vector<16x128xf32>
    %192 = arith.addf %190, %191 : vector<16x128xf32>
    %193 = math.tanh %192 : vector<16x128xf32>
    %194 = arith.mulf %189, %193 : vector<16x128xf32>
    %195 = vector.extract_strided_slice %169 {offsets = [0, 0], sizes = [16, 128], strides = [1, 1]} : vector<16x512xf32> to vector<16x128xf32>
    %196 = arith.negf %195 : vector<16x128xf32>
    %197 = math.exp %196 : vector<16x128xf32>
    %cst_48 = arith.constant 1.000000e+00 : f32
    %198 = vector.broadcast %cst_48 : f32 to vector<16x128xf32>
    %199 = arith.addf %198, %197 : vector<16x128xf32>
    %200 = arith.divf %198, %199 : vector<16x128xf32>
    %201 = vector.extract_strided_slice %169 {offsets = [0, 128], sizes = [16, 128], strides = [1, 1]} : vector<16x512xf32> to vector<16x128xf32>
    %202 = arith.negf %201 : vector<16x128xf32>
    %203 = math.exp %202 : vector<16x128xf32>
    %cst_49 = arith.constant 1.000000e+00 : f32
    %204 = vector.broadcast %cst_49 : f32 to vector<16x128xf32>
    %205 = arith.addf %204, %203 : vector<16x128xf32>
    %206 = arith.divf %204, %205 : vector<16x128xf32>
    %207 = vector.extract_strided_slice %169 {offsets = [0, 256], sizes = [16, 128], strides = [1, 1]} : vector<16x512xf32> to vector<16x128xf32>
    %208 = math.tanh %207 : vector<16x128xf32>
    %209 = vector.extract_strided_slice %169 {offsets = [0, 384], sizes = [16, 128], strides = [1, 1]} : vector<16x512xf32> to vector<16x128xf32>
    %210 = arith.negf %209 : vector<16x128xf32>
    %211 = math.exp %210 : vector<16x128xf32>
    %cst_50 = arith.constant 1.000000e+00 : f32
    %212 = vector.broadcast %cst_50 : f32 to vector<16x128xf32>
    %213 = arith.addf %212, %211 : vector<16x128xf32>
    %214 = arith.divf %212, %213 : vector<16x128xf32>
    %215 = arith.mulf %206, %146 : vector<16x128xf32>
    %216 = arith.mulf %200, %208 : vector<16x128xf32>
    %217 = arith.addf %215, %216 : vector<16x128xf32>
    %218 = math.tanh %217 : vector<16x128xf32>
    %219 = arith.mulf %214, %218 : vector<16x128xf32>
    %220 = arith.index_cast %154 : i32 to index
    %c0_51 = arith.constant 0 : index
    %221 = vector.load %arg9[%220, %c0_51] : memref<128x256xf32, #tpu.memory_space<vmem>>, vector<16x128xf32>
    tpu.vector_store %arg9[%220, %c0_51], %194 {strides = array<i32>} : memref<128x256xf32, #tpu.memory_space<vmem>>, vector<16x128xf32>,
    %222 = arith.index_cast %157 : i32 to index
    %c128_52 = arith.constant 128 : index
    %223 = vector.load %arg9[%222, %c128_52] : memref<128x256xf32, #tpu.memory_space<vmem>>, vector<16x128xf32>
    tpu.vector_store %arg9[%222, %c128_52], %219 {strides = array<i32>} : memref<128x256xf32, #tpu.memory_space<vmem>>, vector<16x128xf32>,
    %c3_i32 = arith.constant 3 : i32
    %c16_i32_53 = arith.constant 16 : i32
    %224 = arith.muli %c3_i32, %c16_i32_53 : i32
    %225 = tpu.assume_multiple %224, 16 : i32
    %c7_i32_54 = arith.constant 7 : i32
    %226 = arith.subi %c7_i32_54, %c3_i32 : i32
    %c16_i32_55 = arith.constant 16 : i32
    %227 = arith.muli %226, %c16_i32_55 : i32
    %228 = tpu.assume_multiple %227, 16 : i32
    %229 = arith.index_cast %225 : i32 to index
    %c0_56 = arith.constant 0 : index
    %230 = vector.load %arg8[%229, %c0_56] : memref<128x1024xbf16, #tpu.memory_space<vmem>>, vector<16x512xbf16>
    %231 = arith.extf %230 : vector<16x512xbf16> to vector<16x512xf32>
    %232 = arith.truncf %194 : vector<16x128xf32> to vector<16x128xbf16>
    %cst_57 = arith.constant dense<0.000000e+00> : vector<16x512xf32>
    %233 = tpu.matmul %232, %8, %cst_57 {dimension_numbers = #tpu.dot_dimension_numbers<[1], [0], [0], [1], [0, 0, 1, 1], [], []>} : vector<16x128xbf16>, vector<128x512xbf16>, vector<16x512xf32> -> vector<16x512xf32>
    %234 = arith.addf %231, %233 : vector<16x512xf32>
    %235 = arith.index_cast %228 : i32 to index
    %c512_58 = arith.constant 512 : index
    %236 = vector.load %arg8[%235, %c512_58] : memref<128x1024xbf16, #tpu.memory_space<vmem>>, vector<16x512xbf16>
    %237 = arith.extf %236 : vector<16x512xbf16> to vector<16x512xf32>
    %238 = arith.truncf %219 : vector<16x128xf32> to vector<16x128xbf16>
    %cst_59 = arith.constant dense<0.000000e+00> : vector<16x512xf32>
    %239 = tpu.matmul %238, %9, %cst_59 {dimension_numbers = #tpu.dot_dimension_numbers<[1], [0], [0], [1], [0, 0, 1, 1], [], []>} : vector<16x128xbf16>, vector<128x512xbf16>, vector<16x512xf32> -> vector<16x512xf32>
    %240 = arith.addf %237, %239 : vector<16x512xf32>
    %241 = vector.extract_strided_slice %234 {offsets = [0, 0], sizes = [16, 128], strides = [1, 1]} : vector<16x512xf32> to vector<16x128xf32>
    %242 = arith.negf %241 : vector<16x128xf32>
    %243 = math.exp %242 : vector<16x128xf32>
    %cst_60 = arith.constant 1.000000e+00 : f32
    %244 = vector.broadcast %cst_60 : f32 to vector<16x128xf32>
    %245 = arith.addf %244, %243 : vector<16x128xf32>
    %246 = arith.divf %244, %245 : vector<16x128xf32>
    %247 = vector.extract_strided_slice %234 {offsets = [0, 128], sizes = [16, 128], strides = [1, 1]} : vector<16x512xf32> to vector<16x128xf32>
    %248 = arith.negf %247 : vector<16x128xf32>
    %249 = math.exp %248 : vector<16x128xf32>
    %cst_61 = arith.constant 1.000000e+00 : f32
    %250 = vector.broadcast %cst_61 : f32 to vector<16x128xf32>
    %251 = arith.addf %250, %249 : vector<16x128xf32>
    %252 = arith.divf %250, %251 : vector<16x128xf32>
    %253 = vector.extract_strided_slice %234 {offsets = [0, 256], sizes = [16, 128], strides = [1, 1]} : vector<16x512xf32> to vector<16x128xf32>
    %254 = math.tanh %253 : vector<16x128xf32>
    %255 = vector.extract_strided_slice %234 {offsets = [0, 384], sizes = [16, 128], strides = [1, 1]} : vector<16x512xf32> to vector<16x128xf32>
    %256 = arith.negf %255 : vector<16x128xf32>
    %257 = math.exp %256 : vector<16x128xf32>
    %cst_62 = arith.constant 1.000000e+00 : f32
    %258 = vector.broadcast %cst_62 : f32 to vector<16x128xf32>
    %259 = arith.addf %258, %257 : vector<16x128xf32>
    %260 = arith.divf %258, %259 : vector<16x128xf32>
    %261 = arith.mulf %252, %192 : vector<16x128xf32>
    %262 = arith.mulf %246, %254 : vector<16x128xf32>
    %263 = arith.addf %261, %262 : vector<16x128xf32>
    %264 = math.tanh %263 : vector<16x128xf32>
    %265 = arith.mulf %260, %264 : vector<16x128xf32>
    %266 = vector.extract_strided_slice %240 {offsets = [0, 0], sizes = [16, 128], strides = [1, 1]} : vector<16x512xf32> to vector<16x128xf32>
    %267 = arith.negf %266 : vector<16x128xf32>
    %268 = math.exp %267 : vector<16x128xf32>
    %cst_63 = arith.constant 1.000000e+00 : f32
    %269 = vector.broadcast %cst_63 : f32 to vector<16x128xf32>
    %270 = arith.addf %269, %268 : vector<16x128xf32>
    %271 = arith.divf %269, %270 : vector<16x128xf32>
    %272 = vector.extract_strided_slice %240 {offsets = [0, 128], sizes = [16, 128], strides = [1, 1]} : vector<16x512xf32> to vector<16x128xf32>
    %273 = arith.negf %272 : vector<16x128xf32>
    %274 = math.exp %273 : vector<16x128xf32>
    %cst_64 = arith.constant 1.000000e+00 : f32
    %275 = vector.broadcast %cst_64 : f32 to vector<16x128xf32>
    %276 = arith.addf %275, %274 : vector<16x128xf32>
    %277 = arith.divf %275, %276 : vector<16x128xf32>
    %278 = vector.extract_strided_slice %240 {offsets = [0, 256], sizes = [16, 128], strides = [1, 1]} : vector<16x512xf32> to vector<16x128xf32>
    %279 = math.tanh %278 : vector<16x128xf32>
    %280 = vector.extract_strided_slice %240 {offsets = [0, 384], sizes = [16, 128], strides = [1, 1]} : vector<16x512xf32> to vector<16x128xf32>
    %281 = arith.negf %280 : vector<16x128xf32>
    %282 = math.exp %281 : vector<16x128xf32>
    %cst_65 = arith.constant 1.000000e+00 : f32
    %283 = vector.broadcast %cst_65 : f32 to vector<16x128xf32>
    %284 = arith.addf %283, %282 : vector<16x128xf32>
    %285 = arith.divf %283, %284 : vector<16x128xf32>
    %286 = arith.mulf %277, %217 : vector<16x128xf32>
    %287 = arith.mulf %271, %279 : vector<16x128xf32>
    %288 = arith.addf %286, %287 : vector<16x128xf32>
    %289 = math.tanh %288 : vector<16x128xf32>
    %290 = arith.mulf %285, %289 : vector<16x128xf32>
    %291 = arith.index_cast %225 : i32 to index
    %c0_66 = arith.constant 0 : index
    %292 = vector.load %arg9[%291, %c0_66] : memref<128x256xf32, #tpu.memory_space<vmem>>, vector<16x128xf32>
    tpu.vector_store %arg9[%291, %c0_66], %265 {strides = array<i32>} : memref<128x256xf32, #tpu.memory_space<vmem>>, vector<16x128xf32>,
    %293 = arith.index_cast %228 : i32 to index
    %c128_67 = arith.constant 128 : index
    %294 = vector.load %arg9[%293, %c128_67] : memref<128x256xf32, #tpu.memory_space<vmem>>, vector<16x128xf32>
    tpu.vector_store %arg9[%293, %c128_67], %290 {strides = array<i32>} : memref<128x256xf32, #tpu.memory_space<vmem>>, vector<16x128xf32>,
    %c4_i32 = arith.constant 4 : i32
    %c16_i32_68 = arith.constant 16 : i32
    %295 = arith.muli %c4_i32, %c16_i32_68 : i32
    %296 = tpu.assume_multiple %295, 16 : i32
    %c7_i32_69 = arith.constant 7 : i32
    %297 = arith.subi %c7_i32_69, %c4_i32 : i32
    %c16_i32_70 = arith.constant 16 : i32
    %298 = arith.muli %297, %c16_i32_70 : i32
    %299 = tpu.assume_multiple %298, 16 : i32
    %300 = arith.index_cast %296 : i32 to index
    %c0_71 = arith.constant 0 : index
    %301 = vector.load %arg8[%300, %c0_71] : memref<128x1024xbf16, #tpu.memory_space<vmem>>, vector<16x512xbf16>
    %302 = arith.extf %301 : vector<16x512xbf16> to vector<16x512xf32>
    %303 = arith.truncf %265 : vector<16x128xf32> to vector<16x128xbf16>
    %cst_72 = arith.constant dense<0.000000e+00> : vector<16x512xf32>
    %304 = tpu.matmul %303, %8, %cst_72 {dimension_numbers = #tpu.dot_dimension_numbers<[1], [0], [0], [1], [0, 0, 1, 1], [], []>} : vector<16x128xbf16>, vector<128x512xbf16>, vector<16x512xf32> -> vector<16x512xf32>
    %305 = arith.addf %302, %304 : vector<16x512xf32>
    %306 = arith.index_cast %299 : i32 to index
    %c512_73 = arith.constant 512 : index
    %307 = vector.load %arg8[%306, %c512_73] : memref<128x1024xbf16, #tpu.memory_space<vmem>>, vector<16x512xbf16>
    %308 = arith.extf %307 : vector<16x512xbf16> to vector<16x512xf32>
    %309 = arith.truncf %290 : vector<16x128xf32> to vector<16x128xbf16>
    %cst_74 = arith.constant dense<0.000000e+00> : vector<16x512xf32>
    %310 = tpu.matmul %309, %9, %cst_74 {dimension_numbers = #tpu.dot_dimension_numbers<[1], [0], [0], [1], [0, 0, 1, 1], [], []>} : vector<16x128xbf16>, vector<128x512xbf16>, vector<16x512xf32> -> vector<16x512xf32>
    %311 = arith.addf %308, %310 : vector<16x512xf32>
    %312 = vector.extract_strided_slice %305 {offsets = [0, 0], sizes = [16, 128], strides = [1, 1]} : vector<16x512xf32> to vector<16x128xf32>
    %313 = arith.negf %312 : vector<16x128xf32>
    %314 = math.exp %313 : vector<16x128xf32>
    %cst_75 = arith.constant 1.000000e+00 : f32
    %315 = vector.broadcast %cst_75 : f32 to vector<16x128xf32>
    %316 = arith.addf %315, %314 : vector<16x128xf32>
    %317 = arith.divf %315, %316 : vector<16x128xf32>
    %318 = vector.extract_strided_slice %305 {offsets = [0, 128], sizes = [16, 128], strides = [1, 1]} : vector<16x512xf32> to vector<16x128xf32>
    %319 = arith.negf %318 : vector<16x128xf32>
    %320 = math.exp %319 : vector<16x128xf32>
    %cst_76 = arith.constant 1.000000e+00 : f32
    %321 = vector.broadcast %cst_76 : f32 to vector<16x128xf32>
    %322 = arith.addf %321, %320 : vector<16x128xf32>
    %323 = arith.divf %321, %322 : vector<16x128xf32>
    %324 = vector.extract_strided_slice %305 {offsets = [0, 256], sizes = [16, 128], strides = [1, 1]} : vector<16x512xf32> to vector<16x128xf32>
    %325 = math.tanh %324 : vector<16x128xf32>
    %326 = vector.extract_strided_slice %305 {offsets = [0, 384], sizes = [16, 128], strides = [1, 1]} : vector<16x512xf32> to vector<16x128xf32>
    %327 = arith.negf %326 : vector<16x128xf32>
    %328 = math.exp %327 : vector<16x128xf32>
    %cst_77 = arith.constant 1.000000e+00 : f32
    %329 = vector.broadcast %cst_77 : f32 to vector<16x128xf32>
    %330 = arith.addf %329, %328 : vector<16x128xf32>
    %331 = arith.divf %329, %330 : vector<16x128xf32>
    %332 = arith.mulf %323, %263 : vector<16x128xf32>
    %333 = arith.mulf %317, %325 : vector<16x128xf32>
    %334 = arith.addf %332, %333 : vector<16x128xf32>
    %335 = math.tanh %334 : vector<16x128xf32>
    %336 = arith.mulf %331, %335 : vector<16x128xf32>
    %337 = vector.extract_strided_slice %311 {offsets = [0, 0], sizes = [16, 128], strides = [1, 1]} : vector<16x512xf32> to vector<16x128xf32>
    %338 = arith.negf %337 : vector<16x128xf32>
    %339 = math.exp %338 : vector<16x128xf32>
    %cst_78 = arith.constant 1.000000e+00 : f32
    %340 = vector.broadcast %cst_78 : f32 to vector<16x128xf32>
    %341 = arith.addf %340, %339 : vector<16x128xf32>
    %342 = arith.divf %340, %341 : vector<16x128xf32>
    %343 = vector.extract_strided_slice %311 {offsets = [0, 128], sizes = [16, 128], strides = [1, 1]} : vector<16x512xf32> to vector<16x128xf32>
    %344 = arith.negf %343 : vector<16x128xf32>
    %345 = math.exp %344 : vector<16x128xf32>
    %cst_79 = arith.constant 1.000000e+00 : f32
    %346 = vector.broadcast %cst_79 : f32 to vector<16x128xf32>
    %347 = arith.addf %346, %345 : vector<16x128xf32>
    %348 = arith.divf %346, %347 : vector<16x128xf32>
    %349 = vector.extract_strided_slice %311 {offsets = [0, 256], sizes = [16, 128], strides = [1, 1]} : vector<16x512xf32> to vector<16x128xf32>
    %350 = math.tanh %349 : vector<16x128xf32>
    %351 = vector.extract_strided_slice %311 {offsets = [0, 384], sizes = [16, 128], strides = [1, 1]} : vector<16x512xf32> to vector<16x128xf32>
    %352 = arith.negf %351 : vector<16x128xf32>
    %353 = math.exp %352 : vector<16x128xf32>
    %cst_80 = arith.constant 1.000000e+00 : f32
    %354 = vector.broadcast %cst_80 : f32 to vector<16x128xf32>
    %355 = arith.addf %354, %353 : vector<16x128xf32>
    %356 = arith.divf %354, %355 : vector<16x128xf32>
    %357 = arith.mulf %348, %288 : vector<16x128xf32>
    %358 = arith.mulf %342, %350 : vector<16x128xf32>
    %359 = arith.addf %357, %358 : vector<16x128xf32>
    %360 = math.tanh %359 : vector<16x128xf32>
    %361 = arith.mulf %356, %360 : vector<16x128xf32>
    %362 = arith.index_cast %296 : i32 to index
    %c0_81 = arith.constant 0 : index
    %363 = vector.load %arg9[%362, %c0_81] : memref<128x256xf32, #tpu.memory_space<vmem>>, vector<16x128xf32>
    tpu.vector_store %arg9[%362, %c0_81], %336 {strides = array<i32>} : memref<128x256xf32, #tpu.memory_space<vmem>>, vector<16x128xf32>,
    %364 = arith.index_cast %299 : i32 to index
    %c128_82 = arith.constant 128 : index
    %365 = vector.load %arg9[%364, %c128_82] : memref<128x256xf32, #tpu.memory_space<vmem>>, vector<16x128xf32>
    tpu.vector_store %arg9[%364, %c128_82], %361 {strides = array<i32>} : memref<128x256xf32, #tpu.memory_space<vmem>>, vector<16x128xf32>,
    %c5_i32 = arith.constant 5 : i32
    %c16_i32_83 = arith.constant 16 : i32
    %366 = arith.muli %c5_i32, %c16_i32_83 : i32
    %367 = tpu.assume_multiple %366, 16 : i32
    %c7_i32_84 = arith.constant 7 : i32
    %368 = arith.subi %c7_i32_84, %c5_i32 : i32
    %c16_i32_85 = arith.constant 16 : i32
    %369 = arith.muli %368, %c16_i32_85 : i32
    %370 = tpu.assume_multiple %369, 16 : i32
    %371 = arith.index_cast %367 : i32 to index
    %c0_86 = arith.constant 0 : index
    %372 = vector.load %arg8[%371, %c0_86] : memref<128x1024xbf16, #tpu.memory_space<vmem>>, vector<16x512xbf16>
    %373 = arith.extf %372 : vector<16x512xbf16> to vector<16x512xf32>
    %374 = arith.truncf %336 : vector<16x128xf32> to vector<16x128xbf16>
    %cst_87 = arith.constant dense<0.000000e+00> : vector<16x512xf32>
    %375 = tpu.matmul %374, %8, %cst_87 {dimension_numbers = #tpu.dot_dimension_numbers<[1], [0], [0], [1], [0, 0, 1, 1], [], []>} : vector<16x128xbf16>, vector<128x512xbf16>, vector<16x512xf32> -> vector<16x512xf32>
    %376 = arith.addf %373, %375 : vector<16x512xf32>
    %377 = arith.index_cast %370 : i32 to index
    %c512_88 = arith.constant 512 : index
    %378 = vector.load %arg8[%377, %c512_88] : memref<128x1024xbf16, #tpu.memory_space<vmem>>, vector<16x512xbf16>
    %379 = arith.extf %378 : vector<16x512xbf16> to vector<16x512xf32>
    %380 = arith.truncf %361 : vector<16x128xf32> to vector<16x128xbf16>
    %cst_89 = arith.constant dense<0.000000e+00> : vector<16x512xf32>
    %381 = tpu.matmul %380, %9, %cst_89 {dimension_numbers = #tpu.dot_dimension_numbers<[1], [0], [0], [1], [0, 0, 1, 1], [], []>} : vector<16x128xbf16>, vector<128x512xbf16>, vector<16x512xf32> -> vector<16x512xf32>
    %382 = arith.addf %379, %381 : vector<16x512xf32>
    %383 = vector.extract_strided_slice %376 {offsets = [0, 0], sizes = [16, 128], strides = [1, 1]} : vector<16x512xf32> to vector<16x128xf32>
    %384 = arith.negf %383 : vector<16x128xf32>
    %385 = math.exp %384 : vector<16x128xf32>
    %cst_90 = arith.constant 1.000000e+00 : f32
    %386 = vector.broadcast %cst_90 : f32 to vector<16x128xf32>
    %387 = arith.addf %386, %385 : vector<16x128xf32>
    %388 = arith.divf %386, %387 : vector<16x128xf32>
    %389 = vector.extract_strided_slice %376 {offsets = [0, 128], sizes = [16, 128], strides = [1, 1]} : vector<16x512xf32> to vector<16x128xf32>
    %390 = arith.negf %389 : vector<16x128xf32>
    %391 = math.exp %390 : vector<16x128xf32>
    %cst_91 = arith.constant 1.000000e+00 : f32
    %392 = vector.broadcast %cst_91 : f32 to vector<16x128xf32>
    %393 = arith.addf %392, %391 : vector<16x128xf32>
    %394 = arith.divf %392, %393 : vector<16x128xf32>
    %395 = vector.extract_strided_slice %376 {offsets = [0, 256], sizes = [16, 128], strides = [1, 1]} : vector<16x512xf32> to vector<16x128xf32>
    %396 = math.tanh %395 : vector<16x128xf32>
    %397 = vector.extract_strided_slice %376 {offsets = [0, 384], sizes = [16, 128], strides = [1, 1]} : vector<16x512xf32> to vector<16x128xf32>
    %398 = arith.negf %397 : vector<16x128xf32>
    %399 = math.exp %398 : vector<16x128xf32>
    %cst_92 = arith.constant 1.000000e+00 : f32
    %400 = vector.broadcast %cst_92 : f32 to vector<16x128xf32>
    %401 = arith.addf %400, %399 : vector<16x128xf32>
    %402 = arith.divf %400, %401 : vector<16x128xf32>
    %403 = arith.mulf %394, %334 : vector<16x128xf32>
    %404 = arith.mulf %388, %396 : vector<16x128xf32>
    %405 = arith.addf %403, %404 : vector<16x128xf32>
    %406 = math.tanh %405 : vector<16x128xf32>
    %407 = arith.mulf %402, %406 : vector<16x128xf32>
    %408 = vector.extract_strided_slice %382 {offsets = [0, 0], sizes = [16, 128], strides = [1, 1]} : vector<16x512xf32> to vector<16x128xf32>
    %409 = arith.negf %408 : vector<16x128xf32>
    %410 = math.exp %409 : vector<16x128xf32>
    %cst_93 = arith.constant 1.000000e+00 : f32
    %411 = vector.broadcast %cst_93 : f32 to vector<16x128xf32>
    %412 = arith.addf %411, %410 : vector<16x128xf32>
    %413 = arith.divf %411, %412 : vector<16x128xf32>
    %414 = vector.extract_strided_slice %382 {offsets = [0, 128], sizes = [16, 128], strides = [1, 1]} : vector<16x512xf32> to vector<16x128xf32>
    %415 = arith.negf %414 : vector<16x128xf32>
    %416 = math.exp %415 : vector<16x128xf32>
    %cst_94 = arith.constant 1.000000e+00 : f32
    %417 = vector.broadcast %cst_94 : f32 to vector<16x128xf32>
    %418 = arith.addf %417, %416 : vector<16x128xf32>
    %419 = arith.divf %417, %418 : vector<16x128xf32>
    %420 = vector.extract_strided_slice %382 {offsets = [0, 256], sizes = [16, 128], strides = [1, 1]} : vector<16x512xf32> to vector<16x128xf32>
    %421 = math.tanh %420 : vector<16x128xf32>
    %422 = vector.extract_strided_slice %382 {offsets = [0, 384], sizes = [16, 128], strides = [1, 1]} : vector<16x512xf32> to vector<16x128xf32>
    %423 = arith.negf %422 : vector<16x128xf32>
    %424 = math.exp %423 : vector<16x128xf32>
    %cst_95 = arith.constant 1.000000e+00 : f32
    %425 = vector.broadcast %cst_95 : f32 to vector<16x128xf32>
    %426 = arith.addf %425, %424 : vector<16x128xf32>
    %427 = arith.divf %425, %426 : vector<16x128xf32>
    %428 = arith.mulf %419, %359 : vector<16x128xf32>
    %429 = arith.mulf %413, %421 : vector<16x128xf32>
    %430 = arith.addf %428, %429 : vector<16x128xf32>
    %431 = math.tanh %430 : vector<16x128xf32>
    %432 = arith.mulf %427, %431 : vector<16x128xf32>
    %433 = arith.index_cast %367 : i32 to index
    %c0_96 = arith.constant 0 : index
    %434 = vector.load %arg9[%433, %c0_96] : memref<128x256xf32, #tpu.memory_space<vmem>>, vector<16x128xf32>
    tpu.vector_store %arg9[%433, %c0_96], %407 {strides = array<i32>} : memref<128x256xf32, #tpu.memory_space<vmem>>, vector<16x128xf32>,
    %435 = arith.index_cast %370 : i32 to index
    %c128_97 = arith.constant 128 : index
    %436 = vector.load %arg9[%435, %c128_97] : memref<128x256xf32, #tpu.memory_space<vmem>>, vector<16x128xf32>
    tpu.vector_store %arg9[%435, %c128_97], %432 {strides = array<i32>} : memref<128x256xf32, #tpu.memory_space<vmem>>, vector<16x128xf32>,
    %c6_i32 = arith.constant 6 : i32
    %c16_i32_98 = arith.constant 16 : i32
    %437 = arith.muli %c6_i32, %c16_i32_98 : i32
    %438 = tpu.assume_multiple %437, 16 : i32
    %c7_i32_99 = arith.constant 7 : i32
    %439 = arith.subi %c7_i32_99, %c6_i32 : i32
    %c16_i32_100 = arith.constant 16 : i32
    %440 = arith.muli %439, %c16_i32_100 : i32
    %441 = tpu.assume_multiple %440, 16 : i32
    %442 = arith.index_cast %438 : i32 to index
    %c0_101 = arith.constant 0 : index
    %443 = vector.load %arg8[%442, %c0_101] : memref<128x1024xbf16, #tpu.memory_space<vmem>>, vector<16x512xbf16>
    %444 = arith.extf %443 : vector<16x512xbf16> to vector<16x512xf32>
    %445 = arith.truncf %407 : vector<16x128xf32> to vector<16x128xbf16>
    %cst_102 = arith.constant dense<0.000000e+00> : vector<16x512xf32>
    %446 = tpu.matmul %445, %8, %cst_102 {dimension_numbers = #tpu.dot_dimension_numbers<[1], [0], [0], [1], [0, 0, 1, 1], [], []>} : vector<16x128xbf16>, vector<128x512xbf16>, vector<16x512xf32> -> vector<16x512xf32>
    %447 = arith.addf %444, %446 : vector<16x512xf32>
    %448 = arith.index_cast %441 : i32 to index
    %c512_103 = arith.constant 512 : index
    %449 = vector.load %arg8[%448, %c512_103] : memref<128x1024xbf16, #tpu.memory_space<vmem>>, vector<16x512xbf16>
    %450 = arith.extf %449 : vector<16x512xbf16> to vector<16x512xf32>
    %451 = arith.truncf %432 : vector<16x128xf32> to vector<16x128xbf16>
    %cst_104 = arith.constant dense<0.000000e+00> : vector<16x512xf32>
    %452 = tpu.matmul %451, %9, %cst_104 {dimension_numbers = #tpu.dot_dimension_numbers<[1], [0], [0], [1], [0, 0, 1, 1], [], []>} : vector<16x128xbf16>, vector<128x512xbf16>, vector<16x512xf32> -> vector<16x512xf32>
    %453 = arith.addf %450, %452 : vector<16x512xf32>
    %454 = vector.extract_strided_slice %447 {offsets = [0, 0], sizes = [16, 128], strides = [1, 1]} : vector<16x512xf32> to vector<16x128xf32>
    %455 = arith.negf %454 : vector<16x128xf32>
    %456 = math.exp %455 : vector<16x128xf32>
    %cst_105 = arith.constant 1.000000e+00 : f32
    %457 = vector.broadcast %cst_105 : f32 to vector<16x128xf32>
    %458 = arith.addf %457, %456 : vector<16x128xf32>
    %459 = arith.divf %457, %458 : vector<16x128xf32>
    %460 = vector.extract_strided_slice %447 {offsets = [0, 128], sizes = [16, 128], strides = [1, 1]} : vector<16x512xf32> to vector<16x128xf32>
    %461 = arith.negf %460 : vector<16x128xf32>
    %462 = math.exp %461 : vector<16x128xf32>
    %cst_106 = arith.constant 1.000000e+00 : f32
    %463 = vector.broadcast %cst_106 : f32 to vector<16x128xf32>
    %464 = arith.addf %463, %462 : vector<16x128xf32>
    %465 = arith.divf %463, %464 : vector<16x128xf32>
    %466 = vector.extract_strided_slice %447 {offsets = [0, 256], sizes = [16, 128], strides = [1, 1]} : vector<16x512xf32> to vector<16x128xf32>
    %467 = math.tanh %466 : vector<16x128xf32>
    %468 = vector.extract_strided_slice %447 {offsets = [0, 384], sizes = [16, 128], strides = [1, 1]} : vector<16x512xf32> to vector<16x128xf32>
    %469 = arith.negf %468 : vector<16x128xf32>
    %470 = math.exp %469 : vector<16x128xf32>
    %cst_107 = arith.constant 1.000000e+00 : f32
    %471 = vector.broadcast %cst_107 : f32 to vector<16x128xf32>
    %472 = arith.addf %471, %470 : vector<16x128xf32>
    %473 = arith.divf %471, %472 : vector<16x128xf32>
    %474 = arith.mulf %465, %405 : vector<16x128xf32>
    %475 = arith.mulf %459, %467 : vector<16x128xf32>
    %476 = arith.addf %474, %475 : vector<16x128xf32>
    %477 = math.tanh %476 : vector<16x128xf32>
    %478 = arith.mulf %473, %477 : vector<16x128xf32>
    %479 = vector.extract_strided_slice %453 {offsets = [0, 0], sizes = [16, 128], strides = [1, 1]} : vector<16x512xf32> to vector<16x128xf32>
    %480 = arith.negf %479 : vector<16x128xf32>
    %481 = math.exp %480 : vector<16x128xf32>
    %cst_108 = arith.constant 1.000000e+00 : f32
    %482 = vector.broadcast %cst_108 : f32 to vector<16x128xf32>
    %483 = arith.addf %482, %481 : vector<16x128xf32>
    %484 = arith.divf %482, %483 : vector<16x128xf32>
    %485 = vector.extract_strided_slice %453 {offsets = [0, 128], sizes = [16, 128], strides = [1, 1]} : vector<16x512xf32> to vector<16x128xf32>
    %486 = arith.negf %485 : vector<16x128xf32>
    %487 = math.exp %486 : vector<16x128xf32>
    %cst_109 = arith.constant 1.000000e+00 : f32
    %488 = vector.broadcast %cst_109 : f32 to vector<16x128xf32>
    %489 = arith.addf %488, %487 : vector<16x128xf32>
    %490 = arith.divf %488, %489 : vector<16x128xf32>
    %491 = vector.extract_strided_slice %453 {offsets = [0, 256], sizes = [16, 128], strides = [1, 1]} : vector<16x512xf32> to vector<16x128xf32>
    %492 = math.tanh %491 : vector<16x128xf32>
    %493 = vector.extract_strided_slice %453 {offsets = [0, 384], sizes = [16, 128], strides = [1, 1]} : vector<16x512xf32> to vector<16x128xf32>
    %494 = arith.negf %493 : vector<16x128xf32>
    %495 = math.exp %494 : vector<16x128xf32>
    %cst_110 = arith.constant 1.000000e+00 : f32
    %496 = vector.broadcast %cst_110 : f32 to vector<16x128xf32>
    %497 = arith.addf %496, %495 : vector<16x128xf32>
    %498 = arith.divf %496, %497 : vector<16x128xf32>
    %499 = arith.mulf %490, %430 : vector<16x128xf32>
    %500 = arith.mulf %484, %492 : vector<16x128xf32>
    %501 = arith.addf %499, %500 : vector<16x128xf32>
    %502 = math.tanh %501 : vector<16x128xf32>
    %503 = arith.mulf %498, %502 : vector<16x128xf32>
    %504 = arith.index_cast %438 : i32 to index
    %c0_111 = arith.constant 0 : index
    %505 = vector.load %arg9[%504, %c0_111] : memref<128x256xf32, #tpu.memory_space<vmem>>, vector<16x128xf32>
    tpu.vector_store %arg9[%504, %c0_111], %478 {strides = array<i32>} : memref<128x256xf32, #tpu.memory_space<vmem>>, vector<16x128xf32>,
    %506 = arith.index_cast %441 : i32 to index
    %c128_112 = arith.constant 128 : index
    %507 = vector.load %arg9[%506, %c128_112] : memref<128x256xf32, #tpu.memory_space<vmem>>, vector<16x128xf32>
    tpu.vector_store %arg9[%506, %c128_112], %503 {strides = array<i32>} : memref<128x256xf32, #tpu.memory_space<vmem>>, vector<16x128xf32>,
    %c7_i32_113 = arith.constant 7 : i32
    %c16_i32_114 = arith.constant 16 : i32
    %508 = arith.muli %c7_i32_113, %c16_i32_114 : i32
    %509 = tpu.assume_multiple %508, 16 : i32
    %c7_i32_115 = arith.constant 7 : i32
    %510 = arith.subi %c7_i32_115, %c7_i32_113 : i32
    %c16_i32_116 = arith.constant 16 : i32
    %511 = arith.muli %510, %c16_i32_116 : i32
    %512 = tpu.assume_multiple %511, 16 : i32
    %513 = arith.index_cast %509 : i32 to index
    %c0_117 = arith.constant 0 : index
    %514 = vector.load %arg8[%513, %c0_117] : memref<128x1024xbf16, #tpu.memory_space<vmem>>, vector<16x512xbf16>
    %515 = arith.extf %514 : vector<16x512xbf16> to vector<16x512xf32>
    %516 = arith.truncf %478 : vector<16x128xf32> to vector<16x128xbf16>
    %cst_118 = arith.constant dense<0.000000e+00> : vector<16x512xf32>
    %517 = tpu.matmul %516, %8, %cst_118 {dimension_numbers = #tpu.dot_dimension_numbers<[1], [0], [0], [1], [0, 0, 1, 1], [], []>} : vector<16x128xbf16>, vector<128x512xbf16>, vector<16x512xf32> -> vector<16x512xf32>
    %518 = arith.addf %515, %517 : vector<16x512xf32>
    %519 = arith.index_cast %512 : i32 to index
    %c512_119 = arith.constant 512 : index
    %520 = vector.load %arg8[%519, %c512_119] : memref<128x1024xbf16, #tpu.memory_space<vmem>>, vector<16x512xbf16>
    %521 = arith.extf %520 : vector<16x512xbf16> to vector<16x512xf32>
    %522 = arith.truncf %503 : vector<16x128xf32> to vector<16x128xbf16>
    %cst_120 = arith.constant dense<0.000000e+00> : vector<16x512xf32>
    %523 = tpu.matmul %522, %9, %cst_120 {dimension_numbers = #tpu.dot_dimension_numbers<[1], [0], [0], [1], [0, 0, 1, 1], [], []>} : vector<16x128xbf16>, vector<128x512xbf16>, vector<16x512xf32> -> vector<16x512xf32>
    %524 = arith.addf %521, %523 : vector<16x512xf32>
    %525 = vector.extract_strided_slice %518 {offsets = [0, 0], sizes = [16, 128], strides = [1, 1]} : vector<16x512xf32> to vector<16x128xf32>
    %526 = arith.negf %525 : vector<16x128xf32>
    %527 = math.exp %526 : vector<16x128xf32>
    %cst_121 = arith.constant 1.000000e+00 : f32
    %528 = vector.broadcast %cst_121 : f32 to vector<16x128xf32>
    %529 = arith.addf %528, %527 : vector<16x128xf32>
    %530 = arith.divf %528, %529 : vector<16x128xf32>
    %531 = vector.extract_strided_slice %518 {offsets = [0, 128], sizes = [16, 128], strides = [1, 1]} : vector<16x512xf32> to vector<16x128xf32>
    %532 = arith.negf %531 : vector<16x128xf32>
    %533 = math.exp %532 : vector<16x128xf32>
    %cst_122 = arith.constant 1.000000e+00 : f32
    %534 = vector.broadcast %cst_122 : f32 to vector<16x128xf32>
    %535 = arith.addf %534, %533 : vector<16x128xf32>
    %536 = arith.divf %534, %535 : vector<16x128xf32>
    %537 = vector.extract_strided_slice %518 {offsets = [0, 256], sizes = [16, 128], strides = [1, 1]} : vector<16x512xf32> to vector<16x128xf32>
    %538 = math.tanh %537 : vector<16x128xf32>
    %539 = vector.extract_strided_slice %518 {offsets = [0, 384], sizes = [16, 128], strides = [1, 1]} : vector<16x512xf32> to vector<16x128xf32>
    %540 = arith.negf %539 : vector<16x128xf32>
    %541 = math.exp %540 : vector<16x128xf32>
    %cst_123 = arith.constant 1.000000e+00 : f32
    %542 = vector.broadcast %cst_123 : f32 to vector<16x128xf32>
    %543 = arith.addf %542, %541 : vector<16x128xf32>
    %544 = arith.divf %542, %543 : vector<16x128xf32>
    %545 = arith.mulf %536, %476 : vector<16x128xf32>
    %546 = arith.mulf %530, %538 : vector<16x128xf32>
    %547 = arith.addf %545, %546 : vector<16x128xf32>
    %548 = math.tanh %547 : vector<16x128xf32>
    %549 = arith.mulf %544, %548 : vector<16x128xf32>
    %550 = vector.extract_strided_slice %524 {offsets = [0, 0], sizes = [16, 128], strides = [1, 1]} : vector<16x512xf32> to vector<16x128xf32>
    %551 = arith.negf %550 : vector<16x128xf32>
    %552 = math.exp %551 : vector<16x128xf32>
    %cst_124 = arith.constant 1.000000e+00 : f32
    %553 = vector.broadcast %cst_124 : f32 to vector<16x128xf32>
    %554 = arith.addf %553, %552 : vector<16x128xf32>
    %555 = arith.divf %553, %554 : vector<16x128xf32>
    %556 = vector.extract_strided_slice %524 {offsets = [0, 128], sizes = [16, 128], strides = [1, 1]} : vector<16x512xf32> to vector<16x128xf32>
    %557 = arith.negf %556 : vector<16x128xf32>
    %558 = math.exp %557 : vector<16x128xf32>
    %cst_125 = arith.constant 1.000000e+00 : f32
    %559 = vector.broadcast %cst_125 : f32 to vector<16x128xf32>
    %560 = arith.addf %559, %558 : vector<16x128xf32>
    %561 = arith.divf %559, %560 : vector<16x128xf32>
    %562 = vector.extract_strided_slice %524 {offsets = [0, 256], sizes = [16, 128], strides = [1, 1]} : vector<16x512xf32> to vector<16x128xf32>
    %563 = math.tanh %562 : vector<16x128xf32>
    %564 = vector.extract_strided_slice %524 {offsets = [0, 384], sizes = [16, 128], strides = [1, 1]} : vector<16x512xf32> to vector<16x128xf32>
    %565 = arith.negf %564 : vector<16x128xf32>
    %566 = math.exp %565 : vector<16x128xf32>
    %cst_126 = arith.constant 1.000000e+00 : f32
    %567 = vector.broadcast %cst_126 : f32 to vector<16x128xf32>
    %568 = arith.addf %567, %566 : vector<16x128xf32>
    %569 = arith.divf %567, %568 : vector<16x128xf32>
    %570 = arith.mulf %561, %501 : vector<16x128xf32>
    %571 = arith.mulf %555, %563 : vector<16x128xf32>
    %572 = arith.addf %570, %571 : vector<16x128xf32>
    %573 = math.tanh %572 : vector<16x128xf32>
    %574 = arith.mulf %569, %573 : vector<16x128xf32>
    %575 = arith.index_cast %509 : i32 to index
    %c0_127 = arith.constant 0 : index
    %576 = vector.load %arg9[%575, %c0_127] : memref<128x256xf32, #tpu.memory_space<vmem>>, vector<16x128xf32>
    tpu.vector_store %arg9[%575, %c0_127], %549 {strides = array<i32>} : memref<128x256xf32, #tpu.memory_space<vmem>>, vector<16x128xf32>,
    %577 = arith.index_cast %512 : i32 to index
    %c128_128 = arith.constant 128 : index
    %578 = vector.load %arg9[%577, %c128_128] : memref<128x256xf32, #tpu.memory_space<vmem>>, vector<16x128xf32>
    tpu.vector_store %arg9[%577, %c128_128], %574 {strides = array<i32>} : memref<128x256xf32, #tpu.memory_space<vmem>>, vector<16x128xf32>,
    %c8_i32 = arith.constant 8 : i32
    %c0_129 = arith.constant 0 : index
    %c0_130 = arith.constant 0 : index
    %579 = vector.load %arg9[%c0_129, %c0_130] : memref<128x256xf32, #tpu.memory_space<vmem>>, vector<128x256xf32>
    %c0_131 = arith.constant 0 : index
    %c0_132 = arith.constant 0 : index
    %580 = vector.load %arg5[%c0_131, %c0_132] : memref<1x256xf32, #tpu.memory_space<vmem>>, vector<1x256xf32>
    %581 = vector.broadcast %580 : vector<1x256xf32> to vector<128x256xf32>
    %582 = arith.mulf %579, %581 : vector<128x256xf32>
    %cst_133 = arith.constant dense<0.000000e+00> : vector<128xf32>
    %583 = vector.multi_reduction <add>, %582, %cst_133 [1] : vector<128x256xf32> to vector<128xf32>
    %584 = vector.shape_cast %583 : vector<128xf32> to vector<128x1xf32>
    %c0_134 = arith.constant 0 : index
    %c0_135 = arith.constant 0 : index
    %585 = vector.load %arg6[%c0_134, %c0_135] : memref<1x1xf32, #tpu.memory_space<vmem>>, vector<1x1xf32>
    %586 = vector.broadcast %585 : vector<1x1xf32> to vector<128x1xf32>
    %587 = arith.addf %584, %586 : vector<128x1xf32>
    %588 = arith.negf %587 : vector<128x1xf32>
    %589 = math.exp %588 : vector<128x1xf32>
    %cst_136 = arith.constant 1.000000e+00 : f32
    %590 = vector.broadcast %cst_136 : f32 to vector<128x1xf32>
    %591 = arith.addf %590, %589 : vector<128x1xf32>
    %592 = arith.divf %590, %591 : vector<128x1xf32>
    %c0_137 = arith.constant 0 : index
    %c0_138 = arith.constant 0 : index
    %593 = vector.load %arg7[%c0_137, %c0_138] : memref<128x1xf32, #tpu.memory_space<vmem>>, vector<128x1xf32>
    tpu.vector_store %arg7[%c0_137, %c0_138], %592 {strides = array<i32>} : memref<128x1xf32, #tpu.memory_space<vmem>>, vector<128x1xf32>,
    return
  }
}

</mosaic_0001>

<bundles_post_ra>
// kernel: dsn_forward.1
= control target key start
LH: loop header
LB: loop body
LE: loop exit
PB: predicated region body
PF: predicated region fallthrough
CT: control target
= control target key end

     0   :  { %v8158_v3 = vmov 0   ;;  %vm4284_vm0 = vcmask 7168   ;;  %s8148_s1 = inlined_call_operand.vmem [shape: bf16[128,1024], index: 1, kind: input, shape index: {}]   ;;  %s8149_s0 = inlined_call_operand.vmem [shape: bf16[128,128], index: 0, kind: input, shape index: {}]   ;;  %s8150_s3 = inlined_call_operand.vmem [shape: bf16[128,512], index: 3, kind: input, shape index: {}]   ;;  %s8151_s4 = inlined_call_operand.vmem [shape: bf16[128,512], index: 4, kind: input, shape index: {}]   ;;  %s8152_s2 = inlined_call_operand.vmem [shape: f32[1,1024], index: 2, kind: input, shape index: {}]   ;;  %s8153_s6 = inlined_call_operand.<no memory space> [shape: f32[1,1], index: 6, kind: input, shape index: {}]   ;;  %s8154_s5 = inlined_call_operand.vmem [shape: f32[1,256], index: 5, kind: input, shape index: {}]   ;;  %s8155_s7 = inlined_call_operand.vmem [shape: f32[128,1], index: 7, kind: output, shape index: {}]  }
   0x1   :  { %v45_v0 = vld [vmem:[%s8148_s1] sm:$0xff]  ;;  %v46_v2 = vld [vmem:[%s8148_s1 + $0x8] sm:$0xff]  ;;  %551 = vmatprep.mubr.bf16.mxu0 %v8158_v3  ;;  %664 = vmatprep.mubr.bf16.mxu1 %v8158_v3  ;;  %v47_v62 = vld [vmem:[%s8148_s1 + $0x10] sm:$0xff] }
   0x2   :  { %v49_v1 = vld [vmem:[%s8148_s1 + $0x20] sm:$0xff]  ;;  %v50_v5 = vld [vmem:[%s8148_s1 + $0x28] sm:$0xff] }
   0x3   :  { %v4328_v4 = vcombine.high %v45_v0, %v49_v1  ;;  %v4327_v6 = vcombine.low %v45_v0, %v49_v1  ;;  %v53_v7 = vld [vmem:[%s8148_s1 + $0x40] sm:$0xff]  ;;  %v4330_v9 = vcombine.high %v46_v2, %v50_v5  ;;  %v4329_v10 = vcombine.low %v46_v2, %v50_v5  ;;  %v54_v12 = vld [vmem:[%s8148_s1 + $0x48] sm:$0xff]  ;;  %v51_v0 = vld [vmem:[%s8148_s1 + $0x30] sm:$0xff] }
   0x4   :  { %v57_v8 = vld [vmem:[%s8148_s1 + $0x60] sm:$0xff]  ;;  %v58_v13 = vld [vmem:[%s8148_s1 + $0x68] sm:$0xff]  ;;  %v48_v1 = vld [vmem:[%s8148_s1 + $0x18] sm:$0xff] }
   0x5   :  { %v4336_v11 = vcombine.high %v53_v7, %v57_v8  ;;  %v61_v14 = vld [vmem:[%s8148_s1 + $0x80] sm:$0xff]  ;;  %519 = vmatprep.subr.bf16.mxu0 %v4328_v4  ;;  %v4338_v15 = vcombine.high %v54_v12, %v58_v13  ;;  %v62_v17 = vld [vmem:[%s8148_s1 + $0x88] sm:$0xff]  ;;  %632 = vmatprep.subr.bf16.mxu1 %v4330_v9  ;;  %v4335_v19 = vcombine.low %v53_v7, %v57_v8  ;;  %v52_v2 = vld [vmem:[%s8148_s1 + $0x38] sm:$0xff] }
   0x6   :  { %v65_v16 = vld [vmem:[%s8148_s1 + $0xa0] sm:$0xff]  ;;  %v66_v18 = vld [vmem:[%s8148_s1 + $0xa8] sm:$0xff]  ;;  %520 = vmatpush1.bf16.msra.mxu0 %v4327_v6  ;;  %633 = vmatpush1.bf16.msra.mxu1 %v4329_v10  ;;  %v4337_v20 = vcombine.low %v54_v12, %v58_v13  ;;  %v4332_v6 = vcombine.high %v47_v62, %v51_v0  ;;  %v55_v8 = vld [vmem:[%s8148_s1 + $0x50] sm:$0xff]  ;;  %v4334_v9 = vcombine.high %v48_v1, %v52_v2 }
   0x7   :  { %521 = vmatprep.subr.bf16.mxu0 %v4336_v11  ;;  %v4344_v21 = vcombine.high %v61_v14, %v65_v16  ;;  %634 = vmatprep.subr.bf16.mxu1 %v4338_v15  ;;  %v4346_v22 = vcombine.high %v62_v17, %v66_v18  ;;  %v69_v23 = vld [vmem:[%s8148_s1 + $0xc0] sm:$0xff]  ;;  %v70_v25 = vld [vmem:[%s8148_s1 + $0xc8] sm:$0xff]  ;;  %v4343_v27 = vcombine.low %v61_v14, %v65_v16  ;;  %v59_v10 = vld [vmem:[%s8148_s1 + $0x70] sm:$0xff] }
   0x8   :  { %v73_v24 = vld [vmem:[%s8148_s1 + $0xe0] sm:$0xff]  ;;  %v74_v26 = vld [vmem:[%s8148_s1 + $0xe8] sm:$0xff]  ;;  %v4345_v28 = vcombine.low %v62_v17, %v66_v18  ;;  %v56_v11 = vld [vmem:[%s8148_s1 + $0x58] sm:$0xff]  ;;  %v4331_v12 = vcombine.low %v47_v62, %v51_v0  ;;  %v4340_v14 = vcombine.high %v55_v8, %v59_v10  ;;  %v4333_v15 = vcombine.low %v48_v1, %v52_v2 }
   0x9   :  { %v4352_v29 = vcombine.high %v69_v23, %v73_v24  ;;  %v4354_v30 = vcombine.high %v70_v25, %v74_v26  ;;  %v77_v31 = vld [vmem:[%s8148_s1 + $0x100] sm:$0xff]  ;;  %v78_v33 = vld [vmem:[%s8148_s1 + $0x108] sm:$0xff]  ;;  %v4351_v35 = vcombine.low %v69_v23, %v73_v24  ;;  %v4353_v36 = vcombine.low %v70_v25, %v74_v26  ;;  %v60_v13 = vld [vmem:[%s8148_s1 + $0x78] sm:$0xff] }
   0xa   :  { %522 = vmatpush1.bf16.msra.mxu0 %v4335_v19  ;;  %635 = vmatpush1.bf16.msra.mxu1 %v4337_v20  ;;  %v81_v32 = vld [vmem:[%s8148_s1 + $0x120] sm:$0xff]  ;;  %v82_v34 = vld [vmem:[%s8148_s1 + $0x128] sm:$0xff]  ;;  %v63_v16 = vld [vmem:[%s8148_s1 + $0x90] sm:$0xff]  ;;  %v4342_v18 = vcombine.high %v56_v11, %v60_v13  ;;  %v4339_v19 = vcombine.low %v55_v8, %v59_v10  ;;  %v4341_v24 = vcombine.low %v56_v11, %v60_v13 }
   0xb   :  { %523 = vmatprep.subr.bf16.mxu0 %v4344_v21  ;;  %636 = vmatprep.subr.bf16.mxu1 %v4346_v22  ;;  %v4360_v37 = vcombine.high %v77_v31, %v81_v32  ;;  %v4362_v38 = vcombine.high %v78_v33, %v82_v34  ;;  %v85_v39 = vld [vmem:[%s8148_s1 + $0x140] sm:$0xff]  ;;  %v86_v41 = vld [vmem:[%s8148_s1 + $0x148] sm:$0xff]  ;;  %v4359_v43 = vcombine.low %v77_v31, %v81_v32  ;;  %v67_v17 = vld [vmem:[%s8148_s1 + $0xb0] sm:$0xff] }
   0xc   :  { %v89_v40 = vld [vmem:[%s8148_s1 + $0x160] sm:$0xff]  ;;  %v90_v42 = vld [vmem:[%s8148_s1 + $0x168] sm:$0xff]  ;;  %v4361_v44 = vcombine.low %v78_v33, %v82_v34  ;;  %v64_v20 = vld [vmem:[%s8148_s1 + $0x98] sm:$0xff]  ;;  %v4348_v22 = vcombine.high %v63_v16, %v67_v17 }
   0xd   :  { %v4368_v45 = vcombine.high %v85_v39, %v89_v40  ;;  %v4370_v46 = vcombine.high %v86_v41, %v90_v42  ;;  %v93_v47 = vld [vmem:[%s8148_s1 + $0x180] sm:$0xff]  ;;  %v94_v49 = vld [vmem:[%s8148_s1 + $0x188] sm:$0xff]  ;;  %v4367_v51 = vcombine.low %v85_v39, %v89_v40  ;;  %v4369_v52 = vcombine.low %v86_v41, %v90_v42  ;;  %v68_v21 = vld [vmem:[%s8148_s1 + $0xb8] sm:$0xff] }
   0xe   :  { %524 = vmatpush1.bf16.msra.mxu0 %v4343_v27  ;;  %637 = vmatpush1.bf16.msra.mxu1 %v4345_v28  ;;  %v97_v48 = vld [vmem:[%s8148_s1 + $0x1a0] sm:$0xff]  ;;  %v98_v50 = vld [vmem:[%s8148_s1 + $0x1a8] sm:$0xff]  ;;  %v71_v25 = vld [vmem:[%s8148_s1 + $0xd0] sm:$0xff]  ;;  %v4350_v27 = vcombine.high %v64_v20, %v68_v21  ;;  %v4349_v32 = vcombine.low %v64_v20, %v68_v21 }
   0xf   :  { %525 = vmatprep.subr.bf16.mxu0 %v4352_v29  ;;  %638 = vmatprep.subr.bf16.mxu1 %v4354_v30  ;;  %v4376_v53 = vcombine.high %v93_v47, %v97_v48  ;;  %v4378_v54 = vcombine.high %v94_v49, %v98_v50  ;;  %v101_v55 = vld [vmem:[%s8148_s1 + $0x1c0] sm:$0xff]  ;;  %v102_v57 = vld [vmem:[%s8148_s1 + $0x1c8] sm:$0xff]  ;;  %v4375_v59 = vcombine.low %v93_v47, %v97_v48  ;;  %v75_v26 = vld [vmem:[%s8148_s1 + $0xf0] sm:$0xff] }
  0x10   :  { %v105_v56 = vld [vmem:[%s8148_s1 + $0x1e0] sm:$0xff]  ;;  %v106_v58 = vld [vmem:[%s8148_s1 + $0x1e8] sm:$0xff]  ;;  %v4377_v60 = vcombine.low %v94_v49, %v98_v50  ;;  %v72_v28 = vld [vmem:[%s8148_s1 + $0xd8] sm:$0xff]  ;;  %v4347_v30 = vcombine.low %v63_v16, %v67_v17  ;;  %v4356_v31 = vcombine.high %v71_v25, %v75_v26 }
  0x11   :  { %v4384_v61 = vcombine.high %v101_v55, %v105_v56  ;;  %v4386_v63 = vcombine.high %v102_v57, %v106_v58  ;;  %v4383_v4 = vcombine.low %v101_v55, %v105_v56  ;;  %v4385_v5 = vcombine.low %v102_v57, %v106_v58  ;;  %v5596_v7 = vld [vmem:[%s8149_s0] sm:$0xff]   ;;  %v5629_v23 = vld [vmem:[%s8149_s0 + $0x8] sm:$0xff]   ;;  %v76_v29 = vld [vmem:[%s8148_s1 + $0xf8] sm:$0xff] }
  0x12   :  { %526 = vmatpush1.bf16.msra.mxu0 %v4351_v35  ;;  %639 = vmatpush1.bf16.msra.mxu1 %v4353_v36  ;;  %v79_v33 = vld [vmem:[%s8148_s1 + $0x110] sm:$0xff]  ;;  %v4358_v35 = vcombine.high %v72_v28, %v76_v29  ;;  %v80_v36 = vld [vmem:[%s8148_s1 + $0x118] sm:$0xff]  ;;  %v4357_v41 = vcombine.low %v72_v28, %v76_v29  ;;  %v5737_v11 = vld [vmem:[%s8149_s0 + $0x28] sm:$0xff]  }
  0x13   :  { %527 = vmatprep.subr.bf16.mxu0 %v4360_v37  ;;  %640 = vmatprep.subr.bf16.mxu1 %v4362_v38  ;;  %v83_v34 = vld [vmem:[%s8148_s1 + $0x130] sm:$0xff]  ;;  %v84_v37 = vld [vmem:[%s8148_s1 + $0x138] sm:$0xff]  ;;  %v4355_v38 = vcombine.low %v71_v25, %v75_v26 }
  0x14   :  { %v5662_v39 = vld [vmem:[%s8149_s0 + $0x10] sm:$0xff]   ;;  %v4364_v40 = vcombine.high %v79_v33, %v83_v34  ;;  %v4363_v47 = vcombine.low %v79_v33, %v83_v34  ;;  %v4365_v49 = vcombine.low %v80_v36, %v84_v37  ;;  %v5695_v56 = vld [vmem:[%s8149_s0 + $0x18] sm:$0xff]  }
  0x15   :  { %v87_v42 = vld [vmem:[%s8148_s1 + $0x150] sm:$0xff]  ;;  %v104_v62 = vld [vmem:[%s8148_s1 + $0x1d8] sm:$0xff] }
  0x16   :  { %528 = vmatpush1.bf16.msra.mxu0 %v4359_v43  ;;  %641 = vmatpush1.bf16.msra.mxu1 %v4361_v44  ;;  %v91_v43 = vld [vmem:[%s8148_s1 + $0x170] sm:$0xff]  ;;  %v4366_v44 = vcombine.high %v80_v36, %v84_v37  ;;  %v5726_v10 = vld [vmem:[%s8150_s3 + $0xc] ss:$16 sps:$4 sm:$0xff]   ;;  %v5774_v16 = vld [vmem:[%s8150_s3 + $0x8] ss:$16 sps:$4 sm:$0xff]  }
  0x17   :  { %529 = vmatprep.subr.bf16.mxu0 %v4368_v45  ;;  %642 = vmatprep.subr.bf16.mxu1 %v4370_v46  ;;  %v88_v45 = vld [vmem:[%s8148_s1 + $0x158] sm:$0xff]  ;;  %v4372_v48 = vcombine.high %v87_v42, %v91_v43  ;;  %v95_v50 = vld [vmem:[%s8148_s1 + $0x190] sm:$0xff]  ;;  %v4371_v55 = vcombine.low %v87_v42, %v91_v43 }
  0x18   :  { %v92_v46 = vld [vmem:[%s8148_s1 + $0x178] sm:$0xff]  ;;  %v5716_v8 = vld [vmem:[%s8150_s3 + $0x4] ss:$16 sps:$4 sm:$0xff]   ;;  %v5814_v21 = vld [vmem:[%s8150_s3 + $0x40] ss:$16 sps:$4 sm:$0xff]  }
  0x19   :  { %v4373_v58 = vcombine.low %v88_v45, %v92_v46  ;;  %v5755_v13 = vld [vmem:[%s8149_s0 + $0x38] sm:$0xff]   ;;  %v5841_v26 = vld [vmem:[%s8150_s3 + $0x60] ss:$16 sps:$4 sm:$0xff]   ;;  %v5899_v34 = vld [vmem:[%s8150_s3 + $0xc4] ss:$16 sps:$4 sm:$0xff]  }
  0x1a   :  { %530 = vmatpush1.bf16.msra.mxu0 %v4367_v51  ;;  %643 = vmatpush1.bf16.msra.mxu1 %v4369_v52  ;;  %v99_v51 = vld [vmem:[%s8148_s1 + $0x1b0] sm:$0xff]  ;;  %v4374_v52 = vcombine.high %v88_v45, %v92_v46  ;;  %v5780_v17 = vld [vmem:[%s8150_s3 + $0x2c] ss:$16 sps:$4 sm:$0xff]   ;;  %v5952_v42 = vld [vmem:[%s8150_s3 + $0xe8] ss:$16 sps:$4 sm:$0xff]  }
  0x1b   :  { %531 = vmatprep.subr.bf16.mxu0 %v4376_v53  ;;  %644 = vmatprep.subr.bf16.mxu1 %v4378_v54  ;;  %v96_v53 = vld [vmem:[%s8148_s1 + $0x198] sm:$0xff]  ;;  %v4380_v57 = vcombine.high %v95_v50, %v99_v51  ;;  %v4379_v0 = vcombine.low %v95_v50, %v99_v51  ;;  %v5865_v29 = vld [vmem:[%s8150_s3 + $0x80] ss:$16 sps:$4 sm:$0xff]   ;;  %v5957_v43 = vld [vmem:[%s8151_s4 + $0x4] ss:$16 sps:$4 sm:$0xff]  }
  0x1c   :  { %v100_v54 = vld [vmem:[%s8148_s1 + $0x1b8] sm:$0xff]  ;;  %v5893_v33 = vld [vmem:[%s8150_s3 + $0xa0] ss:$16 sps:$4 sm:$0xff]   ;;  %v4637_v51 = vld [vmem:[%s8151_s4 + $0x44] ss:$16 sps:$4 sm:$0xff]  }
  0x1d   :  { %v4381_v2 = vcombine.low %v96_v53, %v100_v54  ;;  %v5807_v20 = vld [vmem:[%s8150_s3 + $0x4c] ss:$16 sps:$4 sm:$0xff]   ;;  %v5917_v37 = vld [vmem:[%s8150_s3 + $0xc0] ss:$16 sps:$4 sm:$0xff]   ;;  %v4630_v46 = vld [vmem:[%s8151_s4 + $0x8] ss:$16 sps:$4 sm:$0xff]  }
  0x1e   :  { %532 = vmatpush1.bf16.msra.mxu0 %v4375_v59  ;;  %645 = vmatpush1.bf16.msra.mxu1 %v4377_v60  ;;  %v103_v59 = vld [vmem:[%s8148_s1 + $0x1d0] sm:$0xff]  ;;  %v5832_v25 = vld [vmem:[%s8150_s3 + $0x6c] ss:$16 sps:$4 sm:$0xff]   ;;  %v4636_v50 = vld [vmem:[%s8151_s4 + $0x28] ss:$16 sps:$4 sm:$0xff]  }
  0x1f   :  { %533 = vmatprep.subr.bf16.mxu0 %v4384_v61  ;;  %646 = vmatprep.subr.bf16.mxu1 %v4386_v63  ;;  %v107_v60 = vld [vmem:[%s8148_s1 + $0x1f0] sm:$0xff]  ;;  %v4382_v61 = vcombine.high %v96_v53, %v100_v54  ;;  %v108_v63 = vld [vmem:[%s8148_s1 + $0x1f8] sm:$0xff] }
  0x20   :  { %v4388_v1 = vcombine.high %v103_v59, %v107_v60  ;;  %v5859_v28 = vld [vmem:[%s8150_s3 + $0x8c] ss:$16 sps:$4 sm:$0xff]   ;;  %v4629_v45 = vld [vmem:[%s8151_s4] ss:$16 sps:$4 sm:$0xff]   ;;  %v4642_v54 = vld [vmem:[%s8151_s4 + $0x48] ss:$16 sps:$4 sm:$0xff]  }
  0x21   :  { %v5911_v36 = vld [vmem:[%s8150_s3 + $0xcc] ss:$16 sps:$4 sm:$0xff]   ;;  %v4641_v53 = vld [vmem:[%s8151_s4 + $0x40] ss:$16 sps:$4 sm:$0xff]  }
  0x22   :  { %534 = vmatpush1.bf16.msra.mxu0 %v4383_v4  ;;  %647 = vmatpush1.bf16.msra.mxu1 %v4385_v5  ;;  %v4390_v4 = vcombine.high %v104_v62, %v108_v63  ;;  %v4387_v5 = vcombine.low %v103_v59, %v107_v60  ;;  %v4649_v59 = vld [vmem:[%s8151_s4 + $0x84] ss:$16 sps:$4 sm:$0xff]   ;;  %v4651_v60 = vld [vmem:[%s8151_s4 + $0x8c] ss:$16 sps:$4 sm:$0xff]  }
  0x23   :  { %745 = vmatprep.subr.bf16.mxu0 %v4332_v6  ;;  %858 = vmatprep.subr.bf16.mxu1 %v4334_v9  ;;  %v4389_v6 = vcombine.low %v104_v62, %v108_v63  ;;  %v5721_v9 = vld [vmem:[%s8149_s0 + $0x20] sm:$0xff]   ;;  %v4654_v62 = vld [vmem:[%s8151_s4 + $0x88] ss:$16 sps:$4 sm:$0xff]  }
  0x24   :  { %v4655_v63 = vld [vmem:[%s8151_s4 + $0xa4] ss:$16 sps:$4 sm:$0xff]  }
  0x25   :  { %552 = vmatmul.mubr.bf16.vlgmr.msra.gmra.mrb[0].mxu0 %v5596_v7  ;;  %665 = vmatmul.mubr.bf16.vlgmr.msra.gmra.mrb[0].mxu1 %v5596_v7 }
  0x26   :  { %746 = vmatpush1.bf16.msra.mxu0 %v4331_v12  ;;  %561 = vmatprep.mubr.bf16.mxu0 %v8158_v3  ;;  %v5746_v12 = vld [vmem:[%s8149_s0 + $0x30] sm:$0xff]  }
  0x27   :  { %674 = vmatprep.mubr.bf16.mxu1 %v8158_v3  ;;  %747 = vmatprep.subr.bf16.mxu0 %v4340_v14  ;;  %v5764_v14 = vld [vmem:[%s8150_s3] ss:$16 sps:$4 sm:$0xff]  }
  0x28   :  { %859 = vmatpush1.bf16.msra.mxu1 %v4333_v15  ;;  %v5769_v15 = vld [vmem:[%s8150_s3 + $0x24] ss:$16 sps:$4 sm:$0xff]  }
  0x29   :  { %860 = vmatprep.subr.bf16.mxu1 %v4342_v18  ;;  %v5787_v18 = vld [vmem:[%s8150_s3 + $0x20] ss:$16 sps:$4 sm:$0xff]  }
  0x2a   :  { %748 = vmatpush1.bf16.msra.mxu0 %v4339_v19  ;;  %v5794_v19 = vld [vmem:[%s8150_s3 + $0x44] ss:$16 sps:$4 sm:$0xff]  }
  0x2b   :  { %749 = vmatprep.subr.bf16.mxu0 %v4348_v22  ;;  %v5819_v22 = vld [vmem:[%s8150_s3 + $0x64] ss:$16 sps:$4 sm:$0xff]  }
  0x2c   :  { %861 = vmatpush1.bf16.msra.mxu1 %v4341_v24  ;;  %v5825_v24 = vld [vmem:[%s8150_s3 + $0x48] ss:$16 sps:$4 sm:$0xff]  }
  0x2d   :  { %562 = vmatmul.mubr.bf16.gmra.mrb[4].mxu0 %v5629_v23  ;;  %862 = vmatprep.subr.bf16.mxu1 %v4350_v27  ;;  %v5847_v27 = vld [vmem:[%s8150_s3 + $0x84] ss:$16 sps:$4 sm:$0xff]  }
  0x2e   :  { %675 = vmatmul.mubr.bf16.gmra.mrb[4].mxu1 %v5629_v23  ;;  %571 = vmatprep.mubr.bf16.mxu0 %v8158_v3 }
  0x2f   :  { %684 = vmatprep.mubr.bf16.mxu1 %v8158_v3  ;;  %750 = vmatpush1.bf16.msra.mxu0 %v4347_v30  ;;  %v5871_v30 = vld [vmem:[%s8150_s3 + $0xa4] ss:$16 sps:$4 sm:$0xff]  }
  0x30   :  { %751 = vmatprep.subr.bf16.mxu0 %v4356_v31  ;;  %863 = vmatpush1.bf16.msra.mxu1 %v4349_v32  ;;  %v5877_v31 = vld [vmem:[%s8150_s3 + $0x88] ss:$16 sps:$4 sm:$0xff]   ;;  %v5884_v32 = vld [vmem:[%s8150_s3 + $0xac] ss:$16 sps:$4 sm:$0xff]  }
  0x31   :  { %864 = vmatprep.subr.bf16.mxu1 %v4358_v35  ;;  %v5905_v35 = vld [vmem:[%s8150_s3 + $0xa8] ss:$16 sps:$4 sm:$0xff]  }
  0x33   :  { %752 = vmatpush1.bf16.msra.mxu0 %v4355_v38  ;;  %v5924_v38 = vld [vmem:[%s8150_s3 + $0xe4] ss:$16 sps:$4 sm:$0xff]  }
  0x34   :  { %753 = vmatprep.subr.bf16.mxu0 %v4364_v40  ;;  %865 = vmatpush1.bf16.msra.mxu1 %v4357_v41  ;;  %v5936_v40 = vld [vmem:[%s8150_s3 + $0xec] ss:$16 sps:$4 sm:$0xff]   ;;  %v5945_v41 = vld [vmem:[%s8150_s3 + $0xe0] ss:$16 sps:$4 sm:$0xff]  }
  0x35   :  { %572 = vmatmul.mubr.bf16.gmra.mrb[8].mxu0 %v5662_v39  ;;  %866 = vmatprep.subr.bf16.mxu1 %v4366_v44  ;;  %v5963_v44 = vld [vmem:[%s8151_s4 + $0xc] ss:$16 sps:$4 sm:$0xff]  }
  0x36   :  { %685 = vmatmul.mubr.bf16.gmra.mrb[8].mxu1 %v5662_v39  ;;  %581 = vmatprep.mubr.bf16.mxu0 %v8158_v3 }
  0x37   :  { %694 = vmatprep.mubr.bf16.mxu1 %v8158_v3  ;;  %754 = vmatpush1.bf16.msra.mxu0 %v4363_v47  ;;  %v4631_v47 = vld [vmem:[%s8151_s4 + $0x24] ss:$16 sps:$4 sm:$0xff]  }
  0x38   :  { %755 = vmatprep.subr.bf16.mxu0 %v4372_v48  ;;  %867 = vmatpush1.bf16.msra.mxu1 %v4365_v49  ;;  %v4633_v48 = vld [vmem:[%s8151_s4 + $0x2c] ss:$16 sps:$4 sm:$0xff]   ;;  %v4635_v49 = vld [vmem:[%s8151_s4 + $0x20] ss:$16 sps:$4 sm:$0xff]  }
  0x39   :  { %868 = vmatprep.subr.bf16.mxu1 %v4374_v52  ;;  %v4639_v52 = vld [vmem:[%s8151_s4 + $0x4c] ss:$16 sps:$4 sm:$0xff]  }
  0x3b   :  { %756 = vmatpush1.bf16.msra.mxu0 %v4371_v55  ;;  %v4643_v55 = vld [vmem:[%s8151_s4 + $0x64] ss:$16 sps:$4 sm:$0xff]  }
  0x3c   :  { %757 = vmatprep.subr.bf16.mxu0 %v4380_v57  ;;  %869 = vmatpush1.bf16.msra.mxu1 %v4373_v58  ;;  %v4647_v57 = vld [vmem:[%s8151_s4 + $0x60] ss:$16 sps:$4 sm:$0xff]   ;;  %v4648_v58 = vld [vmem:[%s8151_s4 + $0x68] ss:$16 sps:$4 sm:$0xff]  }
  0x3d   :  { %582 = vmatmul.mubr.bf16.gmra.mrb[12].mxu0 %v5695_v56  ;;  %870 = vmatprep.subr.bf16.mxu1 %v4382_v61  ;;  %v4653_v61 = vld [vmem:[%s8151_s4 + $0x80] ss:$16 sps:$4 sm:$0xff]  }
  0x3e   :  { %695 = vmatmul.mubr.bf16.gmra.mrb[12].mxu1 %v5695_v56  ;;  %591 = vmatprep.mubr.bf16.mxu0 %v8158_v3 }
  0x3f   :  { %704 = vmatprep.mubr.bf16.mxu1 %v8158_v3  ;;  %758 = vmatpush1.bf16.msra.mxu0 %v4379_v0  ;;  %v4657_v0 = vld [vmem:[%s8151_s4 + $0xac] ss:$16 sps:$4 sm:$0xff]  }
  0x40   :  { %759 = vmatprep.subr.bf16.mxu0 %v4388_v1  ;;  %871 = vmatpush1.bf16.msra.mxu1 %v4381_v2  ;;  %v4659_v1 = vld [vmem:[%s8151_s4 + $0xa0] ss:$16 sps:$4 sm:$0xff]   ;;  %v4660_v2 = vld [vmem:[%s8151_s4 + $0xa8] ss:$16 sps:$4 sm:$0xff]  }
  0x41   :  { %872 = vmatprep.subr.bf16.mxu1 %v4390_v4  ;;  %v4661_v4 = vld [vmem:[%s8151_s4 + $0xc4] ss:$16 sps:$4 sm:$0xff]  }
  0x43   :  { %760 = vmatpush1.bf16.msra.mxu0 %v4387_v5  ;;  %v4663_v5 = vld [vmem:[%s8151_s4 + $0xcc] ss:$16 sps:$4 sm:$0xff]  }
  0x44   :  { %873 = vmatpush1.bf16.msra.mxu1 %v4389_v6  ;;  %1338 = vmatprep.subr.bf16.mxu0 %v5716_v8  ;;  %v4665_v6 = vld [vmem:[%s8151_s4 + $0xc0] ss:$16 sps:$4 sm:$0xff]  }
  0x45   :  { %592 = vmatmul.mubr.bf16.gmra.mrb[16].mxu0 %v5721_v9  ;;  %1381 = vmatprep.subr.bf16.mxu1 %v5726_v10 }
  0x46   :  { %705 = vmatmul.mubr.bf16.gmra.mrb[16].mxu1 %v5721_v9  ;;  %601 = vmatprep.mubr.bf16.mxu0 %v8158_v3 }
  0x47   :  { %714 = vmatprep.mubr.bf16.mxu1 %v8158_v3 }
  0x4d   :  { %602 = vmatmul.mubr.bf16.gmra.mrb[20].mxu0 %v5737_v11 }
  0x4e   :  { %715 = vmatmul.mubr.bf16.gmra.mrb[20].mxu1 %v5737_v11  ;;  %611 = vmatprep.mubr.bf16.mxu0 %v8158_v3 }
  0x4f   :  { %724 = vmatprep.mubr.bf16.mxu1 %v8158_v3 }
  0x55   :  { %612 = vmatmul.mubr.bf16.gmra.mrb[24].mxu0 %v5746_v12 }
  0x56   :  { %725 = vmatmul.mubr.bf16.gmra.mrb[24].mxu1 %v5746_v12  ;;  %621 = vmatprep.mubr.bf16.mxu0 %v8158_v3 }
  0x57   :  { %734 = vmatprep.mubr.bf16.mxu1 %v8158_v3 }
  0x5d   :  { %622 = vmatmul.mubr.bf16.gmra.mrb[28].mxu0 %v5755_v13 }
  0x5e   :  { %735 = vmatmul.mubr.bf16.gmra.mrb[28].mxu1 %v5755_v13  ;;  %777 = vmatprep.mubr.bf16.mxu0 %v8158_v3 }
  0x5f   :  { %890 = vmatprep.mubr.bf16.mxu1 %v8158_v3 }
  0x65   :  { %778 = vmatmul.mubr.bf16.vlgmr.msra.gmra.mrb[32].mxu0 %v5596_v7 }
  0x66   :  { %891 = vmatmul.mubr.bf16.vlgmr.msra.gmra.mrb[32].mxu1 %v5596_v7  ;;  %1339 = vmatpush1.bf16.msra.mxu0 %v5764_v14  ;;  %v5801_v7 = vld [vmem:[%s8150_s3 + $0x28] ss:$16 sps:$4 sm:$0xff]  }
  0x67   :  { %787 = vmatprep.mubr.bf16.mxu0 %v8158_v3  ;;  %900 = vmatprep.mubr.bf16.mxu1 %v8158_v3 }
  0x68   :  { %1340 = vmatprep.subr.bf16.mxu0 %v5769_v15  ;;  %1382 = vmatpush1.bf16.msra.mxu1 %v5774_v16 }
  0x69   :  { %1383 = vmatprep.subr.bf16.mxu1 %v5780_v17 }
  0x6a   :  { %1341 = vmatpush1.bf16.msra.mxu0 %v5787_v18 }
  0x6b   :  { %1342 = vmatprep.subr.bf16.mxu0 %v5794_v19 }
  0x6c   :  { %1384 = vmatpush1.bf16.msra.mxu1 %v5801_v7 }
  0x6d   :  { %788 = vmatmul.mubr.bf16.gmra.mrb[36].mxu0 %v5629_v23  ;;  %1385 = vmatprep.subr.bf16.mxu1 %v5807_v20 }
  0x6e   :  { %901 = vmatmul.mubr.bf16.gmra.mrb[36].mxu1 %v5629_v23  ;;  %797 = vmatprep.mubr.bf16.mxu0 %v8158_v3  ;;  %v5853_v23 = vld [vmem:[%s8150_s3 + $0x68] ss:$16 sps:$4 sm:$0xff]  }
  0x6f   :  { %910 = vmatprep.mubr.bf16.mxu1 %v8158_v3  ;;  %1343 = vmatpush1.bf16.msra.mxu0 %v5814_v21 }
  0x70   :  { %1344 = vmatprep.subr.bf16.mxu0 %v5819_v22  ;;  %1386 = vmatpush1.bf16.msra.mxu1 %v5825_v24 }
  0x71   :  { %1387 = vmatprep.subr.bf16.mxu1 %v5832_v25 }
  0x73   :  { %1345 = vmatpush1.bf16.msra.mxu0 %v5841_v26 }
  0x74   :  { %1346 = vmatprep.subr.bf16.mxu0 %v5847_v27  ;;  %1388 = vmatpush1.bf16.msra.mxu1 %v5853_v23 }
  0x75   :  { %798 = vmatmul.mubr.bf16.gmra.mrb[40].mxu0 %v5662_v39  ;;  %1389 = vmatprep.subr.bf16.mxu1 %v5859_v28 }
  0x76   :  { %911 = vmatmul.mubr.bf16.gmra.mrb[40].mxu1 %v5662_v39  ;;  %807 = vmatprep.mubr.bf16.mxu0 %v8158_v3  ;;  %v5929_v39 = vld [vmem:[%s8150_s3 + $0xc8] ss:$16 sps:$4 sm:$0xff]  }
  0x77   :  { %920 = vmatprep.mubr.bf16.mxu1 %v8158_v3  ;;  %1347 = vmatpush1.bf16.msra.mxu0 %v5865_v29 }
  0x78   :  { %1348 = vmatprep.subr.bf16.mxu0 %v5871_v30  ;;  %1390 = vmatpush1.bf16.msra.mxu1 %v5877_v31 }
  0x79   :  { %1391 = vmatprep.subr.bf16.mxu1 %v5884_v32 }
  0x7b   :  { %1349 = vmatpush1.bf16.msra.mxu0 %v5893_v33 }
  0x7c   :  { %1350 = vmatprep.subr.bf16.mxu0 %v5899_v34  ;;  %1392 = vmatpush1.bf16.msra.mxu1 %v5905_v35 }
  0x7d   :  { %808 = vmatmul.mubr.bf16.gmra.mrb[44].mxu0 %v5695_v56  ;;  %1393 = vmatprep.subr.bf16.mxu1 %v5911_v36 }
  0x7e   :  { %921 = vmatmul.mubr.bf16.gmra.mrb[44].mxu1 %v5695_v56  ;;  %817 = vmatprep.mubr.bf16.mxu0 %v8158_v3  ;;  %v4645_v56 = vld [vmem:[%s8151_s4 + $0x6c] ss:$16 sps:$4 sm:$0xff]  }
  0x7f   :  { %930 = vmatprep.mubr.bf16.mxu1 %v8158_v3  ;;  %1351 = vmatpush1.bf16.msra.mxu0 %v5917_v37 }
  0x80   :  { %1352 = vmatprep.subr.bf16.mxu0 %v5924_v38  ;;  %1394 = vmatpush1.bf16.msra.mxu1 %v5929_v39 }
  0x81   :  { %1395 = vmatprep.subr.bf16.mxu1 %v5936_v40 }
  0x83   :  { %1353 = vmatpush1.bf16.msra.mxu0 %v5945_v41 }
  0x84   :  { %1396 = vmatpush1.bf16.msra.mxu1 %v5952_v42  ;;  %1607 = vmatprep.subr.bf16.mxu0 %v5957_v43 }
  0x85   :  { %818 = vmatmul.mubr.bf16.gmra.mrb[48].mxu0 %v5721_v9  ;;  %1650 = vmatprep.subr.bf16.mxu1 %v5963_v44 }
  0x86   :  { %931 = vmatmul.mubr.bf16.gmra.mrb[48].mxu1 %v5721_v9  ;;  %827 = vmatprep.mubr.bf16.mxu0 %v8158_v3  ;;  %v4666_v9 = vld [vmem:[%s8151_s4 + $0xc8] ss:$16 sps:$4 sm:$0xff]  }
  0x87   :  { %940 = vmatprep.mubr.bf16.mxu1 %v8158_v3 }
  0x8d   :  { %828 = vmatmul.mubr.bf16.gmra.mrb[52].mxu0 %v5737_v11 }
  0x8e   :  { %941 = vmatmul.mubr.bf16.gmra.mrb[52].mxu1 %v5737_v11  ;;  %837 = vmatprep.mubr.bf16.mxu0 %v8158_v3  ;;  %v4667_v11 = vld [vmem:[%s8151_s4 + $0xe4] ss:$16 sps:$4 sm:$0xff]  }
  0x8f   :  { %950 = vmatprep.mubr.bf16.mxu1 %v8158_v3 }
  0x95   :  { %838 = vmatmul.mubr.bf16.gmra.mrb[56].mxu0 %v5746_v12 }
  0x96   :  { %951 = vmatmul.mubr.bf16.gmra.mrb[56].mxu1 %v5746_v12  ;;  %847 = vmatprep.mubr.bf16.mxu0 %v8158_v3  ;;  %v4669_v12 = vld [vmem:[%s8151_s4 + $0xec] ss:$16 sps:$4 sm:$0xff]  }
  0x97   :  { %960 = vmatprep.mubr.bf16.mxu1 %v8158_v3 }
  0x9d   :  { %848 = vmatmul.mubr.bf16.gmra.mrb[60].mxu0 %v5755_v13 }
  0x9e   :  { %961 = vmatmul.mubr.bf16.gmra.mrb[60].mxu1 %v5755_v13  ;;  %1370 = vmatprep.mubr.bf16.mxu0 %v8158_v3  ;;  %v4671_v13 = vld [vmem:[%s8151_s4 + $0xe0] ss:$16 sps:$4 sm:$0xff]  }
  0x9f   :  { %1413 = vmatprep.mubr.bf16.mxu1 %v8158_v3 }
  0xa5   :  { %1371 = vmatmul.mubr.bf16.vlgmr.msra.gmra.mrb[64].mxu0 %v8158_v3 }
  0xa6   :  { %1414 = vmatmul.mubr.bf16.vlgmr.msra.gmra.mrb[64].mxu1 %v8158_v3  ;;  %1608 = vmatpush1.bf16.msra.mxu0 %v4629_v45  ;;  %v4672_v45 = vld [vmem:[%s8151_s4 + $0xe8] ss:$16 sps:$4 sm:$0xff]  }
  0xa7   :  { %1651 = vmatpush1.bf16.msra.mxu1 %v4630_v46  ;;  %1609 = vmatprep.subr.bf16.mxu0 %v4631_v47 }
  0xa8   :  { %1652 = vmatprep.subr.bf16.mxu1 %v4633_v48  ;;  %1639 = vmatprep.mubr.bf16.mxu0 %v8158_v3 }
  0xa9   :  { %1682 = vmatprep.mubr.bf16.mxu1 %v8158_v3 }
  0xaa   :  { %1610 = vmatpush1.bf16.msra.mxu0 %v4635_v49 }
  0xab   :  { %1653 = vmatpush1.bf16.msra.mxu1 %v4636_v50  ;;  %1611 = vmatprep.subr.bf16.mxu0 %v4637_v51 }
  0xac   :  { %1654 = vmatprep.subr.bf16.mxu1 %v4639_v52 }
  0xae   :  { %1612 = vmatpush1.bf16.msra.mxu0 %v4641_v53 }
  0xaf   :  { %1655 = vmatpush1.bf16.msra.mxu1 %v4642_v54  ;;  %1613 = vmatprep.subr.bf16.mxu0 %v4643_v55 }
  0xb0   :  { %1656 = vmatprep.subr.bf16.mxu1 %v4645_v56 }
  0xb2   :  { %1614 = vmatpush1.bf16.msra.mxu0 %v4647_v57 }
  0xb3   :  { %1657 = vmatpush1.bf16.msra.mxu1 %v4648_v58  ;;  %1615 = vmatprep.subr.bf16.mxu0 %v4649_v59 }
  0xb4   :  { %1658 = vmatprep.subr.bf16.mxu1 %v4651_v60 }
  0xb6   :  { %1616 = vmatpush1.bf16.msra.mxu0 %v4653_v61 }
  0xb7   :  { %1659 = vmatpush1.bf16.msra.mxu1 %v4654_v62  ;;  %1617 = vmatprep.subr.bf16.mxu0 %v4655_v63 }
  0xb8   :  { %1660 = vmatprep.subr.bf16.mxu1 %v4657_v0 }
  0xba   :  { %1618 = vmatpush1.bf16.msra.mxu0 %v4659_v1 }
  0xbb   :  { %1661 = vmatpush1.bf16.msra.mxu1 %v4660_v2  ;;  %1619 = vmatprep.subr.bf16.mxu0 %v4661_v4 }
  0xbc   :  { %1662 = vmatprep.subr.bf16.mxu1 %v4663_v5 }
  0xbe   :  { %1620 = vmatpush1.bf16.msra.mxu0 %v4665_v6 }
  0xbf   :  { %1663 = vmatpush1.bf16.msra.mxu1 %v4666_v9  ;;  %1621 = vmatprep.subr.bf16.mxu0 %v4667_v11 }
  0xc0   :  { %1664 = vmatprep.subr.bf16.mxu1 %v4669_v12 }
  0xc2   :  { %1622 = vmatpush1.bf16.msra.mxu0 %v4671_v13 }
  0xc3   :  { %1665 = vmatpush1.bf16.msra.mxu1 %v4672_v45  ;;  %1823 = vmatprep.subr.bf16.mxu0 %v5716_v8  ;;  %v111_v8 = vlaneseq }
  0xc4   :  { %1866 = vmatprep.subr.bf16.mxu1 %v5726_v10 }
  0xc5   :  { %1640 = vmatmul.mubr.bf16.vlgmr.msra.gmra.mrb[68].mxu0 %v8158_v3  ;;  %v6117_v10 = vshrl.u32 %v111_v8, 7 }
  0xc6   :  { %1683 = vmatmul.mubr.bf16.vlgmr.msra.gmra.mrb[68].mxu1 %v8158_v3  ;;  %1824 = vmatpush1.bf16.msra.mxu0 %v5764_v14 }
  0xc7   :  { %1867 = vmatpush1.bf16.msra.mxu1 %v5774_v16  ;;  %1825 = vmatprep.subr.bf16.mxu0 %v5769_v15  ;;  %8330 = vst [vmem:[#allocation5_spill] sm:$0xff] %v6117_v10  ;;  %v121_v14 = vsub.s32 2, %v6117_v10  ;;  %v8157_v15 = vsub.s32 0, %v6117_v10  ;;  %v125_v16 = vsub.s32 3, %v6117_v10 }
  0xc8   :  { %1868 = vmatprep.subr.bf16.mxu1 %v5780_v17  ;;  %1855 = vmatprep.mubr.bf16.mxu0 %v8158_v3  ;;  %v6125_v17 = vld [vmem:[%s8152_s2] sm:$0xff] }
  0xc9   :  { %1898 = vmatprep.mubr.bf16.mxu1 %v8158_v3 }
  0xca   :  { %1826 = vmatpush1.bf16.msra.mxu0 %v5787_v18  ;;  %v8156_v18 = vsub.s32 1, %v6117_v10 }
  0xcb   :  { %1869 = vmatpush1.bf16.msra.mxu1 %v5801_v7  ;;  %1827 = vmatprep.subr.bf16.mxu0 %v5794_v19  ;;  %v6129_v19 = vrot.slane %v6125_v17, %v121_v14  ;;  %v6134_v7 = vrot.slane %v6125_v17, %v8157_v15 }
  0xcc   :  { %1870 = vmatprep.subr.bf16.mxu1 %v5807_v20  ;;  %v6137_v20 = vrot.slane %v6125_v17, %v125_v16 }
  0xce   :  { %1828 = vmatpush1.bf16.msra.mxu0 %v5814_v21 }
  0xcf   :  { %1871 = vmatpush1.bf16.msra.mxu1 %v5825_v24  ;;  %1829 = vmatprep.subr.bf16.mxu0 %v5819_v22  ;;  %v6142_v22 = vrot.slane %v6125_v17, %v8156_v18 }
  0xd0   :  { %1872 = vmatprep.subr.bf16.mxu1 %v5832_v25 }
  0xd2   :  { %1830 = vmatpush1.bf16.msra.mxu0 %v5841_v26 }
  0xd3   :  { %1873 = vmatpush1.bf16.msra.mxu1 %v5853_v23  ;;  %1831 = vmatprep.subr.bf16.mxu0 %v5847_v27 }
  0xd4   :  { %1874 = vmatprep.subr.bf16.mxu1 %v5859_v28 }
  0xd6   :  { %1832 = vmatpush1.bf16.msra.mxu0 %v5865_v29 }
  0xd7   :  { %1875 = vmatpush1.bf16.msra.mxu1 %v5877_v31  ;;  %1833 = vmatprep.subr.bf16.mxu0 %v5871_v30 }
  0xd8   :  { %1876 = vmatprep.subr.bf16.mxu1 %v5884_v32 }
  0xda   :  { %1834 = vmatpush1.bf16.msra.mxu0 %v5893_v33 }
  0xdb   :  { %1877 = vmatpush1.bf16.msra.mxu1 %v5905_v35  ;;  %1835 = vmatprep.subr.bf16.mxu0 %v5899_v34 }
  0xdc   :  { %1878 = vmatprep.subr.bf16.mxu1 %v5911_v36 }
  0xde   :  { %1836 = vmatpush1.bf16.msra.mxu0 %v5917_v37 }
  0xdf   :  { %1879 = vmatpush1.bf16.msra.mxu1 %v5929_v39  ;;  %1837 = vmatprep.subr.bf16.mxu0 %v5924_v38 }
  0xe0   :  { %1880 = vmatprep.subr.bf16.mxu1 %v5936_v40 }
  0xe2   :  { %1838 = vmatpush1.bf16.msra.mxu0 %v5945_v41 }
  0xe3   :  { %1881 = vmatpush1.bf16.msra.mxu1 %v5952_v42  ;;  %1933 = vmatprep.subr.bf16.mxu0 %v5957_v43 }
  0xe4   :  { %1976 = vmatprep.subr.bf16.mxu1 %v5963_v44 }
  0xf8   :  { %v553_v21 = vpop.f32.mrb[0].mxu0  ;;  %v666_v25 = vpop.f32.mrb[0].mxu1 }
  0xf9   :  { %v555_v24 = vpop.f32.mrb[1].mxu0  ;;  %v667_v27 = vadd.f32 %v666_v25, %v6129_v19  ;;  %v668_v23 = vpop.f32.mrb[1].mxu1  ;;  %v554_v28 = vadd.f32 %v553_v21, %v6134_v7 }
  0xfa   :  { %v557_v26 = vpop.f32.mrb[2].mxu0  ;;  %v669_v31 = vadd.f32 %v668_v23, %v6137_v20  ;;  %v670_v32 = vpop.f32.mrb[2].mxu1  ;;  %v556_v33 = vadd.f32 %v555_v24, %v6142_v22 }
  0xfb   :  { %v558_v29 = vadd.f32 %v557_v26, %v6134_v7  ;;  %v559_v30 = vpop.f32.mrb[3].mxu0  ;;  %v671_v35 = vadd.f32 %v670_v32, %v6129_v19  ;;  %v672_v36 = vpop.f32.mrb[3].mxu1 }
  0xfc   :  { %v560_v34 = vadd.f32 %v559_v30, %v6142_v22  ;;  %v673_v38 = vadd.f32 %v672_v36, %v6137_v20 }
  0xfd   :  { %v6151_v37 = vpack.c.bf16 %v558_v29, %v554_v28  ;;  %v6156_v40 = vpack.c.bf16 %v671_v35, %v667_v27 }
  0xfe   :  { %v6154_v39 = vpack.c.bf16 %v560_v34, %v556_v33  ;;  %v6158_v41 = vpack.c.bf16 %v673_v38, %v669_v31 }
 0x100   :  { %v563_v42 = vpop.f32.mrb[4].mxu0 }
 0x101   :  { %v564_v43 = vadd.f32 %v563_v42, %v6134_v7  ;;  %v565_v44 = vpop.f32.mrb[5].mxu0  ;;  %v676_v46 = vpop.f32.mrb[4].mxu1 }
 0x102   :  { %v566_v47 = vadd.f32 %v565_v44, %v6142_v22  ;;  %v567_v48 = vpop.f32.mrb[6].mxu0  ;;  %v677_v49 = vadd.f32 %v676_v46, %v6129_v19  ;;  %v678_v50 = vpop.f32.mrb[5].mxu1 }
 0x103   :  { %v568_v51 = vadd.f32 %v567_v48, %v6134_v7  ;;  %v569_v52 = vpop.f32.mrb[7].mxu0  ;;  %v679_v53 = vadd.f32 %v678_v50, %v6137_v20  ;;  %v680_v54 = vpop.f32.mrb[6].mxu1 }
 0x104   :  { %v570_v55 = vadd.f32 %v569_v52, %v6142_v22  ;;  %v681_v56 = vadd.f32 %v680_v54, %v6129_v19  ;;  %v682_v57 = vpop.f32.mrb[7].mxu1 }
 0x105   :  { %v6167_v58 = vpack.c.bf16 %v568_v51, %v564_v43  ;;  %v683_v59 = vadd.f32 %v682_v57, %v6137_v20 }
 0x106   :  { %v6170_v60 = vpack.c.bf16 %v570_v55, %v566_v47  ;;  %v6172_v61 = vpack.c.bf16 %v681_v56, %v677_v49 }
 0x107   :  { %v6174_v62 = vpack.c.bf16 %v683_v59, %v679_v53 }
 0x108   :  { %v573_v63 = vpop.f32.mrb[8].mxu0 }
 0x109   :  { %v574_v0 = vadd.f32 %v573_v63, %v6134_v7  ;;  %v575_v1 = vpop.f32.mrb[9].mxu0  ;;  %v686_v2 = vpop.f32.mrb[8].mxu1 }
 0x10a   :  { %v576_v4 = vadd.f32 %v575_v1, %v6142_v22  ;;  %v577_v5 = vpop.f32.mrb[10].mxu0  ;;  %v687_v6 = vadd.f32 %v686_v2, %v6129_v19  ;;  %v688_v9 = vpop.f32.mrb[9].mxu1 }
 0x10b   :  { %v578_v11 = vadd.f32 %v577_v5, %v6134_v7  ;;  %v579_v12 = vpop.f32.mrb[11].mxu0  ;;  %v689_v13 = vadd.f32 %v688_v9, %v6137_v20  ;;  %v690_v45 = vpop.f32.mrb[10].mxu1 }
 0x10c   :  { %v580_v8 = vadd.f32 %v579_v12, %v6142_v22  ;;  %v691_v14 = vadd.f32 %v690_v45, %v6129_v19  ;;  %v692_v16 = vpop.f32.mrb[11].mxu1 }
 0x10d   :  { %v6183_v21 = vpack.c.bf16 %v578_v11, %v574_v0  ;;  %v693_v24 = vadd.f32 %v692_v16, %v6137_v20 }
 0x10e   :  { %v6186_v25 = vpack.c.bf16 %v580_v8, %v576_v4  ;;  %v6188_v26 = vpack.c.bf16 %v691_v14, %v687_v6 }
 0x10f   :  { %8331 = vst [vmem:[#allocation6_spill] sm:$0xff] %v6183_v21  ;;  %v6190_v27 = vpack.c.bf16 %v693_v24, %v689_v13  ;;  %v6763_v21 = vld [vmem:[%s8150_s3 + $0xa4] ss:$16 sps:$4 sm:$0xff]  }
 0x110   :  { %8332 = vst [vmem:[#allocation7_spill] sm:$0xff] %v6186_v25  ;;  %8333 = vst [vmem:[#allocation8_spill] sm:$0xff] %v6188_v26  ;;  %v583_v23 = vpop.f32.mrb[12].mxu0  ;;  %v6751_v25 = vld [vmem:[%s8150_s3 + $0x80] ss:$16 sps:$4 sm:$0xff]  }
 0x111   :  { %8334 = vst [vmem:[#allocation9_spill] sm:$0xff] %v6190_v27  ;;  %v584_v28 = vadd.f32 %v583_v23, %v6134_v7  ;;  %v585_v29 = vpop.f32.mrb[13].mxu0  ;;  %v696_v30 = vpop.f32.mrb[12].mxu1  ;;  %v6745_v27 = vld [vmem:[%s8150_s3 + $0x8c] ss:$16 sps:$4 sm:$0xff]   ;;  %8403 = vst [vmem:[#allocation77_spill] sm:$0xff] %v6751_v25 }
 0x112   :  { %v586_v31 = vadd.f32 %v585_v29, %v6142_v22  ;;  %v587_v32 = vpop.f32.mrb[14].mxu0  ;;  %v697_v33 = vadd.f32 %v696_v30, %v6129_v19  ;;  %v698_v34 = vpop.f32.mrb[13].mxu1  ;;  %8402 = vst [vmem:[#allocation76_spill] sm:$0xff] %v6745_v27  ;;  %v6757_v26 = vld [vmem:[%s8150_s3 + $0x88] ss:$16 sps:$4 sm:$0xff]   ;;  %8405 = vst [vmem:[#allocation79_spill] sm:$0xff] %v6763_v21 }
 0x113   :  { %v588_v35 = vadd.f32 %v587_v32, %v6134_v7  ;;  %v589_v36 = vpop.f32.mrb[15].mxu0  ;;  %v699_v38 = vadd.f32 %v698_v34, %v6137_v20  ;;  %v700_v42 = vpop.f32.mrb[14].mxu1  ;;  %8404 = vst [vmem:[#allocation78_spill] sm:$0xff] %v6757_v26 }
 0x114   :  { %v590_v43 = vadd.f32 %v589_v36, %v6142_v22  ;;  %v701_v44 = vadd.f32 %v700_v42, %v6129_v19  ;;  %v702_v46 = vpop.f32.mrb[15].mxu1 }
 0x115   :  { %v6199_v47 = vpack.c.bf16 %v588_v35, %v584_v28  ;;  %v703_v48 = vadd.f32 %v702_v46, %v6137_v20 }
 0x116   :  { %v6202_v49 = vpack.c.bf16 %v590_v43, %v586_v31  ;;  %v6204_v50 = vpack.c.bf16 %v701_v44, %v697_v33 }
 0x117   :  { %8335 = vst [vmem:[#allocation10_spill] sm:$0xff] %v6199_v47  ;;  %v6206_v51 = vpack.c.bf16 %v703_v48, %v699_v38  ;;  %v6715_v47 = vld [vmem:[%s8150_s3 + $0x64] ss:$16 sps:$4 sm:$0xff]  }
 0x118   :  { %8336 = vst [vmem:[#allocation11_spill] sm:$0xff] %v6202_v49  ;;  %8337 = vst [vmem:[#allocation12_spill] sm:$0xff] %v6204_v50  ;;  %v593_v52 = vpop.f32.mrb[16].mxu0  ;;  %v6703_v49 = vld [vmem:[%s8150_s3 + $0x40] ss:$16 sps:$4 sm:$0xff]  }
 0x119   :  { %8338 = vst [vmem:[#allocation13_spill] sm:$0xff] %v6206_v51  ;;  %v594_v53 = vadd.f32 %v593_v52, %v6134_v7  ;;  %v595_v54 = vpop.f32.mrb[17].mxu0  ;;  %v706_v55 = vpop.f32.mrb[16].mxu1  ;;  %v6697_v51 = vld [vmem:[%s8150_s3 + $0x4c] ss:$16 sps:$4 sm:$0xff]   ;;  %8395 = vst [vmem:[#allocation69_spill] sm:$0xff] %v6703_v49 }
 0x11a   :  { %v596_v56 = vadd.f32 %v595_v54, %v6142_v22  ;;  %v597_v57 = vpop.f32.mrb[18].mxu0  ;;  %v707_v59 = vadd.f32 %v706_v55, %v6129_v19  ;;  %v708_v63 = vpop.f32.mrb[17].mxu1  ;;  %8394 = vst [vmem:[#allocation68_spill] sm:$0xff] %v6697_v51  ;;  %v6709_v50 = vld [vmem:[%s8150_s3 + $0x48] ss:$16 sps:$4 sm:$0xff]   ;;  %8397 = vst [vmem:[#allocation71_spill] sm:$0xff] %v6715_v47 }
 0x11b   :  { %v598_v0 = vadd.f32 %v597_v57, %v6134_v7  ;;  %v599_v1 = vpop.f32.mrb[19].mxu0  ;;  %v709_v2 = vadd.f32 %v708_v63, %v6137_v20  ;;  %v710_v4 = vpop.f32.mrb[18].mxu1  ;;  %8396 = vst [vmem:[#allocation70_spill] sm:$0xff] %v6709_v50 }
 0x11c   :  { %v600_v5 = vadd.f32 %v599_v1, %v6142_v22  ;;  %v711_v6 = vadd.f32 %v710_v4, %v6129_v19  ;;  %v712_v9 = vpop.f32.mrb[19].mxu1 }
 0x11d   :  { %v6215_v11 = vpack.c.bf16 %v598_v0, %v594_v53  ;;  %v713_v12 = vadd.f32 %v712_v9, %v6137_v20 }
 0x11e   :  { %v6218_v13 = vpack.c.bf16 %v600_v5, %v596_v56  ;;  %v6220_v45 = vpack.c.bf16 %v711_v6, %v707_v59 }
 0x11f   :  { %8339 = vst [vmem:[#allocation14_spill] sm:$0xff] %v6215_v11  ;;  %v6222_v8 = vpack.c.bf16 %v713_v12, %v709_v2 }
 0x120   :  { %8340 = vst [vmem:[#allocation15_spill] sm:$0xff] %v6218_v13  ;;  %8341 = vst [vmem:[#allocation16_spill] sm:$0xff] %v6220_v45  ;;  %v603_v14 = vpop.f32.mrb[20].mxu0  ;;  %v6623_v13 = vld [vmem:[%s8151_s4 + $0xe0] ss:$16 sps:$4 sm:$0xff]  }
 0x121   :  { %8342 = vst [vmem:[#allocation17_spill] sm:$0xff] %v6222_v8  ;;  %v604_v16 = vadd.f32 %v603_v14, %v6134_v7  ;;  %v605_v24 = vpop.f32.mrb[21].mxu0  ;;  %v716_v23 = vpop.f32.mrb[20].mxu1  ;;  %v6629_v45 = vld [vmem:[%s8151_s4 + $0xe8] ss:$16 sps:$4 sm:$0xff]  }
 0x122   :  { %v606_v28 = vadd.f32 %v605_v24, %v6142_v22  ;;  %v607_v29 = vpop.f32.mrb[22].mxu0  ;;  %v717_v30 = vadd.f32 %v716_v23, %v6129_v19  ;;  %v718_v31 = vpop.f32.mrb[21].mxu1  ;;  %8382 = vst [vmem:[#allocation56_spill] sm:$0xff] %v6629_v45 }
 0x123   :  { %v608_v32 = vadd.f32 %v607_v29, %v6134_v7  ;;  %v609_v33 = vpop.f32.mrb[23].mxu0  ;;  %v719_v34 = vadd.f32 %v718_v31, %v6137_v20  ;;  %v720_v35 = vpop.f32.mrb[22].mxu1 }
 0x124   :  { %v610_v36 = vadd.f32 %v609_v33, %v6142_v22  ;;  %v721_v38 = vadd.f32 %v720_v35, %v6129_v19  ;;  %v722_v42 = vpop.f32.mrb[23].mxu1 }
 0x125   :  { %v6231_v43 = vpack.c.bf16 %v608_v32, %v604_v16  ;;  %v723_v44 = vadd.f32 %v722_v42, %v6137_v20  ;;  %v129_v32 = vsub.s32 4, %v6117_v10 }
 0x126   :  { %v6234_v46 = vpack.c.bf16 %v610_v36, %v606_v28  ;;  %v6236_v48 = vpack.c.bf16 %v721_v38, %v717_v30  ;;  %v133_v36 = vsub.s32 5, %v6117_v10 }
 0x127   :  { %8343 = vst [vmem:[#allocation18_spill] sm:$0xff] %v6231_v43  ;;  %v6238_v52 = vpack.c.bf16 %v723_v44, %v719_v34  ;;  %v137_v44 = vsub.s32 6, %v6117_v10 }
 0x128   :  { %8344 = vst [vmem:[#allocation19_spill] sm:$0xff] %v6234_v46  ;;  %8345 = vst [vmem:[#allocation20_spill] sm:$0xff] %v6236_v48  ;;  %v613_v53 = vpop.f32.mrb[24].mxu0 }
 0x129   :  { %8346 = vst [vmem:[#allocation21_spill] sm:$0xff] %v6238_v52  ;;  %v614_v54 = vadd.f32 %v613_v53, %v6134_v7  ;;  %v615_v55 = vpop.f32.mrb[25].mxu0  ;;  %v726_v56 = vpop.f32.mrb[24].mxu1 }
 0x12a   :  { %v616_v57 = vadd.f32 %v615_v55, %v6142_v22  ;;  %v617_v59 = vpop.f32.mrb[26].mxu0  ;;  %v727_v63 = vadd.f32 %v726_v56, %v6129_v19  ;;  %v728_v0 = vpop.f32.mrb[25].mxu1 }
 0x12b   :  { %v618_v1 = vadd.f32 %v617_v59, %v6134_v7  ;;  %v619_v2 = vpop.f32.mrb[27].mxu0  ;;  %v729_v4 = vadd.f32 %v728_v0, %v6137_v20  ;;  %v730_v5 = vpop.f32.mrb[26].mxu1 }
 0x12c   :  { %v620_v6 = vadd.f32 %v619_v2, %v6142_v22  ;;  %v731_v9 = vadd.f32 %v730_v5, %v6129_v19  ;;  %v732_v12 = vpop.f32.mrb[27].mxu1  ;;  %v6270_v2 = vrot.slane %v6125_v17, %v129_v32 }
 0x12d   :  { %v6247_v14 = vpack.c.bf16 %v618_v1, %v614_v54  ;;  %v733_v16 = vadd.f32 %v732_v12, %v6137_v20 }
 0x12e   :  { %v6250_v24 = vpack.c.bf16 %v620_v6, %v616_v57  ;;  %v6252_v23 = vpack.c.bf16 %v731_v9, %v727_v63  ;;  %v141_v57 = vsub.s32 7, %v6117_v10  ;;  %v6281_v9 = vrot.slane %v6125_v17, %v137_v44  ;;  %v6605_v10 = vld [vmem:[%s8151_s4 + $0xc8] ss:$16 sps:$4 sm:$0xff]  }
 0x12f   :  { %8347 = vst [vmem:[#allocation22_spill] sm:$0xff] %v6247_v14  ;;  %v6254_v28 = vpack.c.bf16 %v733_v16, %v729_v4 }
 0x130   :  { %8348 = vst [vmem:[#allocation23_spill] sm:$0xff] %v6250_v24  ;;  %8349 = vst [vmem:[#allocation24_spill] sm:$0xff] %v6252_v23  ;;  %v623_v29 = vpop.f32.mrb[28].mxu0 }
 0x131   :  { %8350 = vst [vmem:[#allocation25_spill] sm:$0xff] %v6254_v28  ;;  %v624_v30 = vadd.f32 %v623_v29, %v6134_v7  ;;  %v625_v31 = vpop.f32.mrb[29].mxu0  ;;  %v736_v33 = vpop.f32.mrb[28].mxu1 }
 0x132   :  { %v626_v34 = vadd.f32 %v625_v31, %v6142_v22  ;;  %v627_v35 = vpop.f32.mrb[30].mxu0  ;;  %v737_v38 = vadd.f32 %v736_v33, %v6129_v19  ;;  %v738_v42 = vpop.f32.mrb[29].mxu1 }
 0x133   :  { %v628_v53 = vadd.f32 %v627_v35, %v6134_v7  ;;  %v629_v54 = vpop.f32.mrb[31].mxu0  ;;  %v739_v55 = vadd.f32 %v738_v42, %v6137_v20  ;;  %v740_v56 = vpop.f32.mrb[30].mxu1  ;;  %v6276_v7 = vrot.slane %v6125_v17, %v133_v36 }
 0x134   :  { %v630_v59 = vadd.f32 %v629_v54, %v6142_v22  ;;  %v741_v63 = vadd.f32 %v740_v56, %v6129_v19  ;;  %v742_v0 = vpop.f32.mrb[31].mxu1  ;;  %v6286_v19 = vrot.slane %v6125_v17, %v141_v57 }
 0x135   :  { %v6267_v1 = vpack.c.bf16 %v628_v53, %v624_v30  ;;  %v743_v4 = vadd.f32 %v742_v0, %v6137_v20 }
 0x136   :  { %v6273_v5 = vpack.c.bf16 %v630_v59, %v626_v34  ;;  %v6278_v6 = vpack.c.bf16 %v741_v63, %v737_v38 }
 0x137   :  { %8351 = vst [vmem:[#allocation26_spill] sm:$0xff] %v6267_v1  ;;  %v6283_v22 = vpack.c.bf16 %v743_v4, %v739_v55 }
 0x138   :  { %8352 = vst [vmem:[#allocation27_spill] sm:$0xff] %v6273_v5  ;;  %8353 = vst [vmem:[#allocation28_spill] sm:$0xff] %v6278_v6  ;;  %v779_v12 = vpop.f32.mrb[32].mxu0 }
 0x139   :  { %8354 = vst [vmem:[#allocation29_spill] sm:$0xff] %v6283_v22  ;;  %v780_v16 = vadd.f32 %v779_v12, %v6270_v2  ;;  %v781_v29 = vpop.f32.mrb[33].mxu0  ;;  %v892_v20 = vpop.f32.mrb[32].mxu1 }
 0x13a   :  { %v782_v30 = vadd.f32 %v781_v29, %v6276_v7  ;;  %v783_v31 = vpop.f32.mrb[34].mxu0  ;;  %v893_v32 = vadd.f32 %v892_v20, %v6281_v9  ;;  %v894_v33 = vpop.f32.mrb[33].mxu1 }
 0x13b   :  { %v784_v34 = vadd.f32 %v783_v31, %v6270_v2  ;;  %v785_v35 = vpop.f32.mrb[35].mxu0  ;;  %v895_v36 = vadd.f32 %v894_v33, %v6286_v19  ;;  %v896_v38 = vpop.f32.mrb[34].mxu1 }
 0x13c   :  { %v786_v17 = vadd.f32 %v785_v35, %v6276_v7  ;;  %v897_v42 = vadd.f32 %v896_v38, %v6281_v9  ;;  %v898_v44 = vpop.f32.mrb[35].mxu1 }
 0x13d   :  { %v6295_v53 = vpack.c.bf16 %v784_v34, %v780_v16  ;;  %v899_v54 = vadd.f32 %v898_v44, %v6286_v19 }
 0x13e   :  { %v6298_v55 = vpack.c.bf16 %v786_v17, %v782_v30  ;;  %v6300_v56 = vpack.c.bf16 %v897_v42, %v893_v32 }
 0x13f   :  { %8355 = vst [vmem:[#allocation30_spill] sm:$0xff] %v6295_v53  ;;  %v6302_v57 = vpack.c.bf16 %v899_v54, %v895_v36 }
 0x140   :  { %8356 = vst [vmem:[#allocation31_spill] sm:$0xff] %v6298_v55  ;;  %8357 = vst [vmem:[#allocation32_spill] sm:$0xff] %v6300_v56  ;;  %v789_v59 = vpop.f32.mrb[36].mxu0 }
 0x141   :  { %8358 = vst [vmem:[#allocation33_spill] sm:$0xff] %v6302_v57  ;;  %v790_v63 = vadd.f32 %v789_v59, %v6270_v2  ;;  %v791_v0 = vpop.f32.mrb[37].mxu0  ;;  %v902_v4 = vpop.f32.mrb[36].mxu1 }
 0x142   :  { %v792_v12 = vadd.f32 %v791_v0, %v6276_v7  ;;  %v793_v29 = vpop.f32.mrb[38].mxu0  ;;  %v903_v20 = vadd.f32 %v902_v4, %v6281_v9  ;;  %v904_v16 = vpop.f32.mrb[37].mxu1 }
 0x143   :  { %v794_v31 = vadd.f32 %v793_v29, %v6270_v2  ;;  %v795_v33 = vpop.f32.mrb[39].mxu0  ;;  %v905_v30 = vadd.f32 %v904_v16, %v6286_v19  ;;  %v906_v32 = vpop.f32.mrb[38].mxu1 }
 0x144   :  { %v796_v34 = vadd.f32 %v795_v33, %v6276_v7  ;;  %v907_v35 = vadd.f32 %v906_v32, %v6281_v9  ;;  %v908_v36 = vpop.f32.mrb[39].mxu1 }
 0x145   :  { %v6311_v38 = vpack.c.bf16 %v794_v31, %v790_v63  ;;  %v909_v17 = vadd.f32 %v908_v36, %v6286_v19 }
 0x146   :  { %v6314_v42 = vpack.c.bf16 %v796_v34, %v792_v12  ;;  %v6316_v44 = vpack.c.bf16 %v907_v35, %v903_v20 }
 0x147   :  { %8359 = vst [vmem:[#allocation34_spill] sm:$0xff] %v6311_v38  ;;  %v6318_v54 = vpack.c.bf16 %v909_v17, %v905_v30 }
 0x148   :  { %8360 = vst [vmem:[#allocation35_spill] sm:$0xff] %v6314_v42  ;;  %8361 = vst [vmem:[#allocation36_spill] sm:$0xff] %v6316_v44  ;;  %v799_v59 = vpop.f32.mrb[40].mxu0 }
 0x149   :  { %8362 = vst [vmem:[#allocation37_spill] sm:$0xff] %v6318_v54  ;;  %v800_v0 = vadd.f32 %v799_v59, %v6270_v2  ;;  %v801_v4 = vpop.f32.mrb[41].mxu0  ;;  %v912_v29 = vpop.f32.mrb[40].mxu1 }
 0x14a   :  { %v802_v16 = vadd.f32 %v801_v4, %v6276_v7  ;;  %v803_v33 = vpop.f32.mrb[42].mxu0  ;;  %v913_v32 = vadd.f32 %v912_v29, %v6281_v9  ;;  %v914_v63 = vpop.f32.mrb[41].mxu1 }
 0x14b   :  { %v804_v31 = vadd.f32 %v803_v33, %v6270_v2  ;;  %v805_v36 = vpop.f32.mrb[43].mxu0  ;;  %v915_v12 = vadd.f32 %v914_v63, %v6286_v19  ;;  %v916_v20 = vpop.f32.mrb[42].mxu1 }
 0x14c   :  { %v806_v30 = vadd.f32 %v805_v36, %v6276_v7  ;;  %v917_v34 = vadd.f32 %v916_v20, %v6281_v9  ;;  %v918_v35 = vpop.f32.mrb[43].mxu1 }
 0x14d   :  { %v6327_v17 = vpack.c.bf16 %v804_v31, %v800_v0  ;;  %v919_v59 = vadd.f32 %v918_v35, %v6286_v19 }
 0x14e   :  { %v6330_v4 = vpack.c.bf16 %v806_v30, %v802_v16  ;;  %v6332_v18 = vpack.c.bf16 %v917_v34, %v913_v32 }
 0x14f   :  { %8363 = vst [vmem:[#allocation38_spill] sm:$0xff] %v6327_v17  ;;  %v6334_v29 = vpack.c.bf16 %v919_v59, %v915_v12 }
 0x150   :  { %8364 = vst [vmem:[#allocation39_spill] sm:$0xff] %v6330_v4  ;;  %8365 = vst [vmem:[#allocation40_spill] sm:$0xff] %v6332_v18  ;;  %v809_v33 = vpop.f32.mrb[44].mxu0 }
 0x151   :  { %8366 = vst [vmem:[#allocation41_spill] sm:$0xff] %v6334_v29  ;;  %v810_v15 = vadd.f32 %v809_v33, %v6270_v2  ;;  %v811_v63 = vpop.f32.mrb[45].mxu0  ;;  %v922_v3 = vpop.f32.mrb[44].mxu1 }
 0x152   :  { %v812_v36 = vadd.f32 %v811_v63, %v6276_v7  ;;  %v813_v57 = vpop.f32.mrb[46].mxu0  ;;  %v923_v20 = vadd.f32 %v922_v3, %v6281_v9  ;;  %v924_v0 = vpop.f32.mrb[45].mxu1 }
 0x153   :  { %v814_v31 = vadd.f32 %v813_v57, %v6270_v2  ;;  %v815_v35 = vpop.f32.mrb[47].mxu0  ;;  %v925_v16 = vadd.f32 %v924_v0, %v6286_v19  ;;  %v926_v32 = vpop.f32.mrb[46].mxu1 }
 0x154   :  { %v816_v12 = vadd.f32 %v815_v35, %v6276_v7  ;;  %v927_v30 = vadd.f32 %v926_v32, %v6281_v9  ;;  %v928_v34 = vpop.f32.mrb[47].mxu1 }
 0x155   :  { %v6343_v59 = vpack.c.bf16 %v814_v31, %v810_v15  ;;  %v929_v33 = vadd.f32 %v928_v34, %v6286_v19 }
 0x156   :  { %v6346_v63 = vpack.c.bf16 %v816_v12, %v812_v36  ;;  %v6348_v55 = vpack.c.bf16 %v927_v30, %v923_v20 }
 0x157   :  { %8367 = vst [vmem:[#allocation42_spill] sm:$0xff] %v6343_v59  ;;  %v6350_v3 = vpack.c.bf16 %v929_v33, %v925_v16 }
 0x158   :  { %8368 = vst [vmem:[#allocation43_spill] sm:$0xff] %v6346_v63  ;;  %8369 = vst [vmem:[#allocation44_spill] sm:$0xff] %v6348_v55  ;;  %v819_v57 = vpop.f32.mrb[48].mxu0  ;;  %v6611_v63 = vld [vmem:[%s8151_s4 + $0xe4] ss:$16 sps:$4 sm:$0xff]  }
 0x159   :  { %8370 = vst [vmem:[#allocation45_spill] sm:$0xff] %v6350_v3  ;;  %v820_v56 = vadd.f32 %v819_v57, %v6270_v2  ;;  %v821_v0 = vpop.f32.mrb[49].mxu0  ;;  %v932_v53 = vpop.f32.mrb[48].mxu1  ;;  %v6617_v55 = vld [vmem:[%s8151_s4 + $0xec] ss:$16 sps:$4 sm:$0xff]  }
 0x15a   :  { %v822_v35 = vadd.f32 %v821_v0, %v6276_v7  ;;  %v823_v22 = vpop.f32.mrb[50].mxu0  ;;  %v933_v32 = vadd.f32 %v932_v53, %v6281_v9  ;;  %v934_v15 = vpop.f32.mrb[49].mxu1 }
 0x15b   :  { %v824_v31 = vadd.f32 %v823_v22, %v6270_v2  ;;  %v825_v34 = vpop.f32.mrb[51].mxu0  ;;  %v935_v36 = vadd.f32 %v934_v15, %v6286_v19  ;;  %v936_v20 = vpop.f32.mrb[50].mxu1 }
 0x15c   :  { %v826_v16 = vadd.f32 %v825_v34, %v6276_v7  ;;  %v937_v12 = vadd.f32 %v936_v20, %v6281_v9  ;;  %v938_v30 = vpop.f32.mrb[51].mxu1 }
 0x15d   :  { %v6359_v33 = vpack.c.bf16 %v824_v31, %v820_v56  ;;  %v939_v57 = vadd.f32 %v938_v30, %v6286_v19 }
 0x15e   :  { %v6362_v0 = vpack.c.bf16 %v826_v16, %v822_v35  ;;  %v6364_v5 = vpack.c.bf16 %v937_v12, %v933_v32 }
 0x15f   :  { %8371 = vst [vmem:[#allocation46_spill] sm:$0xff] %v6359_v33  ;;  %v6366_v53 = vpack.c.bf16 %v939_v57, %v935_v36  ;;  %v6691_v33 = vld [vmem:[%s8150_s3 + $0x44] ss:$16 sps:$4 sm:$0xff]  }
 0x160   :  { %8372 = vst [vmem:[#allocation47_spill] sm:$0xff] %v6362_v0  ;;  %8373 = vst [vmem:[#allocation48_spill] sm:$0xff] %v6364_v5  ;;  %v829_v22 = vpop.f32.mrb[52].mxu0  ;;  %v6639_v0 = vld [vmem:[%s8150_s3 + $0x4] ss:$16 sps:$4 sm:$0xff]  }
 0x161   :  { %8374 = vst [vmem:[#allocation49_spill] sm:$0xff] %v6366_v53  ;;  %v830_v6 = vadd.f32 %v829_v22, %v6270_v2  ;;  %v831_v15 = vpop.f32.mrb[53].mxu0  ;;  %v942_v1 = vpop.f32.mrb[52].mxu1  ;;  %8385 = vst [vmem:[#allocation59_spill] sm:$0xff] %v6639_v0  ;;  %v6645_v5 = vld [vmem:[%s8150_s3 + $0xc] ss:$16 sps:$4 sm:$0xff]  }
 0x162   :  { %v832_v34 = vadd.f32 %v831_v15, %v6276_v7  ;;  %v833_v54 = vpop.f32.mrb[54].mxu0  ;;  %v943_v20 = vadd.f32 %v942_v1, %v6281_v9  ;;  %v944_v56 = vpop.f32.mrb[53].mxu1  ;;  %8386 = vst [vmem:[#allocation60_spill] sm:$0xff] %v6645_v5  ;;  %8393 = vst [vmem:[#allocation67_spill] sm:$0xff] %v6691_v33 }
 0x163   :  { %v834_v31 = vadd.f32 %v833_v54, %v6270_v2  ;;  %v835_v30 = vpop.f32.mrb[55].mxu0  ;;  %v945_v35 = vadd.f32 %v944_v56, %v6286_v19  ;;  %v946_v32 = vpop.f32.mrb[54].mxu1 }
 0x164   :  { %v836_v36 = vadd.f32 %v835_v30, %v6276_v7  ;;  %v947_v16 = vadd.f32 %v946_v32, %v6281_v9  ;;  %v948_v12 = vpop.f32.mrb[55].mxu1 }
 0x165   :  { %v6375_v57 = vpack.c.bf16 %v834_v31, %v830_v6  ;;  %v949_v22 = vadd.f32 %v948_v12, %v6286_v19 }
 0x166   :  { %v6378_v15 = vpack.c.bf16 %v836_v36, %v832_v34  ;;  %v6380_v42 = vpack.c.bf16 %v947_v16, %v943_v20 }
 0x167   :  { %8375 = vst [vmem:[#allocation50_spill] sm:$0xff] %v6375_v57  ;;  %v6382_v1 = vpack.c.bf16 %v949_v22, %v945_v35  ;;  %v6739_v57 = vld [vmem:[%s8150_s3 + $0x84] ss:$16 sps:$4 sm:$0xff]  }
 0x168   :  { %8376 = vst [vmem:[#allocation51_spill] sm:$0xff] %v6378_v15  ;;  %8377 = vst [vmem:[#allocation52_spill] sm:$0xff] %v6380_v42  ;;  %v839_v54 = vpop.f32.mrb[56].mxu0  ;;  %v6727_v15 = vld [vmem:[%s8150_s3 + $0x60] ss:$16 sps:$4 sm:$0xff]  }
 0x169   :  { %8378 = vst [vmem:[#allocation53_spill] sm:$0xff] %v6382_v1  ;;  %v840_v44 = vadd.f32 %v839_v54, %v6270_v2  ;;  %v841_v56 = vpop.f32.mrb[57].mxu0  ;;  %v952_v38 = vpop.f32.mrb[56].mxu1  ;;  %v6721_v1 = vld [vmem:[%s8150_s3 + $0x6c] ss:$16 sps:$4 sm:$0xff]   ;;  %8399 = vst [vmem:[#allocation73_spill] sm:$0xff] %v6727_v15 }
 0x16a   :  { %v842_v30 = vadd.f32 %v841_v56, %v6276_v7  ;;  %v843_v28 = vpop.f32.mrb[58].mxu0  ;;  %v953_v32 = vadd.f32 %v952_v38, %v6281_v9  ;;  %v954_v6 = vpop.f32.mrb[57].mxu1  ;;  %8398 = vst [vmem:[#allocation72_spill] sm:$0xff] %v6721_v1  ;;  %v6733_v42 = vld [vmem:[%s8150_s3 + $0x68] ss:$16 sps:$4 sm:$0xff]   ;;  %8401 = vst [vmem:[#allocation75_spill] sm:$0xff] %v6739_v57 }
 0x16b   :  { %v844_v31 = vadd.f32 %v843_v28, %v6270_v2  ;;  %v845_v12 = vpop.f32.mrb[59].mxu0  ;;  %v955_v34 = vadd.f32 %v954_v6, %v6286_v19  ;;  %v956_v20 = vpop.f32.mrb[58].mxu1  ;;  %8400 = vst [vmem:[#allocation74_spill] sm:$0xff] %v6733_v42 }
 0x16c   :  { %v846_v35 = vadd.f32 %v845_v12, %v6276_v7  ;;  %v957_v36 = vadd.f32 %v956_v20, %v6281_v9  ;;  %v958_v16 = vpop.f32.mrb[59].mxu1 }
 0x16d   :  { %v6391_v22 = vpack.c.bf16 %v844_v31, %v840_v44  ;;  %v959_v54 = vadd.f32 %v958_v16, %v6286_v19 }
 0x16e   :  { %v6394_v56 = vpack.c.bf16 %v846_v35, %v842_v30  ;;  %v6396_v24 = vpack.c.bf16 %v957_v36, %v953_v32 }
 0x16f   :  { %v6398_v38 = vpack.c.bf16 %v959_v54, %v955_v34 }
 0x170   :  { %v849_v28 = vpop.f32.mrb[60].mxu0 }
 0x171   :  { %v851_v23 = vpop.f32.mrb[61].mxu0  ;;  %v962_v14 = vpop.f32.mrb[60].mxu1  ;;  %v850_v20 = vadd.f32 %v849_v28, %v6270_v2 }
 0x172   :  { %v853_v6 = vpop.f32.mrb[62].mxu0  ;;  %v963_v29 = vadd.f32 %v962_v14, %v6281_v9  ;;  %v964_v12 = vpop.f32.mrb[61].mxu1  ;;  %v852_v32 = vadd.f32 %v851_v23, %v6276_v7  ;;  %v1172_v23 = vunpack.c.l.bf16 %v6156_v40 }
 0x173   :  { %v854_v44 = vadd.f32 %v853_v6, %v6270_v2  ;;  %v855_v31 = vpop.f32.mrb[63].mxu0  ;;  %v965_v16 = vadd.f32 %v964_v12, %v6286_v19  ;;  %v966_v30 = vpop.f32.mrb[62].mxu1  ;;  %v1170_v6 = vunpack.c.l.bf16 %v6151_v37 }
 0x174   :  { %v856_v34 = vadd.f32 %v855_v31, %v6276_v7  ;;  %v967_v35 = vadd.f32 %v966_v30, %v6281_v9  ;;  %v968_v36 = vpop.f32.mrb[63].mxu1  ;;  %v1171_v7 = vunpack.c.l.bf16 %v6154_v39 }
 0x175   :  { %v6407_v54 = vpack.c.bf16 %v854_v44, %v850_v20  ;;  %v969_v14 = vadd.f32 %v968_v36, %v6286_v19  ;;  %v1173_v20 = vunpack.c.l.bf16 %v6158_v41  ;;  %v1174_v19 = vunpack.c.h.bf16 %v6151_v37 }
 0x176   :  { %v6410_v4 = vpack.c.bf16 %v856_v34, %v852_v32  ;;  %v6412_v28 = vpack.c.bf16 %v967_v35, %v963_v29  ;;  %v1175_v35 = vunpack.c.h.bf16 %v6154_v39 }
 0x177   :  { %v6414_v2 = vpack.c.bf16 %v969_v14, %v965_v16  ;;  %v1176_v16 = vunpack.c.h.bf16 %v6156_v40 }
 0x178   :  { %v1372_v12 = vpop.f32.mrb[64].mxu0 }
 0x179   :  { %v1424_v31 = vadd.f32 %v1372_v12, %v1170_v6  ;;  %v1415_v9 = vpop.f32.mrb[64].mxu1  ;;  %v1374_v30 = vpop.f32.mrb[65].mxu0  ;;  %v1177_v6 = vunpack.c.h.bf16 %v6158_v41 }
 0x17a   :  { %v1426_v44 = vadd.f32 %v1415_v9, %v1172_v23  ;;  %v1425_v32 = vadd.f32 %v1374_v30, %v1171_v7  ;;  %v1417_v29 = vpop.f32.mrb[65].mxu1  ;;  %v1376_v34 = vpop.f32.mrb[66].mxu0 }
 0x17b   :  { %v4455_v36 = vmul.f32 -1.442695, %v1424_v31  ;;  %v1427_v14 = vadd.f32 %v1417_v29, %v1173_v20  ;;  %v1428_v18 = vadd.f32 %v1376_v34, %v1174_v19  ;;  %v1419_v17 = vpop.f32.mrb[66].mxu1  ;;  %v1378_v52 = vpop.f32.mrb[67].mxu0 }
 0x17c   :  { %v4457_v12 = vmul.f32 -1.442695, %v1425_v32  ;;  %v1430_v46 = vadd.f32 %v1419_v17, %v1176_v16  ;;  %v1429_v48 = vadd.f32 %v1378_v52, %v1175_v35  ;;  %v1421_v43 = vpop.f32.mrb[67].mxu1 }
 0x17d   :  { %4673 = vpow2.f32 %v4455_v36  ;;  %v4456_v37 = vmul.f32 -1.442695, %v1428_v18  ;;  %v1431_v23 = vadd.f32 %v1421_v43, %v1177_v6  ;;  %v4459_v40 = vmul.f32 -1.442695, %v1427_v14 }
 0x17e   :  { %4675 = vpow2.f32 %v4457_v12  ;;  %v4458_v7 = vmul.f32 -1.442695, %v1429_v48  ;;  %v1439_v6 = vunpack.c.l.bf16 %v6407_v54  ;;  %v1441_v12 = vunpack.c.l.bf16 %v6412_v28 }
 0x17f   :  { %4677 = vpow2.f32 %v4456_v37  ;;  %v4460_v39 = vmul.f32 -1.442695, %v1431_v23 }
 0x180   :  { %4679 = vpow2.f32 %v4458_v7 }
 0x181   :  { %4681 = vtanh.f32 %v1426_v44 }
 0x182   :  { %4683 = vpow2.f32 %v4459_v40  ;;  %v1440_v40 = vunpack.c.l.bf16 %v6410_v4 }
 0x183   :  { %4685 = vpow2.f32 %v4460_v39  ;;  %v1445_v39 = vunpack.c.h.bf16 %v6412_v28 }
 0x187   :  { %v4674_v31 = vpop.eup %4673 }
 0x188   :  { %v4676_v9 = vpop.eup %4675  ;;  %v1707_v30 = vadd.f32 1.0, %v4674_v31 }
 0x189   :  { %v1719_v20 = vadd.f32 1.0, %v4676_v9  ;;  %v4678_v41 = vpop.eup %4677 }
 0x18a   :  { %4687 = vrcp.f32 %v1707_v30  ;;  %v1708_v52 = vadd.f32 1.0, %v4678_v41  ;;  %v4680_v17 = vpop.eup %4679  ;;  %v1442_v41 = vunpack.c.l.bf16 %v6414_v2 }
 0x18b   :  { %4689 = vrcp.f32 %v1719_v20  ;;  %v1720_v18 = vadd.f32 1.0, %v4680_v17  ;;  %v4682_v43 = vpop.eup %4681  ;;  %v1446_v17 = vunpack.c.h.bf16 %v6414_v2 }
 0x18c   :  { %4691 = vtanh.f32 %v1430_v46  ;;  %v4684_v48 = vpop.eup %4683  ;;  %v1443_v46 = vunpack.c.h.bf16 %v6407_v54 }
 0x18d   :  { %4693 = vrcp.f32 %v1708_v52  ;;  %v4686_v19 = vpop.eup %4685  ;;  %v1733_v35 = vadd.f32 1.0, %v4684_v48  ;;  %v1444_v52 = vunpack.c.h.bf16 %v6410_v4 }
 0x18e   :  { %4695 = vrcp.f32 %v1720_v18  ;;  %v1734_v14 = vadd.f32 1.0, %v4686_v19 }
 0x18f   :  { %4697 = vrcp.f32 %v1733_v35 }
 0x190   :  { %4699 = vrcp.f32 %v1734_v14 }
 0x194   :  { %v4688_v32 = vpop.eup %4687 }
 0x195   :  { %v4690_v29 = vpop.eup %4689  ;;  %v1741_v44 = vmul.f32 %v4688_v32, %v4682_v43 }
 0x196   :  { %v4692_v34 = vpop.eup %4691  ;;  %v1739_v16 = vmul.f32 0.0, %v4690_v29 }
 0x197   :  { %v4694_v36 = vpop.eup %4693 }
 0x198   :  { %v6427_v37 = vadd.f32 %v1741_v44, %v1739_v16  ;;  %v1742_v23 = vmul.f32 %v4694_v36, %v4692_v34  ;;  %v1641_v7 = vpop.f32.mrb[68].mxu0  ;;  %v4696_v31 = vpop.eup %4695 }
 0x199   :  { %v1693_v9 = vadd.f32 %v1641_v7, %v1439_v6  ;;  %v1684_v30 = vpop.f32.mrb[68].mxu1  ;;  %v1643_v20 = vpop.f32.mrb[69].mxu0  ;;  %v1740_v54 = vmul.f32 0.0, %v4696_v31 }
 0x19a   :  { %v1695_v18 = vadd.f32 %v1684_v30, %v1441_v12  ;;  %v1694_v43 = vadd.f32 %v1643_v20, %v1440_v40  ;;  %v1686_v48 = vpop.f32.mrb[69].mxu1  ;;  %v1645_v19 = vpop.f32.mrb[70].mxu0  ;;  %4701 = vtanh.f32 %v6427_v37 }
 0x19b   :  { %v4461_v32 = vmul.f32 -1.442695, %v1693_v9  ;;  %v1696_v29 = vadd.f32 %v1686_v48, %v1442_v41  ;;  %v1697_v28 = vadd.f32 %v1645_v19, %v1443_v46  ;;  %v1688_v44 = vpop.f32.mrb[70].mxu1  ;;  %v1647_v34 = vpop.f32.mrb[71].mxu0  ;;  %v6435_v16 = vadd.f32 %v1742_v23, %v1740_v54 }
 0x19c   :  { %v4463_v36 = vmul.f32 -1.442695, %v1694_v43  ;;  %v1699_v4 = vadd.f32 %v1688_v44, %v1445_v39  ;;  %v1690_v6 = vpop.f32.mrb[71].mxu1  ;;  %v1698_v35 = vadd.f32 %v1647_v34, %v1444_v52  ;;  %v4698_v46 = vpop.eup %4697  ;;  %v6465_v44 = vld [vmem:[%s8151_s4 + $0x2c] ss:$16 sps:$4 sm:$0xff]   ;;  %v8381_v34 = vmov 0  }
 0x19d   :  { %4703 = vpow2.f32 %v4461_v32  ;;  %v4462_v2 = vmul.f32 -1.442695, %v1697_v28  ;;  %v1700_v12 = vadd.f32 %v1690_v6, %v1446_v17  ;;  %v4700_v7 = vpop.eup %4699  ;;  %v4465_v40 = vmul.f32 -1.442695, %v1696_v29  ;;  %v6447_v32 = vld [vmem:[%s8151_s4] ss:$16 sps:$4 sm:$0xff]  }
 0x19e   :  { %4705 = vtanh.f32 %v6435_v16  ;;  %v4464_v14 = vmul.f32 -1.442695, %v1698_v35  ;;  %v6453_v29 = vld [vmem:[%s8151_s4 + $0x8] ss:$16 sps:$4 sm:$0xff]   ;;  %v6459_v28 = vld [vmem:[%s8151_s4 + $0x24] ss:$16 sps:$4 sm:$0xff]  }
 0x19f   :  { %4707 = vpow2.f32 %v4463_v36  ;;  %v4466_v20 = vmul.f32 -1.442695, %v1700_v12  ;;  %v6479_v6 = vld [vmem:[%s8151_s4 + $0x28] ss:$16 sps:$4 sm:$0xff]   ;;  %v6485_v35 = vld [vmem:[%s8151_s4 + $0x44] ss:$16 sps:$4 sm:$0xff]  }
 0x1a0   :  { %4709 = vpow2.f32 %v4462_v2  ;;  %v6491_v12 = vld [vmem:[%s8151_s4 + $0x4c] ss:$16 sps:$4 sm:$0xff]  }
 0x1a1   :  { %4711 = vpow2.f32 %v4464_v14 }
 0x1a2   :  { %4713 = vtanh.f32 %v1695_v18 }
 0x1a3   :  { %4715 = vpow2.f32 %v4465_v40 }
 0x1a4   :  { %v4702_v31 = vpop.eup %4701 }
 0x1a5   :  { %v6438_v41 = vmul.f32 %v4702_v31, %v4698_v46  ;;  %v6497_v31 = vld [vmem:[%s8151_s4 + $0x40] ss:$16 sps:$4 sm:$0xff]  }
 0x1a7   :  { %v4704_v9 = vpop.eup %4703  ;;  %8379 = vst [vmem:[#allocation54_spill] sm:$0xff] %v6438_v41 }
 0x1a8   :  { %v4706_v23 = vpop.eup %4705  ;;  %v1755_v30 = vadd.f32 1.0, %v4704_v9  ;;  %v6503_v9 = vld [vmem:[%s8151_s4 + $0x48] ss:$16 sps:$4 sm:$0xff]  }
 0x1a9   :  { %v4708_v39 = vpop.eup %4707  ;;  %v6440_v52 = vmul.f32 %v4706_v23, %v4700_v7 }
 0x1aa   :  { %4717 = vrcp.f32 %v1755_v30  ;;  %v1767_v17 = vadd.f32 1.0, %v4708_v39  ;;  %v4710_v54 = vpop.eup %4709  ;;  %v6509_v39 = vld [vmem:[%s8151_s4 + $0x64] ss:$16 sps:$4 sm:$0xff]  }
 0x1ab   :  { %8380 = vst [vmem:[#allocation55_spill] sm:$0xff] %v6440_v52  ;;  %4719 = vtanh.f32 %v1699_v4  ;;  %v1822_v43 = vpack.c.bf16 %v6440_v52, %v6438_v41  ;;  %v1756_v48 = vadd.f32 1.0, %v4710_v54  ;;  %v4712_v19 = vpop.eup %4711  ;;  %v6473_v4 = vld [vmem:[%s8151_s4 + $0x20] ss:$16 sps:$4 sm:$0xff]  }
 0x1ac   :  { %4721 = vrcp.f32 %v1767_v17  ;;  %v1768_v18 = vadd.f32 1.0, %v4712_v19  ;;  %v4714_v36 = vpop.eup %4713  ;;  %v6599_v41 = vld [vmem:[%s8151_s4 + $0xc0] ss:$16 sps:$4 sm:$0xff]  }
 0x1ad   :  { %4723 = vpow2.f32 %v4466_v20  ;;  %1856 = vmatmul.mubr.bf16.vlgmr.msra.gmra.mrb[72].mxu0 %v1822_v43  ;;  %1899 = vmatmul.mubr.bf16.vlgmr.msra.gmra.mrb[72].mxu1 %v1822_v43  ;;  %v4716_v2 = vpop.eup %4715  ;;  %v6515_v20 = vld [vmem:[%s8151_s4 + $0x6c] ss:$16 sps:$4 sm:$0xff]  }
 0x1ae   :  { %4725 = vrcp.f32 %v1756_v48  ;;  %1934 = vmatpush1.bf16.msra.mxu0 %v6447_v32  ;;  %1977 = vmatpush1.bf16.msra.mxu1 %v6453_v29  ;;  %v1781_v54 = vadd.f32 1.0, %v4716_v2 }
 0x1af   :  { %1935 = vmatprep.subr.bf16.mxu0 %v6459_v28  ;;  %1978 = vmatprep.subr.bf16.mxu1 %v6465_v44  ;;  %4727 = vrcp.f32 %v1768_v18 }
 0x1b0   :  { %1965 = vmatprep.mubr.bf16.mxu0 %v8381_v34  ;;  %2008 = vmatprep.mubr.bf16.mxu1 %v8381_v34  ;;  %4729 = vrcp.f32 %v1781_v54  ;;  %v6569_v54 = vld [vmem:[%s8151_s4 + $0xac] ss:$16 sps:$4 sm:$0xff]  }
 0x1b2   :  { %1936 = vmatpush1.bf16.msra.mxu0 %v6473_v4  ;;  %1979 = vmatpush1.bf16.msra.mxu1 %v6479_v6 }
 0x1b3   :  { %1937 = vmatprep.subr.bf16.mxu0 %v6485_v35  ;;  %1980 = vmatprep.subr.bf16.mxu1 %v6491_v12 }
 0x1b4   :  { %v4718_v14 = vpop.eup %4717 }
 0x1b5   :  { %v4720_v46 = vpop.eup %4719  ;;  %v1789_v7 = vmul.f32 %v4718_v14, %v4714_v36  ;;  %v6523_v36 = vld [vmem:[%s8151_s4 + $0x60] ss:$16 sps:$4 sm:$0xff]   ;;  %v6529_v14 = vld [vmem:[%s8151_s4 + $0x68] ss:$16 sps:$4 sm:$0xff]  }
 0x1b6   :  { %v4722_v40 = vpop.eup %4721  ;;  %1938 = vmatpush1.bf16.msra.mxu0 %v6497_v31  ;;  %1981 = vmatpush1.bf16.msra.mxu1 %v6503_v9 }
 0x1b7   :  { %v4724_v23 = vpop.eup %4723  ;;  %v1787_v30 = vmul.f32 0.0, %v4722_v40  ;;  %1939 = vmatprep.subr.bf16.mxu0 %v6509_v39  ;;  %1982 = vmatprep.subr.bf16.mxu1 %v6515_v20 }
 0x1b8   :  { %v4726_v17 = vpop.eup %4725  ;;  %v1782_v18 = vadd.f32 1.0, %v4724_v23  ;;  %v6550_v23 = vld [vmem:[%s8151_s4 + $0x80] ss:$16 sps:$4 sm:$0xff]  }
 0x1b9   :  { %v6518_v43 = vadd.f32 %v1789_v7, %v1787_v30  ;;  %v1790_v48 = vmul.f32 %v4726_v17, %v4720_v46  ;;  %v4728_v19 = vpop.eup %4727  ;;  %v6535_v46 = vld [vmem:[%s8151_s4 + $0x84] ss:$16 sps:$4 sm:$0xff]   ;;  %v6541_v7 = vld [vmem:[%s8151_s4 + $0x8c] ss:$16 sps:$4 sm:$0xff]   ;;  %v6556_v30 = vld [vmem:[%s8151_s4 + $0x88] ss:$16 sps:$4 sm:$0xff]  }
 0x1ba   :  { %1940 = vmatpush1.bf16.msra.mxu0 %v6523_v36  ;;  %1983 = vmatpush1.bf16.msra.mxu1 %v6529_v14  ;;  %v1788_v2 = vmul.f32 0.0, %v4728_v19  ;;  %v6563_v17 = vld [vmem:[%s8151_s4 + $0xa4] ss:$16 sps:$4 sm:$0xff]   ;;  %v6581_v19 = vld [vmem:[%s8151_s4 + $0xa8] ss:$16 sps:$4 sm:$0xff]   ;;  %v4730_v52 = vpop.eup %4729 }
 0x1bb   :  { %1941 = vmatprep.subr.bf16.mxu0 %v6535_v46  ;;  %1984 = vmatprep.subr.bf16.mxu1 %v6541_v7  ;;  %4731 = vtanh.f32 %v6518_v43 }
 0x1bc   :  { %v6545_v40 = vadd.f32 %v1790_v48, %v1788_v2  ;;  %4733 = vrcp.f32 %v1782_v18  ;;  %v6575_v48 = vld [vmem:[%s8151_s4 + $0xa0] ss:$16 sps:$4 sm:$0xff]   ;;  %v6587_v18 = vld [vmem:[%s8151_s4 + $0xc4] ss:$16 sps:$4 sm:$0xff]   ;;  %v6593_v2 = vld [vmem:[%s8151_s4 + $0xcc] ss:$16 sps:$4 sm:$0xff]  }
 0x1be   :  { %1942 = vmatpush1.bf16.msra.mxu0 %v6550_v23  ;;  %1985 = vmatpush1.bf16.msra.mxu1 %v6556_v30  ;;  %4735 = vtanh.f32 %v6545_v40 }
 0x1bf   :  { %1943 = vmatprep.subr.bf16.mxu0 %v6563_v17  ;;  %1986 = vmatprep.subr.bf16.mxu1 %v6569_v54 }
 0x1c2   :  { %1944 = vmatpush1.bf16.msra.mxu0 %v6575_v48  ;;  %1987 = vmatpush1.bf16.msra.mxu1 %v6581_v19 }
 0x1c3   :  { %1945 = vmatprep.subr.bf16.mxu0 %v6587_v18  ;;  %1988 = vmatprep.subr.bf16.mxu1 %v6593_v2 }
 0x1c5   :  { %v4732_v3 = vpop.eup %4731 }
 0x1c6   :  { %1946 = vmatpush1.bf16.msra.mxu0 %v6599_v41  ;;  %1989 = vmatpush1.bf16.msra.mxu1 %v6605_v10  ;;  %v4734_v59 = vpop.eup %4733  ;;  %v6632_v11 = vmul.f32 %v4732_v3, %v4730_v52  ;;  %v6665_v52 = vld [vmem:[%s8150_s3 + $0x24] ss:$16 sps:$4 sm:$0xff]  }
 0x1c7   :  { %1947 = vmatprep.subr.bf16.mxu0 %v6611_v63  ;;  %1990 = vmatprep.subr.bf16.mxu1 %v6617_v55  ;;  %8389 = vst [vmem:[#allocation63_spill] sm:$0xff] %v6665_v52 }
 0x1c8   :  { %v4736_v8 = vpop.eup %4735  ;;  %8383 = vst [vmem:[#allocation57_spill] sm:$0xff] %v6632_v11 }
 0x1c9   :  { %v6634_v53 = vmul.f32 %v4736_v8, %v4734_v59  ;;  %v6653_v8 = vld [vmem:[%s8150_s3] ss:$16 sps:$4 sm:$0xff]   ;;  %v6659_v59 = vld [vmem:[%s8150_s3 + $0x8] ss:$16 sps:$4 sm:$0xff]  }
 0x1ca   :  { %1948 = vmatpush1.bf16.msra.mxu0 %v6623_v13  ;;  %1991 = vmatpush1.bf16.msra.mxu1 %v6629_v45  ;;  %8387 = vst [vmem:[#allocation61_spill] sm:$0xff] %v6653_v8  ;;  %8388 = vst [vmem:[#allocation62_spill] sm:$0xff] %v6659_v59 }
 0x1cb   :  { %8384 = vst [vmem:[#allocation58_spill] sm:$0xff] %v6634_v53  ;;  %2149 = vmatprep.subr.bf16.mxu0 %v6639_v0  ;;  %2192 = vmatprep.subr.bf16.mxu1 %v6645_v5  ;;  %v1932_v3 = vpack.c.bf16 %v6634_v53, %v6632_v11  ;;  %v6679_v53 = vld [vmem:[%s8150_s3 + $0x20] ss:$16 sps:$4 sm:$0xff]   ;;  %v6685_v11 = vld [vmem:[%s8150_s3 + $0x28] ss:$16 sps:$4 sm:$0xff]  }
 0x1cc   :  { %8391 = vst [vmem:[#allocation65_spill] sm:$0xff] %v6679_v53  ;;  %8392 = vst [vmem:[#allocation66_spill] sm:$0xff] %v6685_v11 }
 0x1cd   :  { %1966 = vmatmul.mubr.bf16.vlgmr.msra.gmra.mrb[76].mxu0 %v1932_v3  ;;  %2009 = vmatmul.mubr.bf16.vlgmr.msra.gmra.mrb[76].mxu1 %v1932_v3  ;;  %v6671_v3 = vld [vmem:[%s8150_s3 + $0x2c] ss:$16 sps:$4 sm:$0xff]  }
 0x1ce   :  { %2150 = vmatpush1.bf16.msra.mxu0 %v6653_v8  ;;  %2193 = vmatpush1.bf16.msra.mxu1 %v6659_v59  ;;  %8390 = vst [vmem:[#allocation64_spill] sm:$0xff] %v6671_v3  ;;  %v1821_v59 = vunpack.c.h.bf16 %v6174_v62 }
 0x1cf   :  { %2151 = vmatprep.subr.bf16.mxu0 %v6665_v52  ;;  %2194 = vmatprep.subr.bf16.mxu1 %v6671_v3  ;;  %v1819_v52 = vunpack.c.h.bf16 %v6170_v60 }
 0x1d0   :  { %2181 = vmatprep.mubr.bf16.mxu0 %v8381_v34  ;;  %2224 = vmatprep.mubr.bf16.mxu1 %v8381_v34 }
 0x1d2   :  { %2152 = vmatpush1.bf16.msra.mxu0 %v6679_v53  ;;  %2195 = vmatpush1.bf16.msra.mxu1 %v6685_v11 }
 0x1d3   :  { %2153 = vmatprep.subr.bf16.mxu0 %v6691_v33  ;;  %2196 = vmatprep.subr.bf16.mxu1 %v6697_v51  ;;  %v1818_v51 = vunpack.c.h.bf16 %v6167_v58  ;;  %v1820_v33 = vunpack.c.h.bf16 %v6172_v61 }
 0x1d6   :  { %2154 = vmatpush1.bf16.msra.mxu0 %v6703_v49  ;;  %2197 = vmatpush1.bf16.msra.mxu1 %v6709_v50 }
 0x1d7   :  { %2155 = vmatprep.subr.bf16.mxu0 %v6715_v47  ;;  %2198 = vmatprep.subr.bf16.mxu1 %v6721_v1  ;;  %v1817_v1 = vunpack.c.l.bf16 %v6174_v62 }
 0x1da   :  { %2156 = vmatpush1.bf16.msra.mxu0 %v6727_v15  ;;  %2199 = vmatpush1.bf16.msra.mxu1 %v6733_v42  ;;  %v1815_v15 = vunpack.c.l.bf16 %v6170_v60 }
 0x1db   :  { %2157 = vmatprep.subr.bf16.mxu0 %v6739_v57  ;;  %2200 = vmatprep.subr.bf16.mxu1 %v6745_v27  ;;  %v6769_v27 = vld [vmem:[%s8150_s3 + $0xac] ss:$16 sps:$4 sm:$0xff]   ;;  %v1816_v57 = vunpack.c.l.bf16 %v6172_v61 }
 0x1dc   :  { %8406 = vst [vmem:[#allocation80_spill] sm:$0xff] %v6769_v27 }
 0x1de   :  { %2158 = vmatpush1.bf16.msra.mxu0 %v6751_v25  ;;  %2201 = vmatpush1.bf16.msra.mxu1 %v6757_v26  ;;  %v6775_v25 = vld [vmem:[%s8150_s3 + $0xa0] ss:$16 sps:$4 sm:$0xff]   ;;  %v6781_v26 = vld [vmem:[%s8150_s3 + $0xa8] ss:$16 sps:$4 sm:$0xff]  }
 0x1df   :  { %2159 = vmatprep.subr.bf16.mxu0 %v6763_v21  ;;  %2202 = vmatprep.subr.bf16.mxu1 %v6769_v27  ;;  %8407 = vst [vmem:[#allocation81_spill] sm:$0xff] %v6775_v25  ;;  %8408 = vst [vmem:[#allocation82_spill] sm:$0xff] %v6781_v26  ;;  %v6787_v21 = vld [vmem:[%s8150_s3 + $0xc4] ss:$16 sps:$4 sm:$0xff]   ;;  %v6793_v27 = vld [vmem:[%s8150_s3 + $0xcc] ss:$16 sps:$4 sm:$0xff]  }
 0x1e0   :  { %8409 = vst [vmem:[#allocation83_spill] sm:$0xff] %v6787_v21  ;;  %8410 = vst [vmem:[#allocation84_spill] sm:$0xff] %v6793_v27 }
 0x1e2   :  { %2160 = vmatpush1.bf16.msra.mxu0 %v6775_v25  ;;  %2203 = vmatpush1.bf16.msra.mxu1 %v6781_v26  ;;  %v6799_v25 = vld [vmem:[%s8150_s3 + $0xc0] ss:$16 sps:$4 sm:$0xff]   ;;  %v6805_v26 = vld [vmem:[%s8150_s3 + $0xc8] ss:$16 sps:$4 sm:$0xff]  }
 0x1e3   :  { %2161 = vmatprep.subr.bf16.mxu0 %v6787_v21  ;;  %2204 = vmatprep.subr.bf16.mxu1 %v6793_v27  ;;  %8411 = vst [vmem:[#allocation85_spill] sm:$0xff] %v6799_v25  ;;  %8412 = vst [vmem:[#allocation86_spill] sm:$0xff] %v6805_v26  ;;  %v6811_v21 = vld [vmem:[%s8150_s3 + $0xe4] ss:$16 sps:$4 sm:$0xff]   ;;  %v6817_v27 = vld [vmem:[%s8150_s3 + $0xec] ss:$16 sps:$4 sm:$0xff]  }
 0x1e4   :  { %8413 = vst [vmem:[#allocation87_spill] sm:$0xff] %v6811_v21  ;;  %8414 = vst [vmem:[#allocation88_spill] sm:$0xff] %v6817_v27 }
 0x1e6   :  { %2162 = vmatpush1.bf16.msra.mxu0 %v6799_v25  ;;  %2205 = vmatpush1.bf16.msra.mxu1 %v6805_v26  ;;  %v6823_v25 = vld [vmem:[%s8150_s3 + $0xe0] ss:$16 sps:$4 sm:$0xff]   ;;  %v6829_v26 = vld [vmem:[%s8150_s3 + $0xe8] ss:$16 sps:$4 sm:$0xff]  }
 0x1e7   :  { %2163 = vmatprep.subr.bf16.mxu0 %v6811_v21  ;;  %2206 = vmatprep.subr.bf16.mxu1 %v6817_v27  ;;  %8415 = vst [vmem:[#allocation89_spill] sm:$0xff] %v6823_v25  ;;  %8416 = vst [vmem:[#allocation90_spill] sm:$0xff] %v6829_v26  ;;  %v6835_v21 = vld [vmem:[%s8151_s4 + $0x4] ss:$16 sps:$4 sm:$0xff]   ;;  %v6841_v27 = vld [vmem:[%s8151_s4 + $0xc] ss:$16 sps:$4 sm:$0xff]  }
 0x1e8   :  { %8417 = vst [vmem:[#allocation91_spill] sm:$0xff] %v6835_v21  ;;  %8418 = vst [vmem:[#allocation92_spill] sm:$0xff] %v6841_v27 }
 0x1ea   :  { %2164 = vmatpush1.bf16.msra.mxu0 %v6823_v25  ;;  %2207 = vmatpush1.bf16.msra.mxu1 %v6829_v26  ;;  %v1814_v25 = vunpack.c.l.bf16 %v6167_v58 }
 0x1eb   :  { %2259 = vmatprep.subr.bf16.mxu0 %v6835_v21  ;;  %2302 = vmatprep.subr.bf16.mxu1 %v6841_v27 }
 0x280   :  { %v1857_v42 = vpop.f32.mrb[72].mxu0  ;;  %v1900_v26 = vpop.f32.mrb[72].mxu1 }
 0x281   :  { %v1909_v47 = vadd.f32 %v1857_v42, %v1814_v25  ;;  %v1911_v50 = vadd.f32 %v1900_v26, %v1816_v57  ;;  %v1859_v21 = vpop.f32.mrb[73].mxu0  ;;  %v1902_v49 = vpop.f32.mrb[73].mxu1 }
 0x282   :  { %v1910_v11 = vadd.f32 %v1859_v21, %v1815_v15  ;;  %v1912_v27 = vadd.f32 %v1902_v49, %v1817_v1  ;;  %v1861_v53 = vpop.f32.mrb[74].mxu0  ;;  %v1904_v3 = vpop.f32.mrb[74].mxu1 }
 0x283   :  { %v4467_v8 = vmul.f32 -1.442695, %v1909_v47  ;;  %v1913_v5 = vadd.f32 %v1861_v53, %v1818_v51  ;;  %v1915_v0 = vadd.f32 %v1904_v3, %v1820_v33  ;;  %v1863_v45 = vpop.f32.mrb[75].mxu0  ;;  %v1906_v25 = vpop.f32.mrb[75].mxu1 }
 0x284   :  { %v4469_v26 = vmul.f32 -1.442695, %v1910_v11  ;;  %v1914_v42 = vadd.f32 %v1863_v45, %v1819_v52  ;;  %v1916_v57 = vadd.f32 %v1906_v25, %v1821_v59  ;;  %v4471_v21 = vmul.f32 -1.442695, %v1912_v27 }
 0x285   :  { %4737 = vpow2.f32 %v4467_v8  ;;  %v4468_v58 = vmul.f32 -1.442695, %v1913_v5  ;;  %v1924_v25 = vunpack.c.l.bf16 %v6391_v22 }
 0x286   :  { %4739 = vpow2.f32 %v4469_v26  ;;  %v4470_v61 = vmul.f32 -1.442695, %v1914_v42  ;;  %v4472_v62 = vmul.f32 -1.442695, %v1916_v57  ;;  %v1926_v57 = vunpack.c.l.bf16 %v6396_v24 }
 0x287   :  { %4741 = vpow2.f32 %v4468_v58  ;;  %v1928_v58 = vunpack.c.h.bf16 %v6391_v22 }
 0x288   :  { %4743 = vpow2.f32 %v4470_v61 }
 0x289   :  { %4745 = vtanh.f32 %v1911_v50 }
 0x28a   :  { %4747 = vpow2.f32 %v4471_v21 }
 0x28b   :  { %4749 = vtanh.f32 %v1915_v0 }
 0x28f   :  { %v4738_v49 = vpop.eup %4737 }
 0x290   :  { %v4740_v60 = vpop.eup %4739  ;;  %v2033_v15 = vadd.f32 1.0, %v4738_v49 }
 0x291   :  { %v2045_v47 = vadd.f32 1.0, %v4740_v60  ;;  %v4742_v51 = vpop.eup %4741 }
 0x292   :  { %4751 = vrcp.f32 %v2033_v15  ;;  %v2034_v11 = vadd.f32 1.0, %v4742_v51  ;;  %v4744_v45 = vpop.eup %4743  ;;  %v1925_v15 = vunpack.c.l.bf16 %v6394_v56 }
 0x293   :  { %4753 = vrcp.f32 %v2045_v47  ;;  %v2046_v5 = vadd.f32 1.0, %v4744_v45  ;;  %v4746_v33 = vpop.eup %4745 }
 0x294   :  { %4755 = vpow2.f32 %v4472_v62  ;;  %v4748_v53 = vpop.eup %4747  ;;  %v1927_v62 = vunpack.c.l.bf16 %v6398_v38 }
 0x295   :  { %4757 = vrcp.f32 %v2034_v11  ;;  %v4750_v27 = vpop.eup %4749  ;;  %v2059_v0 = vadd.f32 1.0, %v4748_v53 }
 0x296   :  { %4759 = vrcp.f32 %v2046_v5 }
 0x297   :  { %4761 = vrcp.f32 %v2059_v0 }
 0x29c   :  { %v4752_v1 = vpop.eup %4751 }
 0x29d   :  { %v4754_v50 = vpop.eup %4753  ;;  %v2067_v8 = vmul.f32 %v4752_v1, %v4746_v33  ;;  %v1929_v33 = vunpack.c.h.bf16 %v6394_v56 }
 0x29e   :  { %v4756_v59 = vpop.eup %4755  ;;  %v2065_v52 = vmul.f32 %v4754_v50, %v6427_v37  ;;  %v1930_v37 = vunpack.c.h.bf16 %v6396_v24  ;;  %v1931_v50 = vunpack.c.h.bf16 %v6398_v38 }
 0x29f   :  { %v4758_v3 = vpop.eup %4757  ;;  %v2060_v21 = vadd.f32 1.0, %v4756_v59 }
 0x2a0   :  { %v6854_v26 = vadd.f32 %v2067_v8, %v2065_v52  ;;  %v2068_v42 = vmul.f32 %v4758_v3, %v4750_v27  ;;  %v4760_v61 = vpop.eup %4759  ;;  %v1967_v49 = vpop.f32.mrb[76].mxu0 }
 0x2a1   :  { %v2010_v60 = vpop.f32.mrb[76].mxu1  ;;  %v2066_v47 = vmul.f32 %v4760_v61, %v6435_v16  ;;  %v2019_v51 = vadd.f32 %v1967_v49, %v1924_v25  ;;  %v1969_v45 = vpop.f32.mrb[77].mxu0 }
 0x2a2   :  { %v2021_v11 = vadd.f32 %v2010_v60, %v1926_v57  ;;  %v2012_v5 = vpop.f32.mrb[77].mxu1  ;;  %v2020_v22 = vadd.f32 %v1969_v45, %v1925_v15  ;;  %v1971_v27 = vpop.f32.mrb[78].mxu0  ;;  %4763 = vtanh.f32 %v6854_v26 }
 0x2a3   :  { %v2022_v53 = vadd.f32 %v2012_v5, %v1927_v62  ;;  %v2014_v1 = vpop.f32.mrb[78].mxu1  ;;  %v6865_v8 = vadd.f32 %v2068_v42, %v2066_v47  ;;  %v4473_v24 = vmul.f32 -1.442695, %v2019_v51  ;;  %v2023_v59 = vadd.f32 %v1971_v27, %v1928_v58  ;;  %v1973_v16 = vpop.f32.mrb[79].mxu0 }
 0x2a4   :  { %v2016_v52 = vpop.f32.mrb[79].mxu1  ;;  %4765 = vrcp.f32 %v2060_v21  ;;  %v4475_v3 = vmul.f32 -1.442695, %v2020_v22  ;;  %v2025_v25 = vadd.f32 %v2014_v1, %v1930_v37  ;;  %v2024_v57 = vadd.f32 %v1973_v16, %v1929_v33  ;;  %v4762_v38 = vpop.eup %4761 }
 0x2a5   :  { %4767 = vtanh.f32 %v6865_v8  ;;  %v4474_v56 = vmul.f32 -1.442695, %v2023_v59  ;;  %v2026_v0 = vadd.f32 %v2016_v52, %v1931_v50  ;;  %v4477_v49 = vmul.f32 -1.442695, %v2022_v53 }
 0x2a6   :  { %4769 = vpow2.f32 %v4473_v24  ;;  %v4476_v61 = vmul.f32 -1.442695, %v2024_v57 }
 0x2a7   :  { %4771 = vpow2.f32 %v4475_v3  ;;  %v4478_v51 = vmul.f32 -1.442695, %v2026_v0 }
 0x2a8   :  { %4773 = vpow2.f32 %v4474_v56 }
 0x2a9   :  { %4775 = vpow2.f32 %v4476_v61 }
 0x2aa   :  { %4777 = vtanh.f32 %v2021_v11 }
 0x2ab   :  { %4779 = vpow2.f32 %v4477_v49 }
 0x2ac   :  { %v4764_v42 = vpop.eup %4763  ;;  %4781 = vtanh.f32 %v2025_v25 }
 0x2ad   :  { %v6868_v21 = vmul.f32 %v4764_v42, %v4762_v38 }
 0x2ae   :  { %v4766_v60 = vpop.eup %4765 }
 0x2af   :  { %v4768_v58 = vpop.eup %4767  ;;  %8419 = vst [vmem:[#allocation93_spill] sm:$0xff] %v6868_v21 }
 0x2b0   :  { %v4770_v15 = vpop.eup %4769  ;;  %v6870_v62 = vmul.f32 %v4768_v58, %v4766_v60 }
 0x2b1   :  { %v4772_v37 = vpop.eup %4771  ;;  %v2081_v47 = vadd.f32 1.0, %v4770_v15  ;;  %v8421_v15 = vld [vmem:[#allocation56_spill] sm:$0xff] }
 0x2b2   :  { %8420 = vst [vmem:[#allocation94_spill] sm:$0xff] %v6870_v62  ;;  %v2093_v45 = vadd.f32 1.0, %v4772_v37  ;;  %v2148_v5 = vpack.c.bf16 %v6870_v62, %v6868_v21  ;;  %v4774_v33 = vpop.eup %4773  ;;  %v8449_v62 = vld [vmem:[#allocation84_spill] sm:$0xff]  ;;  %v8450_v21 = vld [vmem:[#allocation85_spill] sm:$0xff] }
 0x2b3   :  { %4783 = vrcp.f32 %v2081_v47  ;;  %v2082_v22 = vadd.f32 1.0, %v4774_v33  ;;  %v4776_v11 = vpop.eup %4775  ;;  %v8426_v33 = vld [vmem:[#allocation61_spill] sm:$0xff] }
 0x2b4   :  { %4785 = vrcp.f32 %v2093_v45  ;;  %2182 = vmatmul.mubr.bf16.vlgmr.msra.gmra.mrb[80].mxu0 %v2148_v5  ;;  %2225 = vmatmul.mubr.bf16.vlgmr.msra.gmra.mrb[80].mxu1 %v2148_v5  ;;  %v2094_v53 = vadd.f32 1.0, %v4776_v11  ;;  %v4778_v27 = vpop.eup %4777  ;;  %v8425_v45 = vld [vmem:[#allocation60_spill] sm:$0xff]  ;;  %v8428_v11 = vld [vmem:[#allocation63_spill] sm:$0xff] }
 0x2b5   :  { %4787 = vpow2.f32 %v4478_v51  ;;  %2260 = vmatpush1.bf16.msra.mxu0 %v6447_v32  ;;  %2303 = vmatpush1.bf16.msra.mxu1 %v6453_v29  ;;  %v4780_v1 = vpop.eup %4779  ;;  %v8424_v51 = vld [vmem:[#allocation59_spill] sm:$0xff] }
 0x2b6   :  { %4789 = vrcp.f32 %v2082_v22  ;;  %2261 = vmatprep.subr.bf16.mxu0 %v6459_v28  ;;  %2304 = vmatprep.subr.bf16.mxu1 %v6465_v44  ;;  %v4782_v50 = vpop.eup %4781  ;;  %v2107_v57 = vadd.f32 1.0, %v4780_v1  ;;  %v8427_v22 = vld [vmem:[#allocation62_spill] sm:$0xff] }
 0x2b7   :  { %2291 = vmatprep.mubr.bf16.mxu0 %v8381_v34  ;;  %2334 = vmatprep.mubr.bf16.mxu1 %v8381_v34  ;;  %4791 = vrcp.f32 %v2094_v53  ;;  %v8429_v53 = vld [vmem:[#allocation64_spill] sm:$0xff]  ;;  %v8431_v1 = vld [vmem:[#allocation66_spill] sm:$0xff] }
 0x2b8   :  { %4793 = vrcp.f32 %v2107_v57  ;;  %v8439_v57 = vld [vmem:[#allocation74_spill] sm:$0xff] }
 0x2b9   :  { %2262 = vmatpush1.bf16.msra.mxu0 %v6473_v4  ;;  %2305 = vmatpush1.bf16.msra.mxu1 %v6479_v6 }
 0x2ba   :  { %2263 = vmatprep.subr.bf16.mxu0 %v6485_v35  ;;  %2306 = vmatprep.subr.bf16.mxu1 %v6491_v12 }
 0x2bd   :  { %v4784_v24 = vpop.eup %4783  ;;  %2264 = vmatpush1.bf16.msra.mxu0 %v6497_v31  ;;  %2307 = vmatpush1.bf16.msra.mxu1 %v6503_v9 }
 0x2be   :  { %v4786_v59 = vpop.eup %4785  ;;  %v2115_v16 = vmul.f32 %v4784_v24, %v4778_v27  ;;  %2265 = vmatprep.subr.bf16.mxu0 %v6509_v39  ;;  %2308 = vmatprep.subr.bf16.mxu1 %v6515_v20  ;;  %v8430_v27 = vld [vmem:[#allocation65_spill] sm:$0xff]  ;;  %v8433_v24 = vld [vmem:[#allocation68_spill] sm:$0xff] }
 0x2bf   :  { %v4788_v52 = vpop.eup %4787  ;;  %v2113_v3 = vmul.f32 %v4786_v59, %v6518_v43  ;;  %v8434_v59 = vld [vmem:[#allocation69_spill] sm:$0xff] }
 0x2c0   :  { %v4790_v25 = vpop.eup %4789  ;;  %v2108_v38 = vadd.f32 1.0, %v4788_v52  ;;  %v8436_v52 = vld [vmem:[#allocation71_spill] sm:$0xff] }
 0x2c1   :  { %v6889_v56 = vadd.f32 %v2115_v16, %v2113_v3  ;;  %v2116_v0 = vmul.f32 %v4790_v25, %v4782_v50  ;;  %2266 = vmatpush1.bf16.msra.mxu0 %v6523_v36  ;;  %2309 = vmatpush1.bf16.msra.mxu1 %v6529_v14  ;;  %v4792_v61 = vpop.eup %4791  ;;  %v8432_v50 = vld [vmem:[#allocation67_spill] sm:$0xff]  ;;  %v8435_v16 = vld [vmem:[#allocation70_spill] sm:$0xff]  ;;  %v8437_v3 = vld [vmem:[#allocation72_spill] sm:$0xff] }
 0x2c2   :  { %2267 = vmatprep.subr.bf16.mxu0 %v6535_v46  ;;  %2310 = vmatprep.subr.bf16.mxu1 %v6541_v7  ;;  %v2114_v42 = vmul.f32 %v4792_v61, %v6545_v40  ;;  %v4794_v40 = vpop.eup %4793  ;;  %v8438_v25 = vld [vmem:[#allocation73_spill] sm:$0xff]  ;;  %v8441_v61 = vld [vmem:[#allocation76_spill] sm:$0xff] }
 0x2c3   :  { %4795 = vtanh.f32 %v6889_v56 }
 0x2c4   :  { %v6897_v43 = vadd.f32 %v2116_v0, %v2114_v42  ;;  %4797 = vrcp.f32 %v2108_v38  ;;  %v8440_v0 = vld [vmem:[#allocation75_spill] sm:$0xff]  ;;  %v8442_v38 = vld [vmem:[#allocation77_spill] sm:$0xff]  ;;  %v8443_v42 = vld [vmem:[#allocation78_spill] sm:$0xff] }
 0x2c5   :  { %2268 = vmatpush1.bf16.msra.mxu0 %v6550_v23  ;;  %2311 = vmatpush1.bf16.msra.mxu1 %v6556_v30 }
 0x2c6   :  { %2269 = vmatprep.subr.bf16.mxu0 %v6563_v17  ;;  %2312 = vmatprep.subr.bf16.mxu1 %v6569_v54  ;;  %4799 = vtanh.f32 %v6897_v43 }
 0x2c9   :  { %2270 = vmatpush1.bf16.msra.mxu0 %v6575_v48  ;;  %2313 = vmatpush1.bf16.msra.mxu1 %v6581_v19 }
 0x2ca   :  { %2271 = vmatprep.subr.bf16.mxu0 %v6587_v18  ;;  %2314 = vmatprep.subr.bf16.mxu1 %v6593_v2 }
 0x2cd   :  { %2272 = vmatpush1.bf16.msra.mxu0 %v6599_v41  ;;  %2315 = vmatpush1.bf16.msra.mxu1 %v6605_v10  ;;  %v4796_v49 = vpop.eup %4795 }
 0x2ce   :  { %2273 = vmatprep.subr.bf16.mxu0 %v6611_v63  ;;  %2316 = vmatprep.subr.bf16.mxu1 %v6617_v55  ;;  %v4798_v60 = vpop.eup %4797  ;;  %v6914_v37 = vmul.f32 %v4796_v49, %v4794_v40  ;;  %v8444_v40 = vld [vmem:[#allocation79_spill] sm:$0xff]  ;;  %v8445_v49 = vld [vmem:[#allocation80_spill] sm:$0xff] }
 0x2d0   :  { %v4800_v58 = vpop.eup %4799  ;;  %8422 = vst [vmem:[#allocation56_spill] sm:$0xff] %v6914_v37 }
 0x2d1   :  { %2274 = vmatpush1.bf16.msra.mxu0 %v6623_v13  ;;  %2317 = vmatpush1.bf16.msra.mxu1 %v8421_v15  ;;  %v6916_v47 = vmul.f32 %v4800_v58, %v4798_v60  ;;  %v8446_v60 = vld [vmem:[#allocation81_spill] sm:$0xff]  ;;  %v8447_v58 = vld [vmem:[#allocation82_spill] sm:$0xff] }
 0x2d2   :  { %2475 = vmatprep.subr.bf16.mxu0 %v8424_v51  ;;  %2518 = vmatprep.subr.bf16.mxu1 %v8425_v45 }
 0x2d3   :  { %8423 = vst [vmem:[#allocation95_spill] sm:$0xff] %v6916_v47  ;;  %v2258_v5 = vpack.c.bf16 %v6916_v47, %v6914_v37  ;;  %v8451_v47 = vld [vmem:[#allocation86_spill] sm:$0xff]  ;;  %v8452_v37 = vld [vmem:[#allocation87_spill] sm:$0xff] }
 0x2d5   :  { %2292 = vmatmul.mubr.bf16.vlgmr.msra.gmra.mrb[84].mxu0 %v2258_v5  ;;  %2335 = vmatmul.mubr.bf16.vlgmr.msra.gmra.mrb[84].mxu1 %v2258_v5  ;;  %v8448_v5 = vld [vmem:[#allocation83_spill] sm:$0xff] }
 0x2d6   :  { %2476 = vmatpush1.bf16.msra.mxu0 %v8426_v33  ;;  %2519 = vmatpush1.bf16.msra.mxu1 %v8427_v22 }
 0x2d7   :  { %2477 = vmatprep.subr.bf16.mxu0 %v8428_v11  ;;  %2520 = vmatprep.subr.bf16.mxu1 %v8429_v53 }
 0x2d8   :  { %2507 = vmatprep.mubr.bf16.mxu0 %v8381_v34  ;;  %2550 = vmatprep.mubr.bf16.mxu1 %v8381_v34 }
 0x2da   :  { %2478 = vmatpush1.bf16.msra.mxu0 %v8430_v27  ;;  %2521 = vmatpush1.bf16.msra.mxu1 %v8431_v1 }
 0x2db   :  { %2479 = vmatprep.subr.bf16.mxu0 %v8432_v50  ;;  %2522 = vmatprep.subr.bf16.mxu1 %v8433_v24 }
 0x2de   :  { %2480 = vmatpush1.bf16.msra.mxu0 %v8434_v59  ;;  %2523 = vmatpush1.bf16.msra.mxu1 %v8435_v16 }
 0x2df   :  { %2481 = vmatprep.subr.bf16.mxu0 %v8436_v52  ;;  %2524 = vmatprep.subr.bf16.mxu1 %v8437_v3 }
 0x2e2   :  { %2482 = vmatpush1.bf16.msra.mxu0 %v8438_v25  ;;  %2525 = vmatpush1.bf16.msra.mxu1 %v8439_v57  ;;  %v8460_v57 = vld [vmem:[#allocation7_spill] sm:$0xff]  ;;  %v8461_v25 = vld [vmem:[#allocation9_spill] sm:$0xff] }
 0x2e3   :  { %2483 = vmatprep.subr.bf16.mxu0 %v8440_v0  ;;  %2526 = vmatprep.subr.bf16.mxu1 %v8441_v61  ;;  %v8459_v61 = vld [vmem:[#allocation8_spill] sm:$0xff]  ;;  %v2145_v50 = vunpack.c.h.bf16 %v8460_v57  ;;  %v2147_v1 = vunpack.c.h.bf16 %v8461_v25 }
 0x2e6   :  { %2484 = vmatpush1.bf16.msra.mxu0 %v8442_v38  ;;  %2527 = vmatpush1.bf16.msra.mxu1 %v8443_v42  ;;  %v8453_v38 = vld [vmem:[#allocation88_spill] sm:$0xff]  ;;  %v8454_v42 = vld [vmem:[#allocation89_spill] sm:$0xff] }
 0x2e7   :  { %2485 = vmatprep.subr.bf16.mxu0 %v8444_v40  ;;  %2528 = vmatprep.subr.bf16.mxu1 %v8445_v49  ;;  %v8455_v40 = vld [vmem:[#allocation90_spill] sm:$0xff]  ;;  %v8456_v49 = vld [vmem:[#allocation91_spill] sm:$0xff] }
 0x2ea   :  { %2486 = vmatpush1.bf16.msra.mxu0 %v8446_v60  ;;  %2529 = vmatpush1.bf16.msra.mxu1 %v8447_v58  ;;  %v8457_v60 = vld [vmem:[#allocation92_spill] sm:$0xff]  ;;  %v8458_v58 = vld [vmem:[#allocation6_spill] sm:$0xff] }
 0x2eb   :  { %2487 = vmatprep.subr.bf16.mxu0 %v8448_v5  ;;  %2530 = vmatprep.subr.bf16.mxu1 %v8449_v62  ;;  %v2140_v5 = vunpack.c.l.bf16 %v8458_v58  ;;  %v2142_v62 = vunpack.c.l.bf16 %v8459_v61 }
 0x2ee   :  { %2488 = vmatpush1.bf16.msra.mxu0 %v8450_v21  ;;  %2531 = vmatpush1.bf16.msra.mxu1 %v8451_v47  ;;  %v2141_v47 = vunpack.c.l.bf16 %v8460_v57 }
 0x2ef   :  { %2489 = vmatprep.subr.bf16.mxu0 %v8452_v37  ;;  %2532 = vmatprep.subr.bf16.mxu1 %v8453_v38  ;;  %v2143_v37 = vunpack.c.l.bf16 %v8461_v25 }
 0x2f2   :  { %2490 = vmatpush1.bf16.msra.mxu0 %v8454_v42  ;;  %2533 = vmatpush1.bf16.msra.mxu1 %v8455_v40  ;;  %v2144_v40 = vunpack.c.h.bf16 %v8458_v58 }
 0x2f3   :  { %2585 = vmatprep.subr.bf16.mxu0 %v8456_v49  ;;  %2628 = vmatprep.subr.bf16.mxu1 %v8457_v60  ;;  %v2146_v49 = vunpack.c.h.bf16 %v8459_v61 }
 0x387   :  { %v2183_v0 = vpop.f32.mrb[80].mxu0  ;;  %v2226_v21 = vpop.f32.mrb[80].mxu1 }
 0x388   :  { %v2235_v3 = vadd.f32 %v2183_v0, %v2140_v5  ;;  %v2237_v38 = vadd.f32 %v2226_v21, %v2142_v62  ;;  %v2185_v52 = vpop.f32.mrb[81].mxu0  ;;  %v2228_v42 = vpop.f32.mrb[81].mxu1 }
 0x389   :  { %v2236_v16 = vadd.f32 %v2185_v52, %v2141_v47  ;;  %v2238_v60 = vadd.f32 %v2228_v42, %v2143_v37  ;;  %v2187_v59 = vpop.f32.mrb[82].mxu0  ;;  %v2230_v24 = vpop.f32.mrb[82].mxu1 }
 0x38a   :  { %v4479_v27 = vmul.f32 -1.442695, %v2235_v3  ;;  %v2239_v53 = vadd.f32 %v2187_v59, %v2144_v40  ;;  %v2241_v11 = vadd.f32 %v2230_v24, %v2146_v49  ;;  %v2189_v22 = vpop.f32.mrb[83].mxu0  ;;  %v2232_v0 = vpop.f32.mrb[83].mxu1 }
 0x38b   :  { %v4481_v21 = vmul.f32 -1.442695, %v2236_v16  ;;  %v2240_v62 = vadd.f32 %v2189_v22, %v2145_v50  ;;  %v2242_v5 = vadd.f32 %v2232_v0, %v2147_v1  ;;  %v4483_v37 = vmul.f32 -1.442695, %v2238_v60 }
 0x38c   :  { %4801 = vpow2.f32 %v4479_v27  ;;  %v4480_v58 = vmul.f32 -1.442695, %v2239_v53 }
 0x38d   :  { %4803 = vpow2.f32 %v4481_v21  ;;  %v4482_v61 = vmul.f32 -1.442695, %v2240_v62  ;;  %v4484_v3 = vmul.f32 -1.442695, %v2242_v5  ;;  %v8462_v62 = vld [vmem:[#allocation50_spill] sm:$0xff] }
 0x38e   :  { %4805 = vpow2.f32 %v4480_v58  ;;  %v2250_v5 = vunpack.c.l.bf16 %v8462_v62 }
 0x38f   :  { %4807 = vpow2.f32 %v4482_v61 }
 0x390   :  { %4809 = vtanh.f32 %v2237_v38 }
 0x391   :  { %4811 = vpow2.f32 %v4483_v37  ;;  %v8463_v37 = vld [vmem:[#allocation52_spill] sm:$0xff] }
 0x392   :  { %4813 = vtanh.f32 %v2241_v11 }
 0x396   :  { %v4802_v47 = vpop.eup %4801 }
 0x397   :  { %v4804_v52 = vpop.eup %4803  ;;  %v2359_v57 = vadd.f32 1.0, %v4802_v47  ;;  %v2252_v47 = vunpack.c.l.bf16 %v8463_v37 }
 0x398   :  { %v2371_v59 = vadd.f32 1.0, %v4804_v52  ;;  %v4806_v24 = vpop.eup %4805  ;;  %v8464_v52 = vld [vmem:[#allocation51_spill] sm:$0xff] }
 0x399   :  { %4815 = vrcp.f32 %v2359_v57  ;;  %v2360_v22 = vadd.f32 1.0, %v4806_v24  ;;  %v4808_v1 = vpop.eup %4807  ;;  %v2251_v57 = vunpack.c.l.bf16 %v8464_v52 }
 0x39a   :  { %4817 = vrcp.f32 %v2371_v59  ;;  %v2372_v53 = vadd.f32 1.0, %v4808_v1  ;;  %v4810_v27 = vpop.eup %4809 }
 0x39b   :  { %4819 = vpow2.f32 %v4484_v3  ;;  %v4812_v50 = vpop.eup %4811  ;;  %v2254_v3 = vunpack.c.h.bf16 %v8462_v62 }
 0x39c   :  { %4821 = vrcp.f32 %v2360_v22  ;;  %v4814_v16 = vpop.eup %4813  ;;  %v2385_v11 = vadd.f32 1.0, %v4812_v50 }
 0x39d   :  { %4823 = vrcp.f32 %v2372_v53  ;;  %v2256_v53 = vunpack.c.h.bf16 %v8463_v37 }
 0x39e   :  { %4825 = vrcp.f32 %v2385_v11 }
 0x3a3   :  { %v4816_v25 = vpop.eup %4815 }
 0x3a4   :  { %v4818_v38 = vpop.eup %4817  ;;  %v2393_v42 = vmul.f32 %v4816_v25, %v4810_v27  ;;  %v2255_v27 = vunpack.c.h.bf16 %v8464_v52 }
 0x3a5   :  { %v4820_v40 = vpop.eup %4819  ;;  %v2391_v49 = vmul.f32 %v4818_v38, %v6854_v26  ;;  %v8465_v26 = vld [vmem:[#allocation53_spill] sm:$0xff] }
 0x3a6   :  { %v4822_v60 = vpop.eup %4821  ;;  %v2386_v61 = vadd.f32 1.0, %v4820_v40  ;;  %v2253_v1 = vunpack.c.l.bf16 %v8465_v26 }
 0x3a7   :  { %v6965_v0 = vadd.f32 %v2393_v42, %v2391_v49  ;;  %v2394_v21 = vmul.f32 %v4822_v60, %v4814_v16  ;;  %v4824_v58 = vpop.eup %4823  ;;  %v2257_v42 = vunpack.c.h.bf16 %v8465_v26 }
 0x3a8   :  { %v2392_v59 = vmul.f32 %v4824_v58, %v6865_v8  ;;  %v2293_v24 = vpop.f32.mrb[84].mxu0  ;;  %v2336_v22 = vpop.f32.mrb[84].mxu1 }
 0x3a9   :  { %v2345_v50 = vadd.f32 %v2293_v24, %v2250_v5  ;;  %v2347_v16 = vadd.f32 %v2336_v22, %v2252_v47  ;;  %v2295_v25 = vpop.f32.mrb[85].mxu0  ;;  %v2338_v38 = vpop.f32.mrb[85].mxu1  ;;  %4827 = vtanh.f32 %v6965_v0 }
 0x3aa   :  { %v6977_v40 = vadd.f32 %v2394_v21, %v2392_v59  ;;  %v2346_v8 = vadd.f32 %v2295_v25, %v2251_v57  ;;  %v2348_v49 = vadd.f32 %v2338_v38, %v2253_v1  ;;  %v2297_v60 = vpop.f32.mrb[86].mxu0  ;;  %v2340_v62 = vpop.f32.mrb[86].mxu1  ;;  %4829 = vrcp.f32 %v2386_v61 }
 0x3ab   :  { %v4485_v58 = vmul.f32 -1.442695, %v2345_v50  ;;  %v2349_v37 = vadd.f32 %v2297_v60, %v2254_v3  ;;  %v2351_v33 = vadd.f32 %v2340_v62, %v2256_v53  ;;  %v2299_v52 = vpop.f32.mrb[87].mxu0  ;;  %v2342_v11 = vpop.f32.mrb[87].mxu1 }
 0x3ac   :  { %4831 = vtanh.f32 %v6977_v40  ;;  %v4487_v5 = vmul.f32 -1.442695, %v2346_v8  ;;  %v2350_v47 = vadd.f32 %v2299_v52, %v2255_v27  ;;  %v2352_v22 = vadd.f32 %v2342_v11, %v2257_v42  ;;  %v4826_v57 = vpop.eup %4825  ;;  %v8485_v11 = vld [vmem:[#allocation76_spill] sm:$0xff] }
 0x3ad   :  { %4833 = vpow2.f32 %v4485_v58  ;;  %v4486_v24 = vmul.f32 -1.442695, %v2349_v37  ;;  %v4489_v26 = vmul.f32 -1.442695, %v2348_v49 }
 0x3ae   :  { %4835 = vpow2.f32 %v4487_v5  ;;  %v4488_v21 = vmul.f32 -1.442695, %v2350_v47  ;;  %v4490_v38 = vmul.f32 -1.442695, %v2352_v22  ;;  %v8486_v5 = vld [vmem:[#allocation77_spill] sm:$0xff]  ;;  %v8487_v47 = vld [vmem:[#allocation78_spill] sm:$0xff] }
 0x3af   :  { %4837 = vpow2.f32 %v4486_v24  ;;  %v8488_v24 = vld [vmem:[#allocation79_spill] sm:$0xff]  ;;  %v8489_v22 = vld [vmem:[#allocation80_spill] sm:$0xff] }
 0x3b0   :  { %4839 = vpow2.f32 %v4488_v21  ;;  %v8490_v21 = vld [vmem:[#allocation81_spill] sm:$0xff] }
 0x3b1   :  { %4841 = vtanh.f32 %v2347_v16 }
 0x3b2   :  { %4843 = vpow2.f32 %v4489_v26  ;;  %v8493_v26 = vld [vmem:[#allocation84_spill] sm:$0xff] }
 0x3b3   :  { %v4828_v59 = vpop.eup %4827  ;;  %4845 = vtanh.f32 %v2351_v33 }
 0x3b4   :  { %v4830_v61 = vpop.eup %4829  ;;  %v6980_v53 = vmul.f32 %v4828_v59, %v4826_v57  ;;  %v8491_v57 = vld [vmem:[#allocation82_spill] sm:$0xff]  ;;  %v8492_v59 = vld [vmem:[#allocation83_spill] sm:$0xff] }
 0x3b6   :  { %v4832_v1 = vpop.eup %4831  ;;  %8466 = vst [vmem:[#allocation59_spill] sm:$0xff] %v6980_v53 }
 0x3b7   :  { %v4834_v3 = vpop.eup %4833  ;;  %v6982_v50 = vmul.f32 %v4832_v1, %v4830_v61  ;;  %v8494_v61 = vld [vmem:[#allocation85_spill] sm:$0xff]  ;;  %v8495_v1 = vld [vmem:[#allocation86_spill] sm:$0xff] }
 0x3b8   :  { %v4836_v25 = vpop.eup %4835  ;;  %v2407_v27 = vadd.f32 1.0, %v4834_v3  ;;  %v8496_v3 = vld [vmem:[#allocation87_spill] sm:$0xff] }
 0x3b9   :  { %8467 = vst [vmem:[#allocation60_spill] sm:$0xff] %v6982_v50  ;;  %v2419_v42 = vadd.f32 1.0, %v4836_v25  ;;  %v2474_v8 = vpack.c.bf16 %v6982_v50, %v6980_v53  ;;  %v4838_v60 = vpop.eup %4837  ;;  %v8497_v25 = vld [vmem:[#allocation88_spill] sm:$0xff] }
 0x3ba   :  { %4847 = vrcp.f32 %v2407_v27  ;;  %v2408_v49 = vadd.f32 1.0, %v4838_v60  ;;  %v4840_v16 = vpop.eup %4839  ;;  %v8498_v27 = vld [vmem:[#allocation89_spill] sm:$0xff]  ;;  %v8502_v60 = vld [vmem:[#allocation10_spill] sm:$0xff] }
 0x3bb   :  { %4849 = vrcp.f32 %v2419_v42  ;;  %2508 = vmatmul.mubr.bf16.vlgmr.msra.gmra.mrb[88].mxu0 %v2474_v8  ;;  %2551 = vmatmul.mubr.bf16.vlgmr.msra.gmra.mrb[88].mxu1 %v2474_v8  ;;  %v2420_v62 = vadd.f32 1.0, %v4840_v16  ;;  %v4842_v33 = vpop.eup %4841  ;;  %v8500_v42 = vld [vmem:[#allocation91_spill] sm:$0xff]  ;;  %v8501_v8 = vld [vmem:[#allocation92_spill] sm:$0xff] }
 0x3bc   :  { %4851 = vpow2.f32 %v4490_v38  ;;  %2586 = vmatpush1.bf16.msra.mxu0 %v6447_v32  ;;  %2629 = vmatpush1.bf16.msra.mxu1 %v6453_v29  ;;  %v4844_v32 = vpop.eup %4843  ;;  %v8499_v38 = vld [vmem:[#allocation90_spill] sm:$0xff]  ;;  %v8503_v16 = vld [vmem:[#allocation12_spill] sm:$0xff] }
 0x3bd   :  { %4853 = vrcp.f32 %v2408_v49  ;;  %2587 = vmatprep.subr.bf16.mxu0 %v6459_v28  ;;  %2630 = vmatprep.subr.bf16.mxu1 %v6465_v44  ;;  %v4846_v29 = vpop.eup %4845  ;;  %v2466_v49 = vunpack.c.l.bf16 %v8502_v60  ;;  %v7425_v50 = vld [vmem:[%s8150_s3 + $0xac] ss:$16 sps:$4 sm:$0xff]   ;;  %v7431_v53 = vld [vmem:[%s8150_s3 + $0xa0] ss:$16 sps:$4 sm:$0xff]  }
 0x3be   :  { %2617 = vmatprep.mubr.bf16.mxu0 %v8381_v34  ;;  %2660 = vmatprep.mubr.bf16.mxu1 %v8381_v34  ;;  %4855 = vrcp.f32 %v2420_v62  ;;  %v2468_v62 = vunpack.c.l.bf16 %v8503_v16  ;;  %8533 = vst [vmem:[#allocation78_spill] sm:$0xff] %v7425_v50  ;;  %8534 = vst [vmem:[#allocation79_spill] sm:$0xff] %v7431_v53 }
 0x3c0   :  { %2588 = vmatpush1.bf16.msra.mxu0 %v6473_v4  ;;  %2631 = vmatpush1.bf16.msra.mxu1 %v6479_v6 }
 0x3c1   :  { %2589 = vmatprep.subr.bf16.mxu0 %v6485_v35  ;;  %2632 = vmatprep.subr.bf16.mxu1 %v6491_v12  ;;  %v2433_v35 = vadd.f32 1.0, %v4844_v32 }
 0x3c3   :  { %4857 = vrcp.f32 %v2433_v35 }
 0x3c4   :  { %v4848_v58 = vpop.eup %4847  ;;  %2590 = vmatpush1.bf16.msra.mxu0 %v6497_v31  ;;  %2633 = vmatpush1.bf16.msra.mxu1 %v6503_v9 }
 0x3c5   :  { %v4850_v28 = vpop.eup %4849  ;;  %v2441_v44 = vmul.f32 %v4848_v58, %v4842_v33  ;;  %2591 = vmatprep.subr.bf16.mxu0 %v6509_v39  ;;  %2634 = vmatprep.subr.bf16.mxu1 %v6515_v20 }
 0x3c6   :  { %v4852_v4 = vpop.eup %4851  ;;  %v2439_v6 = vmul.f32 %v4850_v28, %v6889_v56  ;;  %v8480_v56 = vld [vmem:[#allocation71_spill] sm:$0xff]  ;;  %v8505_v28 = vld [vmem:[#allocation13_spill] sm:$0xff] }
 0x3c7   :  { %v4854_v37 = vpop.eup %4853  ;;  %v2434_v9 = vadd.f32 1.0, %v4852_v4 }
 0x3c8   :  { %v7001_v52 = vadd.f32 %v2441_v44, %v2439_v6  ;;  %v2442_v12 = vmul.f32 %v4854_v37, %v4846_v29  ;;  %2592 = vmatpush1.bf16.msra.mxu0 %v6523_v36  ;;  %2635 = vmatpush1.bf16.msra.mxu1 %v6529_v14  ;;  %v4856_v31 = vpop.eup %4855  ;;  %v8504_v29 = vld [vmem:[#allocation11_spill] sm:$0xff]  ;;  %v2469_v44 = vunpack.c.l.bf16 %v8505_v28 }
 0x3c9   :  { %2593 = vmatprep.subr.bf16.mxu0 %v6535_v46  ;;  %2636 = vmatprep.subr.bf16.mxu1 %v6541_v7  ;;  %v2440_v39 = vmul.f32 %v4856_v31, %v6897_v43  ;;  %v8481_v43 = vld [vmem:[#allocation72_spill] sm:$0xff]  ;;  %v2467_v58 = vunpack.c.l.bf16 %v8504_v29  ;;  %v2472_v31 = vunpack.c.h.bf16 %v8503_v16 }
 0x3ca   :  { %4859 = vtanh.f32 %v7001_v52 }
 0x3cb   :  { %v7009_v20 = vadd.f32 %v2442_v12, %v2440_v39  ;;  %4861 = vrcp.f32 %v2434_v9  ;;  %v2470_v12 = vunpack.c.h.bf16 %v8502_v60 }
 0x3cc   :  { %2594 = vmatpush1.bf16.msra.mxu0 %v6550_v23  ;;  %2637 = vmatpush1.bf16.msra.mxu1 %v6556_v30 }
 0x3cd   :  { %2595 = vmatprep.subr.bf16.mxu0 %v6563_v17  ;;  %2638 = vmatprep.subr.bf16.mxu1 %v6569_v54  ;;  %4863 = vtanh.f32 %v7009_v20  ;;  %v4858_v36 = vpop.eup %4857  ;;  %v8474_v17 = vld [vmem:[#allocation65_spill] sm:$0xff]  ;;  %v8475_v54 = vld [vmem:[#allocation66_spill] sm:$0xff] }
 0x3d0   :  { %2596 = vmatpush1.bf16.msra.mxu0 %v6575_v48  ;;  %2639 = vmatpush1.bf16.msra.mxu1 %v6581_v19  ;;  %v8476_v48 = vld [vmem:[#allocation67_spill] sm:$0xff]  ;;  %v8477_v19 = vld [vmem:[#allocation68_spill] sm:$0xff] }
 0x3d1   :  { %2597 = vmatprep.subr.bf16.mxu0 %v6587_v18  ;;  %2640 = vmatprep.subr.bf16.mxu1 %v6593_v2  ;;  %v8478_v18 = vld [vmem:[#allocation69_spill] sm:$0xff]  ;;  %v8479_v2 = vld [vmem:[#allocation70_spill] sm:$0xff] }
 0x3d4   :  { %2598 = vmatpush1.bf16.msra.mxu0 %v6599_v41  ;;  %2641 = vmatpush1.bf16.msra.mxu1 %v6605_v10  ;;  %v4860_v14 = vpop.eup %4859  ;;  %v8473_v41 = vld [vmem:[#allocation64_spill] sm:$0xff] }
 0x3d5   :  { %2599 = vmatprep.subr.bf16.mxu0 %v6611_v63  ;;  %2642 = vmatprep.subr.bf16.mxu1 %v6617_v55  ;;  %v4862_v46 = vpop.eup %4861  ;;  %v7026_v23 = vmul.f32 %v4860_v14, %v4858_v36  ;;  %v8470_v55 = vld [vmem:[#allocation61_spill] sm:$0xff]  ;;  %v8471_v63 = vld [vmem:[#allocation62_spill] sm:$0xff] }
 0x3d7   :  { %v4864_v7 = vpop.eup %4863  ;;  %8468 = vst [vmem:[#allocation6_spill] sm:$0xff] %v7026_v23 }
 0x3d8   :  { %2600 = vmatpush1.bf16.msra.mxu0 %v6623_v13  ;;  %2643 = vmatpush1.bf16.msra.mxu1 %v8421_v15  ;;  %v7028_v30 = vmul.f32 %v4864_v7, %v4862_v46  ;;  %v8472_v13 = vld [vmem:[#allocation63_spill] sm:$0xff]  ;;  %v8482_v15 = vld [vmem:[#allocation73_spill] sm:$0xff]  ;;  %v2471_v46 = vunpack.c.h.bf16 %v8504_v29  ;;  %v2473_v7 = vunpack.c.h.bf16 %v8505_v28 }
 0x3d9   :  { %2798 = vmatprep.subr.bf16.mxu0 %v8424_v51  ;;  %2841 = vmatprep.subr.bf16.mxu1 %v8425_v45  ;;  %v8483_v51 = vld [vmem:[#allocation74_spill] sm:$0xff]  ;;  %v8484_v45 = vld [vmem:[#allocation75_spill] sm:$0xff] }
 0x3da   :  { %8469 = vst [vmem:[#allocation8_spill] sm:$0xff] %v7028_v30  ;;  %v2584_v10 = vpack.c.bf16 %v7028_v30, %v7026_v23  ;;  %v7437_v30 = vld [vmem:[%s8150_s3 + $0xa8] ss:$16 sps:$4 sm:$0xff]   ;;  %v7443_v23 = vld [vmem:[%s8150_s3 + $0xc4] ss:$16 sps:$4 sm:$0xff]  }
 0x3db   :  { %8535 = vst [vmem:[#allocation80_spill] sm:$0xff] %v7437_v30  ;;  %8536 = vst [vmem:[#allocation81_spill] sm:$0xff] %v7443_v23 }
 0x3dc   :  { %2618 = vmatmul.mubr.bf16.vlgmr.msra.gmra.mrb[92].mxu0 %v2584_v10  ;;  %2661 = vmatmul.mubr.bf16.vlgmr.msra.gmra.mrb[92].mxu1 %v2584_v10 }
 0x3dd   :  { %2799 = vmatpush1.bf16.msra.mxu0 %v8470_v55  ;;  %2842 = vmatpush1.bf16.msra.mxu1 %v8471_v63 }
 0x3de   :  { %2800 = vmatprep.subr.bf16.mxu0 %v8472_v13  ;;  %2843 = vmatprep.subr.bf16.mxu1 %v8473_v41 }
 0x3df   :  { %2830 = vmatprep.mubr.bf16.mxu0 %v8381_v34  ;;  %2873 = vmatprep.mubr.bf16.mxu1 %v8381_v34 }
 0x3e1   :  { %2801 = vmatpush1.bf16.msra.mxu0 %v8474_v17  ;;  %2844 = vmatpush1.bf16.msra.mxu1 %v8475_v54 }
 0x3e2   :  { %2802 = vmatprep.subr.bf16.mxu0 %v8476_v48  ;;  %2845 = vmatprep.subr.bf16.mxu1 %v8477_v19 }
 0x3e5   :  { %2803 = vmatpush1.bf16.msra.mxu0 %v8478_v18  ;;  %2846 = vmatpush1.bf16.msra.mxu1 %v8479_v2 }
 0x3e6   :  { %2804 = vmatprep.subr.bf16.mxu0 %v8480_v56  ;;  %2847 = vmatprep.subr.bf16.mxu1 %v8481_v43 }
 0x3e9   :  { %2805 = vmatpush1.bf16.msra.mxu0 %v8482_v15  ;;  %2848 = vmatpush1.bf16.msra.mxu1 %v8483_v51 }
 0x3ea   :  { %2806 = vmatprep.subr.bf16.mxu0 %v8484_v45  ;;  %2849 = vmatprep.subr.bf16.mxu1 %v8485_v11 }
 0x3ed   :  { %2807 = vmatpush1.bf16.msra.mxu0 %v8486_v5  ;;  %2850 = vmatpush1.bf16.msra.mxu1 %v8487_v47 }
 0x3ee   :  { %2808 = vmatprep.subr.bf16.mxu0 %v8488_v24  ;;  %2851 = vmatprep.subr.bf16.mxu1 %v8489_v22 }
 0x3f1   :  { %2809 = vmatpush1.bf16.msra.mxu0 %v8490_v21  ;;  %2852 = vmatpush1.bf16.msra.mxu1 %v8491_v57 }
 0x3f2   :  { %2810 = vmatprep.subr.bf16.mxu0 %v8492_v59  ;;  %2853 = vmatprep.subr.bf16.mxu1 %v8493_v26 }
 0x3f5   :  { %2811 = vmatpush1.bf16.msra.mxu0 %v8494_v61  ;;  %2854 = vmatpush1.bf16.msra.mxu1 %v8495_v1 }
 0x3f6   :  { %2812 = vmatprep.subr.bf16.mxu0 %v8496_v3  ;;  %2855 = vmatprep.subr.bf16.mxu1 %v8497_v25 }
 0x3f9   :  { %2813 = vmatpush1.bf16.msra.mxu0 %v8498_v27  ;;  %2856 = vmatpush1.bf16.msra.mxu1 %v8499_v38 }
 0x3fa   :  { %2905 = vmatprep.subr.bf16.mxu0 %v8500_v42  ;;  %2948 = vmatprep.subr.bf16.mxu1 %v8501_v8  ;;  %v8506_v8 = vld [vmem:[#allocation46_spill] sm:$0xff] }
 0x3fb   :  { %v2576_v60 = vunpack.c.l.bf16 %v8506_v8 }
 0x48e   :  { %v2509_v33 = vpop.f32.mrb[88].mxu0  ;;  %v2552_v32 = vpop.f32.mrb[88].mxu1 }
 0x48f   :  { %v2561_v4 = vadd.f32 %v2509_v33, %v2466_v49  ;;  %v2563_v6 = vadd.f32 %v2552_v32, %v2468_v62  ;;  %v2511_v37 = vpop.f32.mrb[89].mxu0  ;;  %v2554_v35 = vpop.f32.mrb[89].mxu1  ;;  %v8507_v62 = vld [vmem:[#allocation48_spill] sm:$0xff]  ;;  %v8508_v32 = vld [vmem:[#allocation47_spill] sm:$0xff] }
 0x490   :  { %v2562_v9 = vadd.f32 %v2511_v37, %v2467_v58  ;;  %v2564_v39 = vadd.f32 %v2554_v35, %v2469_v44  ;;  %v2513_v36 = vpop.f32.mrb[90].mxu0  ;;  %v2556_v14 = vpop.f32.mrb[90].mxu1  ;;  %v2578_v33 = vunpack.c.l.bf16 %v8507_v62  ;;  %v2577_v29 = vunpack.c.l.bf16 %v8508_v32 }
 0x491   :  { %v4491_v10 = vmul.f32 -1.442695, %v2561_v4  ;;  %v2565_v55 = vadd.f32 %v2513_v36, %v2470_v12  ;;  %v2567_v63 = vadd.f32 %v2556_v14, %v2472_v31  ;;  %v2515_v13 = vpop.f32.mrb[91].mxu0  ;;  %v2558_v41 = vpop.f32.mrb[91].mxu1  ;;  %v2580_v58 = vunpack.c.h.bf16 %v8506_v8  ;;  %v7119_v8 = vld [vmem:[%s8151_s4 + $0x2c] ss:$16 sps:$4 sm:$0xff]  }
 0x492   :  { %v4493_v17 = vmul.f32 -1.442695, %v2562_v9  ;;  %v2566_v54 = vadd.f32 %v2515_v13, %v2471_v46  ;;  %v2568_v48 = vadd.f32 %v2558_v41, %v2473_v7  ;;  %v4495_v2 = vmul.f32 -1.442695, %v2564_v39 }
 0x493   :  { %4865 = vpow2.f32 %v4491_v10  ;;  %v4492_v19 = vmul.f32 -1.442695, %v2565_v55  ;;  %v2582_v37 = vunpack.c.h.bf16 %v8507_v62  ;;  %v2581_v35 = vunpack.c.h.bf16 %v8508_v32  ;;  %v7139_v62 = vld [vmem:[%s8151_s4 + $0x44] ss:$16 sps:$4 sm:$0xff]  }
 0x494   :  { %4867 = vpow2.f32 %v4493_v17  ;;  %v4494_v18 = vmul.f32 -1.442695, %v2566_v54  ;;  %v4496_v51 = vmul.f32 -1.442695, %v2568_v48 }
 0x495   :  { %4869 = vpow2.f32 %v4492_v19 }
 0x496   :  { %4871 = vpow2.f32 %v4494_v18 }
 0x497   :  { %4873 = vtanh.f32 %v2563_v6 }
 0x498   :  { %4875 = vpow2.f32 %v4495_v2 }
 0x499   :  { %4877 = vtanh.f32 %v2567_v63 }
 0x49d   :  { %v4866_v56 = vpop.eup %4865 }
 0x49e   :  { %v4868_v43 = vpop.eup %4867  ;;  %v2685_v15 = vadd.f32 1.0, %v4866_v56 }
 0x49f   :  { %v2697_v45 = vadd.f32 1.0, %v4868_v43  ;;  %v4870_v11 = vpop.eup %4869 }
 0x4a0   :  { %4879 = vrcp.f32 %v2685_v15  ;;  %v2686_v5 = vadd.f32 1.0, %v4870_v11  ;;  %v4872_v47 = vpop.eup %4871 }
 0x4a1   :  { %4881 = vrcp.f32 %v2697_v45  ;;  %v2698_v24 = vadd.f32 1.0, %v4872_v47  ;;  %v4874_v22 = vpop.eup %4873 }
 0x4a2   :  { %4883 = vpow2.f32 %v4496_v51  ;;  %v4876_v21 = vpop.eup %4875 }
 0x4a3   :  { %4885 = vrcp.f32 %v2686_v5  ;;  %v4878_v57 = vpop.eup %4877  ;;  %v2711_v27 = vadd.f32 1.0, %v4876_v21 }
 0x4a4   :  { %4887 = vrcp.f32 %v2698_v24 }
 0x4a5   :  { %4889 = vrcp.f32 %v2711_v27 }
 0x4aa   :  { %v4880_v59 = vpop.eup %4879 }
 0x4ab   :  { %v4882_v26 = vpop.eup %4881  ;;  %v2719_v61 = vmul.f32 %v4880_v59, %v4874_v22 }
 0x4ac   :  { %v4884_v1 = vpop.eup %4883  ;;  %v2717_v3 = vmul.f32 %v4882_v26, %v6965_v0  ;;  %v8509_v0 = vld [vmem:[#allocation49_spill] sm:$0xff] }
 0x4ad   :  { %v4886_v25 = vpop.eup %4885  ;;  %v2712_v16 = vadd.f32 1.0, %v4884_v1  ;;  %v2579_v6 = vunpack.c.l.bf16 %v8509_v0  ;;  %v2583_v36 = vunpack.c.h.bf16 %v8509_v0 }
 0x4ae   :  { %v7077_v38 = vadd.f32 %v2719_v61, %v2717_v3  ;;  %v2720_v42 = vmul.f32 %v4886_v25, %v4878_v57  ;;  %v4888_v49 = vpop.eup %4887  ;;  %v7101_v3 = vld [vmem:[%s8151_s4] ss:$16 sps:$4 sm:$0xff]   ;;  %v7107_v25 = vld [vmem:[%s8151_s4 + $0x8] ss:$16 sps:$4 sm:$0xff]  }
 0x4af   :  { %v2718_v28 = vmul.f32 %v4888_v49, %v6977_v40  ;;  %v2619_v44 = vpop.f32.mrb[92].mxu0  ;;  %v2662_v4 = vpop.f32.mrb[92].mxu1  ;;  %v7133_v49 = vld [vmem:[%s8151_s4 + $0x28] ss:$16 sps:$4 sm:$0xff]  }
 0x4b0   :  { %v2671_v12 = vadd.f32 %v2619_v44, %v2576_v60  ;;  %v2673_v31 = vadd.f32 %v2662_v4, %v2578_v33  ;;  %v2621_v9 = vpop.f32.mrb[93].mxu0  ;;  %v2664_v39 = vpop.f32.mrb[93].mxu1  ;;  %4891 = vtanh.f32 %v7077_v38  ;;  %v7127_v60 = vld [vmem:[%s8151_s4 + $0x20] ss:$16 sps:$4 sm:$0xff]   ;;  %v7145_v33 = vld [vmem:[%s8151_s4 + $0x4c] ss:$16 sps:$4 sm:$0xff]  }
 0x4b1   :  { %v7089_v14 = vadd.f32 %v2720_v42, %v2718_v28  ;;  %v2672_v40 = vadd.f32 %v2621_v9, %v2577_v29  ;;  %v2674_v46 = vadd.f32 %v2664_v39, %v2579_v6  ;;  %v2623_v7 = vpop.f32.mrb[94].mxu0  ;;  %v2666_v10 = vpop.f32.mrb[94].mxu1  ;;  %4893 = vrcp.f32 %v2712_v16  ;;  %v7113_v42 = vld [vmem:[%s8151_s4 + $0x24] ss:$16 sps:$4 sm:$0xff]   ;;  %v7151_v28 = vld [vmem:[%s8151_s4 + $0x40] ss:$16 sps:$4 sm:$0xff]  }
 0x4b2   :  { %v4497_v55 = vmul.f32 -1.442695, %v2671_v12  ;;  %v2675_v63 = vadd.f32 %v2623_v7, %v2580_v58  ;;  %v2677_v13 = vadd.f32 %v2666_v10, %v2582_v37  ;;  %v2625_v41 = vpop.f32.mrb[95].mxu0  ;;  %v2668_v17 = vpop.f32.mrb[95].mxu1  ;;  %v7157_v44 = vld [vmem:[%s8151_s4 + $0x48] ss:$16 sps:$4 sm:$0xff]  }
 0x4b3   :  { %4895 = vtanh.f32 %v7089_v14  ;;  %v4499_v54 = vmul.f32 -1.442695, %v2672_v40  ;;  %v2676_v48 = vadd.f32 %v2625_v41, %v2581_v35  ;;  %v2678_v18 = vadd.f32 %v2668_v17, %v2583_v36  ;;  %v4890_v56 = vpop.eup %4889  ;;  %v7163_v6 = vld [vmem:[%s8151_s4 + $0x64] ss:$16 sps:$4 sm:$0xff]   ;;  %v7169_v37 = vld [vmem:[%s8151_s4 + $0x6c] ss:$16 sps:$4 sm:$0xff]  }
 0x4b4   :  { %4897 = vpow2.f32 %v4497_v55  ;;  %v4498_v19 = vmul.f32 -1.442695, %v2675_v63  ;;  %v4501_v15 = vmul.f32 -1.442695, %v2674_v46  ;;  %v7178_v40 = vld [vmem:[%s8151_s4 + $0x60] ss:$16 sps:$4 sm:$0xff]  }
 0x4b5   :  { %4899 = vpow2.f32 %v4499_v54  ;;  %v4500_v2 = vmul.f32 -1.442695, %v2676_v48  ;;  %v4502_v21 = vmul.f32 -1.442695, %v2678_v18  ;;  %v7184_v46 = vld [vmem:[%s8151_s4 + $0x68] ss:$16 sps:$4 sm:$0xff]  }
 0x4b6   :  { %4901 = vpow2.f32 %v4498_v19  ;;  %v7190_v10 = vld [vmem:[%s8151_s4 + $0x84] ss:$16 sps:$4 sm:$0xff]   ;;  %v7196_v55 = vld [vmem:[%s8151_s4 + $0x8c] ss:$16 sps:$4 sm:$0xff]   ;;  %v7206_v41 = vld [vmem:[%s8151_s4 + $0x80] ss:$16 sps:$4 sm:$0xff]  }
 0x4b7   :  { %4903 = vpow2.f32 %v4500_v2  ;;  %v7212_v17 = vld [vmem:[%s8151_s4 + $0x88] ss:$16 sps:$4 sm:$0xff]   ;;  %v7224_v54 = vld [vmem:[%s8151_s4 + $0xac] ss:$16 sps:$4 sm:$0xff]   ;;  %v7231_v48 = vld [vmem:[%s8151_s4 + $0xa0] ss:$16 sps:$4 sm:$0xff]  }
 0x4b8   :  { %4905 = vtanh.f32 %v2673_v31  ;;  %v7237_v19 = vld [vmem:[%s8151_s4 + $0xa8] ss:$16 sps:$4 sm:$0xff]   ;;  %v7243_v18 = vld [vmem:[%s8151_s4 + $0xc4] ss:$16 sps:$4 sm:$0xff]   ;;  %v7249_v2 = vld [vmem:[%s8151_s4 + $0xcc] ss:$16 sps:$4 sm:$0xff]  }
 0x4b9   :  { %4907 = vpow2.f32 %v4501_v15 }
 0x4ba   :  { %v4892_v43 = vpop.eup %4891  ;;  %4909 = vtanh.f32 %v2677_v13 }
 0x4bb   :  { %v4894_v51 = vpop.eup %4893  ;;  %v7092_v5 = vmul.f32 %v4892_v43, %v4890_v56  ;;  %v7255_v56 = vld [vmem:[%s8151_s4 + $0xc0] ss:$16 sps:$4 sm:$0xff]   ;;  %v7261_v43 = vld [vmem:[%s8151_s4 + $0xc8] ss:$16 sps:$4 sm:$0xff]  }
 0x4bd   :  { %v4896_v45 = vpop.eup %4895 }
 0x4be   :  { %v4898_v11 = vpop.eup %4897  ;;  %v7094_v47 = vmul.f32 %v4896_v45, %v4894_v51  ;;  %v7267_v51 = vld [vmem:[%s8151_s4 + $0xe4] ss:$16 sps:$4 sm:$0xff]   ;;  %v7273_v45 = vld [vmem:[%s8151_s4 + $0xec] ss:$16 sps:$4 sm:$0xff]  }
 0x4bf   :  { %v4900_v24 = vpop.eup %4899  ;;  %v2733_v22 = vadd.f32 1.0, %v4898_v11 }
 0x4c0   :  { %v2745_v57 = vadd.f32 1.0, %v4900_v24  ;;  %v2797_v59 = vpack.c.bf16 %v7094_v47, %v7092_v5  ;;  %v4902_v26 = vpop.eup %4901 }
 0x4c1   :  { %4911 = vrcp.f32 %v2733_v22  ;;  %v2734_v61 = vadd.f32 1.0, %v4902_v26  ;;  %v4904_v1 = vpop.eup %4903 }
 0x4c2   :  { %4913 = vrcp.f32 %v2745_v57  ;;  %2831 = vmatmul.mubr.bf16.vlgmr.msra.gmra.mrb[96].mxu0 %v2797_v59  ;;  %2874 = vmatmul.mubr.bf16.vlgmr.msra.gmra.mrb[96].mxu1 %v2797_v59  ;;  %v2746_v27 = vadd.f32 1.0, %v4904_v1  ;;  %v4906_v16 = vpop.eup %4905  ;;  %v7285_v57 = vld [vmem:[%s8151_s4 + $0xe8] ss:$16 sps:$4 sm:$0xff]   ;;  %v7301_v1 = vld [vmem:[%s8150_s3 + $0xc] ss:$16 sps:$4 sm:$0xff]  }
 0x4c3   :  { %4915 = vpow2.f32 %v4502_v21  ;;  %2906 = vmatpush1.bf16.msra.mxu0 %v7101_v3  ;;  %2949 = vmatpush1.bf16.msra.mxu1 %v7107_v25  ;;  %v4908_v32 = vpop.eup %4907  ;;  %v7279_v21 = vld [vmem:[%s8151_s4 + $0xe0] ss:$16 sps:$4 sm:$0xff]   ;;  %8511 = vst [vmem:[#allocation9_spill] sm:$0xff] %v7285_v57  ;;  %8513 = vst [vmem:[#allocation52_spill] sm:$0xff] %v7301_v1 }
 0x4c4   :  { %4917 = vrcp.f32 %v2734_v61  ;;  %2907 = vmatprep.subr.bf16.mxu0 %v7113_v42  ;;  %2950 = vmatprep.subr.bf16.mxu1 %v7119_v8  ;;  %v4910_v29 = vpop.eup %4909  ;;  %v2759_v9 = vadd.f32 1.0, %v4908_v32  ;;  %8510 = vst [vmem:[#allocation7_spill] sm:$0xff] %v7279_v21  ;;  %v7295_v61 = vld [vmem:[%s8150_s3 + $0x4] ss:$16 sps:$4 sm:$0xff]   ;;  %v7315_v32 = vld [vmem:[%s8150_s3 + $0x8] ss:$16 sps:$4 sm:$0xff]  }
 0x4c5   :  { %2937 = vmatprep.mubr.bf16.mxu0 %v8381_v34  ;;  %2980 = vmatprep.mubr.bf16.mxu1 %v8381_v34  ;;  %4919 = vrcp.f32 %v2746_v27  ;;  %8512 = vst [vmem:[#allocation50_spill] sm:$0xff] %v7295_v61  ;;  %8515 = vst [vmem:[#allocation53_spill] sm:$0xff] %v7315_v32 }
 0x4c6   :  { %4921 = vrcp.f32 %v2759_v9  ;;  %v7365_v9 = vld [vmem:[%s8150_s3 + $0x48] ss:$16 sps:$4 sm:$0xff]  }
 0x4c7   :  { %2908 = vmatpush1.bf16.msra.mxu0 %v7127_v60  ;;  %2951 = vmatpush1.bf16.msra.mxu1 %v7133_v49  ;;  %8523 = vst [vmem:[#allocation68_spill] sm:$0xff] %v7365_v9 }
 0x4c8   :  { %2909 = vmatprep.subr.bf16.mxu0 %v7139_v62  ;;  %2952 = vmatprep.subr.bf16.mxu1 %v7145_v33 }
 0x4cb   :  { %v4912_v58 = vpop.eup %4911  ;;  %2910 = vmatpush1.bf16.msra.mxu0 %v7151_v28  ;;  %2953 = vmatpush1.bf16.msra.mxu1 %v7157_v44 }
 0x4cc   :  { %v4914_v4 = vpop.eup %4913  ;;  %v2767_v0 = vmul.f32 %v4912_v58, %v4906_v16  ;;  %2911 = vmatprep.subr.bf16.mxu0 %v7163_v6  ;;  %2954 = vmatprep.subr.bf16.mxu1 %v7169_v37  ;;  %v7309_v16 = vld [vmem:[%s8150_s3] ss:$16 sps:$4 sm:$0xff]   ;;  %v7327_v58 = vld [vmem:[%s8150_s3 + $0x2c] ss:$16 sps:$4 sm:$0xff]  }
 0x4cd   :  { %v4916_v35 = vpop.eup %4915  ;;  %v2765_v12 = vmul.f32 %v4914_v4, %v7001_v52  ;;  %8514 = vst [vmem:[#allocation51_spill] sm:$0xff] %v7309_v16  ;;  %8517 = vst [vmem:[#allocation62_spill] sm:$0xff] %v7327_v58  ;;  %v7335_v4 = vld [vmem:[%s8150_s3 + $0x20] ss:$16 sps:$4 sm:$0xff]  }
 0x4ce   :  { %v4918_v31 = vpop.eup %4917  ;;  %v2760_v7 = vadd.f32 1.0, %v4916_v35  ;;  %8518 = vst [vmem:[#allocation63_spill] sm:$0xff] %v7335_v4  ;;  %v7347_v35 = vld [vmem:[%s8150_s3 + $0x44] ss:$16 sps:$4 sm:$0xff]  }
 0x4cf   :  { %v7173_v39 = vadd.f32 %v2767_v0, %v2765_v12  ;;  %v2768_v36 = vmul.f32 %v4918_v31, %v4910_v29  ;;  %2912 = vmatpush1.bf16.msra.mxu0 %v7178_v40  ;;  %2955 = vmatpush1.bf16.msra.mxu1 %v7184_v46  ;;  %v4920_v52 = vpop.eup %4919  ;;  %v7321_v29 = vld [vmem:[%s8150_s3 + $0x24] ss:$16 sps:$4 sm:$0xff]   ;;  %v7341_v0 = vld [vmem:[%s8150_s3 + $0x28] ss:$16 sps:$4 sm:$0xff]   ;;  %8520 = vst [vmem:[#allocation65_spill] sm:$0xff] %v7347_v35 }
 0x4d0   :  { %2913 = vmatprep.subr.bf16.mxu0 %v7190_v10  ;;  %2956 = vmatprep.subr.bf16.mxu1 %v7196_v55  ;;  %v2766_v63 = vmul.f32 %v4920_v52, %v7009_v20  ;;  %v7218_v20 = vld [vmem:[%s8151_s4 + $0xa4] ss:$16 sps:$4 sm:$0xff]   ;;  %v4922_v15 = vpop.eup %4921  ;;  %8516 = vst [vmem:[#allocation61_spill] sm:$0xff] %v7321_v29  ;;  %8519 = vst [vmem:[#allocation64_spill] sm:$0xff] %v7341_v0  ;;  %v7353_v12 = vld [vmem:[%s8150_s3 + $0x4c] ss:$16 sps:$4 sm:$0xff]  }
 0x4d1   :  { %4923 = vtanh.f32 %v7173_v39  ;;  %8521 = vst [vmem:[#allocation66_spill] sm:$0xff] %v7353_v12  ;;  %v7359_v31 = vld [vmem:[%s8150_s3 + $0x40] ss:$16 sps:$4 sm:$0xff]   ;;  %v7377_v52 = vld [vmem:[%s8150_s3 + $0x6c] ss:$16 sps:$4 sm:$0xff]  }
 0x4d2   :  { %v7201_v13 = vadd.f32 %v2768_v36, %v2766_v63  ;;  %4925 = vrcp.f32 %v2760_v7  ;;  %8522 = vst [vmem:[#allocation67_spill] sm:$0xff] %v7359_v31  ;;  %v7371_v36 = vld [vmem:[%s8150_s3 + $0x64] ss:$16 sps:$4 sm:$0xff]   ;;  %8525 = vst [vmem:[#allocation70_spill] sm:$0xff] %v7377_v52  ;;  %v7383_v7 = vld [vmem:[%s8150_s3 + $0x60] ss:$16 sps:$4 sm:$0xff]  }
 0x4d3   :  { %2914 = vmatpush1.bf16.msra.mxu0 %v7206_v41  ;;  %2957 = vmatpush1.bf16.msra.mxu1 %v7212_v17  ;;  %8524 = vst [vmem:[#allocation69_spill] sm:$0xff] %v7371_v36  ;;  %8526 = vst [vmem:[#allocation71_spill] sm:$0xff] %v7383_v7  ;;  %v7389_v63 = vld [vmem:[%s8150_s3 + $0x68] ss:$16 sps:$4 sm:$0xff]  }
 0x4d4   :  { %2915 = vmatprep.subr.bf16.mxu0 %v7218_v20  ;;  %2958 = vmatprep.subr.bf16.mxu1 %v7224_v54  ;;  %4927 = vtanh.f32 %v7201_v13  ;;  %8527 = vst [vmem:[#allocation72_spill] sm:$0xff] %v7389_v63 }
 0x4d7   :  { %2916 = vmatpush1.bf16.msra.mxu0 %v7231_v48  ;;  %2959 = vmatpush1.bf16.msra.mxu1 %v7237_v19 }
 0x4d8   :  { %2917 = vmatprep.subr.bf16.mxu0 %v7243_v18  ;;  %2960 = vmatprep.subr.bf16.mxu1 %v7249_v2 }
 0x4db   :  { %2918 = vmatpush1.bf16.msra.mxu0 %v7255_v56  ;;  %2961 = vmatpush1.bf16.msra.mxu1 %v7261_v43  ;;  %v4924_v11 = vpop.eup %4923 }
 0x4dc   :  { %2919 = vmatprep.subr.bf16.mxu0 %v7267_v51  ;;  %2962 = vmatprep.subr.bf16.mxu1 %v7273_v45  ;;  %v4926_v24 = vpop.eup %4925  ;;  %v7288_v59 = vmul.f32 %v4924_v11, %v4922_v15  ;;  %v7395_v15 = vld [vmem:[%s8150_s3 + $0x84] ss:$16 sps:$4 sm:$0xff]   ;;  %v7401_v11 = vld [vmem:[%s8150_s3 + $0x8c] ss:$16 sps:$4 sm:$0xff]  }
 0x4dd   :  { %8528 = vst [vmem:[#allocation73_spill] sm:$0xff] %v7395_v15  ;;  %8529 = vst [vmem:[#allocation74_spill] sm:$0xff] %v7401_v11 }
 0x4de   :  { %v4928_v22 = vpop.eup %4927 }
 0x4df   :  { %2920 = vmatpush1.bf16.msra.mxu0 %v7279_v21  ;;  %2963 = vmatpush1.bf16.msra.mxu1 %v7285_v57  ;;  %v7290_v26 = vmul.f32 %v4928_v22, %v4926_v24  ;;  %v7407_v24 = vld [vmem:[%s8150_s3 + $0x80] ss:$16 sps:$4 sm:$0xff]   ;;  %v7413_v22 = vld [vmem:[%s8150_s3 + $0x88] ss:$16 sps:$4 sm:$0xff]  }
 0x4e0   :  { %3112 = vmatprep.subr.bf16.mxu0 %v7295_v61  ;;  %3155 = vmatprep.subr.bf16.mxu1 %v7301_v1  ;;  %8530 = vst [vmem:[#allocation75_spill] sm:$0xff] %v7407_v24  ;;  %8531 = vst [vmem:[#allocation76_spill] sm:$0xff] %v7413_v22 }
 0x4e1   :  { %v2904_v27 = vpack.c.bf16 %v7290_v26, %v7288_v59 }
 0x4e3   :  { %2938 = vmatmul.mubr.bf16.vlgmr.msra.gmra.mrb[100].mxu0 %v2904_v27  ;;  %2981 = vmatmul.mubr.bf16.vlgmr.msra.gmra.mrb[100].mxu1 %v2904_v27  ;;  %v7419_v27 = vld [vmem:[%s8150_s3 + $0xa4] ss:$16 sps:$4 sm:$0xff]  }
 0x4e4   :  { %3113 = vmatpush1.bf16.msra.mxu0 %v7309_v16  ;;  %3156 = vmatpush1.bf16.msra.mxu1 %v7315_v32  ;;  %8532 = vst [vmem:[#allocation77_spill] sm:$0xff] %v7419_v27 }
 0x4e5   :  { %3114 = vmatprep.subr.bf16.mxu0 %v7321_v29  ;;  %3157 = vmatprep.subr.bf16.mxu1 %v7327_v58 }
 0x4e6   :  { %3144 = vmatprep.mubr.bf16.mxu0 %v8381_v34  ;;  %3187 = vmatprep.mubr.bf16.mxu1 %v8381_v34 }
 0x4e8   :  { %3115 = vmatpush1.bf16.msra.mxu0 %v7335_v4  ;;  %3158 = vmatpush1.bf16.msra.mxu1 %v7341_v0 }
 0x4e9   :  { %3116 = vmatprep.subr.bf16.mxu0 %v7347_v35  ;;  %3159 = vmatprep.subr.bf16.mxu1 %v7353_v12 }
 0x4ec   :  { %3117 = vmatpush1.bf16.msra.mxu0 %v7359_v31  ;;  %3160 = vmatpush1.bf16.msra.mxu1 %v7365_v9 }
 0x4ed   :  { %3118 = vmatprep.subr.bf16.mxu0 %v7371_v36  ;;  %3161 = vmatprep.subr.bf16.mxu1 %v7377_v52 }
 0x4f0   :  { %3119 = vmatpush1.bf16.msra.mxu0 %v7383_v7  ;;  %3162 = vmatpush1.bf16.msra.mxu1 %v7389_v63  ;;  %v8548_v63 = vld [vmem:[#allocation15_spill] sm:$0xff]  ;;  %v8549_v7 = vld [vmem:[#allocation17_spill] sm:$0xff] }
 0x4f1   :  { %3120 = vmatprep.subr.bf16.mxu0 %v7395_v15  ;;  %3163 = vmatprep.subr.bf16.mxu1 %v7401_v11  ;;  %v2792_v52 = vunpack.c.l.bf16 %v8549_v7  ;;  %v2794_v29 = vunpack.c.h.bf16 %v8548_v63  ;;  %v2796_v32 = vunpack.c.h.bf16 %v8549_v7 }
 0x4f4   :  { %3121 = vmatpush1.bf16.msra.mxu0 %v7407_v24  ;;  %3164 = vmatpush1.bf16.msra.mxu1 %v7413_v22  ;;  %v8547_v22 = vld [vmem:[#allocation16_spill] sm:$0xff] }
 0x4f5   :  { %3122 = vmatprep.subr.bf16.mxu0 %v7419_v27  ;;  %3165 = vmatprep.subr.bf16.mxu1 %v7425_v50  ;;  %v7449_v50 = vld [vmem:[%s8150_s3 + $0xcc] ss:$16 sps:$4 sm:$0xff]   ;;  %v2791_v24 = vunpack.c.l.bf16 %v8547_v22  ;;  %v2795_v35 = vunpack.c.h.bf16 %v8547_v22 }
 0x4f6   :  { %8537 = vst [vmem:[#allocation82_spill] sm:$0xff] %v7449_v50 }
 0x4f8   :  { %3123 = vmatpush1.bf16.msra.mxu0 %v7431_v53  ;;  %3166 = vmatpush1.bf16.msra.mxu1 %v7437_v30  ;;  %v7455_v53 = vld [vmem:[%s8150_s3 + $0xc0] ss:$16 sps:$4 sm:$0xff]   ;;  %v7461_v30 = vld [vmem:[%s8150_s3 + $0xc8] ss:$16 sps:$4 sm:$0xff]  }
 0x4f9   :  { %3124 = vmatprep.subr.bf16.mxu0 %v7443_v23  ;;  %3167 = vmatprep.subr.bf16.mxu1 %v7449_v50  ;;  %8538 = vst [vmem:[#allocation83_spill] sm:$0xff] %v7455_v53  ;;  %8539 = vst [vmem:[#allocation84_spill] sm:$0xff] %v7461_v30  ;;  %v7467_v23 = vld [vmem:[%s8150_s3 + $0xe4] ss:$16 sps:$4 sm:$0xff]   ;;  %v7473_v50 = vld [vmem:[%s8150_s3 + $0xec] ss:$16 sps:$4 sm:$0xff]  }
 0x4fa   :  { %8540 = vst [vmem:[#allocation85_spill] sm:$0xff] %v7467_v23  ;;  %8541 = vst [vmem:[#allocation86_spill] sm:$0xff] %v7473_v50 }
 0x4fc   :  { %3125 = vmatpush1.bf16.msra.mxu0 %v7455_v53  ;;  %3168 = vmatpush1.bf16.msra.mxu1 %v7461_v30  ;;  %v7479_v53 = vld [vmem:[%s8150_s3 + $0xe0] ss:$16 sps:$4 sm:$0xff]   ;;  %v7485_v30 = vld [vmem:[%s8150_s3 + $0xe8] ss:$16 sps:$4 sm:$0xff]  }
 0x4fd   :  { %3126 = vmatprep.subr.bf16.mxu0 %v7467_v23  ;;  %3169 = vmatprep.subr.bf16.mxu1 %v7473_v50  ;;  %8542 = vst [vmem:[#allocation87_spill] sm:$0xff] %v7479_v53  ;;  %8543 = vst [vmem:[#allocation88_spill] sm:$0xff] %v7485_v30  ;;  %v7491_v23 = vld [vmem:[%s8151_s4 + $0x4] ss:$16 sps:$4 sm:$0xff]   ;;  %v7497_v50 = vld [vmem:[%s8151_s4 + $0xc] ss:$16 sps:$4 sm:$0xff]  }
 0x4fe   :  { %8544 = vst [vmem:[#allocation89_spill] sm:$0xff] %v7491_v23  ;;  %8545 = vst [vmem:[#allocation90_spill] sm:$0xff] %v7497_v50 }
 0x500   :  { %3127 = vmatpush1.bf16.msra.mxu0 %v7479_v53  ;;  %3170 = vmatpush1.bf16.msra.mxu1 %v7485_v30  ;;  %v12_v53 = vstv %s8153_s6  ;;  %v8546_v30 = vld [vmem:[#allocation14_spill] sm:$0xff] }
 0x501   :  { %3219 = vmatprep.subr.bf16.mxu0 %v7491_v23  ;;  %3262 = vmatprep.subr.bf16.mxu1 %v7497_v50  ;;  %13 = vst [vmem:[#allocation4] sm:$0x1] %v12_v53  ;;  %v2789_v27 = vunpack.c.l.bf16 %v8546_v30  ;;  %v2790_v23 = vunpack.c.l.bf16 %v8548_v63  ;;  %v2793_v50 = vunpack.c.h.bf16 %v8546_v30 }
 0x595   :  { %v2832_v11 = vpop.f32.mrb[96].mxu0  ;;  %v2875_v15 = vpop.f32.mrb[96].mxu1 }
 0x596   :  { %v2884_v36 = vadd.f32 %v2832_v11, %v2789_v27  ;;  %v2886_v9 = vadd.f32 %v2875_v15, %v2791_v24  ;;  %v2834_v31 = vpop.f32.mrb[97].mxu0  ;;  %v2877_v12 = vpop.f32.mrb[97].mxu1 }
 0x597   :  { %v2885_v0 = vadd.f32 %v2834_v31, %v2790_v23  ;;  %v2887_v53 = vadd.f32 %v2877_v12, %v2792_v52  ;;  %v2836_v4 = vpop.f32.mrb[98].mxu0  ;;  %v2879_v58 = vpop.f32.mrb[98].mxu1 }
 0x598   :  { %v4503_v16 = vmul.f32 -1.442695, %v2884_v36  ;;  %v2888_v1 = vadd.f32 %v2836_v4, %v2793_v50  ;;  %v2890_v61 = vadd.f32 %v2879_v58, %v2795_v35  ;;  %v2838_v57 = vpop.f32.mrb[99].mxu0  ;;  %v2881_v11 = vpop.f32.mrb[99].mxu1 }
 0x599   :  { %v4505_v15 = vmul.f32 -1.442695, %v2885_v0  ;;  %v2889_v24 = vadd.f32 %v2838_v57, %v2794_v29  ;;  %v2891_v27 = vadd.f32 %v2881_v11, %v2796_v32  ;;  %v4507_v23 = vmul.f32 -1.442695, %v2887_v53 }
 0x59a   :  { %4929 = vpow2.f32 %v4503_v16  ;;  %v4504_v30 = vmul.f32 -1.442695, %v2888_v1 }
 0x59b   :  { %4931 = vpow2.f32 %v4505_v15  ;;  %v4506_v22 = vmul.f32 -1.442695, %v2889_v24  ;;  %v4508_v1 = vmul.f32 -1.442695, %v2891_v27 }
 0x59c   :  { %4933 = vpow2.f32 %v4504_v30 }
 0x59d   :  { %4935 = vpow2.f32 %v4506_v22  ;;  %v8552_v22 = vld [vmem:[#allocation44_spill] sm:$0xff] }
 0x59e   :  { %4937 = vpow2.f32 %v4507_v23  ;;  %v2898_v27 = vunpack.c.l.bf16 %v8552_v22 }
 0x59f   :  { %4939 = vtanh.f32 %v2886_v9 }
 0x5a4   :  { %v4930_v12 = vpop.eup %4929 }
 0x5a5   :  { %v4932_v31 = vpop.eup %4931  ;;  %v3005_v52 = vadd.f32 1.0, %v4930_v12 }
 0x5a6   :  { %v3017_v36 = vadd.f32 1.0, %v4932_v31  ;;  %v4934_v50 = vpop.eup %4933 }
 0x5a7   :  { %4941 = vrcp.f32 %v3005_v52  ;;  %v3006_v58 = vadd.f32 1.0, %v4934_v50  ;;  %v4936_v4 = vpop.eup %4935 }
 0x5a8   :  { %4943 = vrcp.f32 %v3017_v36  ;;  %v3018_v57 = vadd.f32 1.0, %v4936_v4  ;;  %v4938_v16 = vpop.eup %4937  ;;  %v8553_v36 = vld [vmem:[#allocation43_spill] sm:$0xff] }
 0x5a9   :  { %4945 = vtanh.f32 %v2890_v61  ;;  %v4940_v32 = vpop.eup %4939  ;;  %v3031_v7 = vadd.f32 1.0, %v4938_v16  ;;  %v8551_v61 = vld [vmem:[#allocation42_spill] sm:$0xff]  ;;  %v2897_v50 = vunpack.c.l.bf16 %v8553_v36 }
 0x5aa   :  { %4947 = vrcp.f32 %v3006_v58  ;;  %v2896_v30 = vunpack.c.l.bf16 %v8551_v61  ;;  %v2900_v23 = vunpack.c.h.bf16 %v8551_v61  ;;  %v8554_v58 = vld [vmem:[#allocation45_spill] sm:$0xff] }
 0x5ab   :  { %4949 = vrcp.f32 %v3018_v57 }
 0x5ac   :  { %4951 = vpow2.f32 %v4508_v1 }
 0x5ad   :  { %4953 = vrcp.f32 %v3031_v7 }
 0x5b1   :  { %v4942_v29 = vpop.eup %4941 }
 0x5b2   :  { %v4944_v0 = vpop.eup %4943  ;;  %v3039_v35 = vmul.f32 %v4942_v29, %v4940_v32  ;;  %v2902_v32 = vunpack.c.h.bf16 %v8552_v22  ;;  %v2901_v29 = vunpack.c.h.bf16 %v8553_v36  ;;  %v4073_v36 = vld [vmem:[%s8154_s5] sm:$0x3] }
 0x5b3   :  { %v4946_v63 = vpop.eup %4945  ;;  %v3037_v9 = vmul.f32 %v4944_v0, %v7077_v38  ;;  %v2899_v38 = vunpack.c.l.bf16 %v8554_v58 }
 0x5b4   :  { %v4948_v53 = vpop.eup %4947 }
 0x5b5   :  { %v3040_v11 = vmul.f32 %v4948_v53, %v4946_v63  ;;  %v7512_v15 = vadd.f32 %v3039_v35, %v3037_v9  ;;  %v4950_v24 = vpop.eup %4949  ;;  %v2903_v9 = vunpack.c.h.bf16 %v8554_v58 }
 0x5b6   :  { %v3038_v12 = vmul.f32 %v4950_v24, %v7089_v14  ;;  %v2939_v31 = vpop.f32.mrb[100].mxu0  ;;  %v2982_v52 = vpop.f32.mrb[100].mxu1 }
 0x5b7   :  { %8550 = vst [vmem:[#allocation91_spill] sm:$0xff] %v7512_v15  ;;  %4955 = vtanh.f32 %v7512_v15  ;;  %v2991_v4 = vadd.f32 %v2939_v31, %v2896_v30  ;;  %v2993_v57 = vadd.f32 %v2982_v52, %v2898_v27  ;;  %v2941_v1 = vpop.f32.mrb[101].mxu0  ;;  %v2984_v16 = vpop.f32.mrb[101].mxu1 }
 0x5b8   :  { %v7523_v0 = vadd.f32 %v3040_v11, %v3038_v12  ;;  %v2992_v35 = vadd.f32 %v2941_v1, %v2897_v50  ;;  %v2994_v14 = vadd.f32 %v2984_v16, %v2899_v38  ;;  %v2943_v7 = vpop.f32.mrb[102].mxu0  ;;  %v2986_v63 = vpop.f32.mrb[102].mxu1  ;;  %v8555_v38 = vld [vmem:[#allocation5_spill] sm:$0xff] }
 0x5b9   :  { %v4509_v53 = vmul.f32 -1.442695, %v2991_v4  ;;  %v2995_v24 = vadd.f32 %v2943_v7, %v2900_v23  ;;  %v2997_v61 = vadd.f32 %v2986_v63, %v2902_v32  ;;  %v2945_v15 = vpop.f32.mrb[103].mxu0  ;;  %v2988_v30 = vpop.f32.mrb[103].mxu1  ;;  %v8556_v4 = vsub.s32 0, %v8555_v38 }
 0x5ba   :  { %v4952_v27 = vpop.eup %4951  ;;  %v4511_v31 = vmul.f32 -1.442695, %v2992_v35  ;;  %v2996_v52 = vadd.f32 %v2945_v15, %v2901_v29  ;;  %v2998_v21 = vadd.f32 %v2988_v30, %v2903_v9  ;;  %v8557_v15 = vsub.s32 1, %v8555_v38 }
 0x5bb   :  { %4957 = vpow2.f32 %v4509_v53  ;;  %v4510_v22 = vmul.f32 -1.442695, %v2995_v24  ;;  %v3032_v12 = vadd.f32 1.0, %v4952_v27  ;;  %v4954_v50 = vpop.eup %4953  ;;  %v7531_v1 = vrot.slane %v4073_v36, %v8556_v4 }
 0x5bc   :  { %4959 = vpow2.f32 %v4511_v31  ;;  %v4512_v11 = vmul.f32 -1.442695, %v2996_v52  ;;  %v7535_v16 = vrot.slane %v4073_v36, %v8557_v15  ;;  %v4513_v32 = vmul.f32 -1.442695, %v2994_v14 }
 0x5bd   :  { %4961 = vpow2.f32 %v4510_v22  ;;  %v4514_v24 = vmul.f32 -1.442695, %v2998_v21 }
 0x5be   :  { %4963 = vpow2.f32 %v4512_v11  ;;  %v4102_v35 = vmul.f32 %v7535_v16, %v7288_v59  ;;  %v4104_v21 = vmul.f32 %v7535_v16, %v7290_v26 }
 0x5bf   :  { %4965 = vrcp.f32 %v3032_v12 }
 0x5c0   :  { %4967 = vtanh.f32 %v7523_v0 }
 0x5c1   :  { %v4956_v58 = vpop.eup %4955  ;;  %4969 = vtanh.f32 %v2993_v57 }
 0x5c2   :  { %v3045_v23 = vmul.f32 %v4956_v58, %v4954_v50  ;;  %4971 = vpow2.f32 %v4513_v32 }
 0x5c3   :  { %4973 = vtanh.f32 %v2997_v61 }
 0x5c4   :  { %v4101_v29 = vmul.f32 %v7531_v1, %v3045_v23 }
 0x5c5   :  { %v4958_v7 = vpop.eup %4957 }
 0x5c6   :  { %v4141_v63 = vadd.f32 %v4102_v35, %v4101_v29  ;;  %v4960_v9 = vpop.eup %4959  ;;  %v3053_v53 = vadd.f32 1.0, %v4958_v7  ;;  %v8572_v7 = vld [vmem:[#allocation69_spill] sm:$0xff] }
 0x5c7   :  { %v3065_v30 = vadd.f32 1.0, %v4960_v9  ;;  %v4962_v27 = vpop.eup %4961  ;;  %v8574_v9 = vld [vmem:[#allocation71_spill] sm:$0xff] }
 0x5c8   :  { %4142 = vadd.xlane.f32.xlu0 %v4141_v63  ;;  %4975 = vrcp.f32 %v3053_v53  ;;  %v3054_v14 = vadd.f32 1.0, %v4962_v27  ;;  %v4964_v31 = vpop.eup %4963  ;;  %v8573_v63 = vld [vmem:[#allocation70_spill] sm:$0xff]  ;;  %v8575_v53 = vld [vmem:[#allocation72_spill] sm:$0xff]  ;;  %v8578_v27 = vld [vmem:[#allocation75_spill] sm:$0xff] }
 0x5c9   :  { %4977 = vrcp.f32 %v3065_v30  ;;  %v4966_v52 = vpop.eup %4965  ;;  %v3066_v22 = vadd.f32 1.0, %v4964_v31  ;;  %v8577_v30 = vld [vmem:[#allocation74_spill] sm:$0xff]  ;;  %v8580_v31 = vld [vmem:[#allocation77_spill] sm:$0xff] }
 0x5ca   :  { %4979 = vpow2.f32 %v4514_v24  ;;  %v4968_v59 = vpop.eup %4967  ;;  %v8576_v24 = vld [vmem:[#allocation73_spill] sm:$0xff] }
 0x5cb   :  { %4981 = vrcp.f32 %v3054_v14  ;;  %v3046_v57 = vmul.f32 %v4968_v59, %v4966_v52  ;;  %v4970_v11 = vpop.eup %4969  ;;  %v8579_v14 = vld [vmem:[#allocation76_spill] sm:$0xff]  ;;  %v8581_v52 = vld [vmem:[#allocation78_spill] sm:$0xff] }
 0x5cc   :  { %4983 = vrcp.f32 %v3066_v22  ;;  %v4972_v61 = vpop.eup %4971  ;;  %v8582_v22 = vld [vmem:[#allocation79_spill] sm:$0xff]  ;;  %v8583_v59 = vld [vmem:[#allocation80_spill] sm:$0xff] }
 0x5cd   :  { %v3111_v12 = vpack.c.bf16 %v3046_v57, %v3045_v23  ;;  %v4103_v36 = vmul.f32 %v7531_v1, %v3046_v57  ;;  %v4974_v50 = vpop.eup %4973  ;;  %v3079_v32 = vadd.f32 1.0, %v4972_v61  ;;  %v8584_v57 = vld [vmem:[#allocation81_spill] sm:$0xff]  ;;  %v8589_v61 = vld [vmem:[#allocation86_spill] sm:$0xff] }
 0x5cf   :  { %3145 = vmatmul.mubr.bf16.vlgmr.msra.gmra.mrb[104].mxu0 %v3111_v12  ;;  %3188 = vmatmul.mubr.bf16.vlgmr.msra.gmra.mrb[104].mxu1 %v3111_v12  ;;  %v4144_v58 = vadd.f32 %v4104_v21, %v4103_v36  ;;  %4985 = vrcp.f32 %v3079_v32  ;;  %v8586_v12 = vld [vmem:[#allocation83_spill] sm:$0xff]  ;;  %v8587_v36 = vld [vmem:[#allocation84_spill] sm:$0xff]  ;;  %v8588_v21 = vld [vmem:[#allocation85_spill] sm:$0xff] }
 0x5d0   :  { %3220 = vmatpush1.bf16.msra.mxu0 %v7101_v3  ;;  %3263 = vmatpush1.bf16.msra.mxu1 %v7107_v25 }
 0x5d1   :  { %4145 = vadd.xlane.f32.xlu1 %v4144_v58  ;;  %3221 = vmatprep.subr.bf16.mxu0 %v7113_v42  ;;  %v8591_v58 = vld [vmem:[#allocation88_spill] sm:$0xff] }
 0x5d2   :  { %v4976_v38 = vpop.eup %4975  ;;  %3264 = vmatprep.subr.bf16.mxu1 %v7119_v8  ;;  %3251 = vmatprep.mubr.bf16.mxu0 %v8381_v34 }
 0x5d3   :  { %v4978_v4 = vpop.eup %4977  ;;  %v3087_v15 = vmul.f32 %v4976_v38, %v4970_v11  ;;  %3294 = vmatprep.mubr.bf16.mxu1 %v8381_v34  ;;  %v8585_v11 = vld [vmem:[#allocation82_spill] sm:$0xff]  ;;  %v8592_v38 = vld [vmem:[#allocation89_spill] sm:$0xff] }
 0x5d4   :  { %v4980_v23 = vpop.eup %4979  ;;  %v3085_v29 = vmul.f32 %v4978_v4, %v7173_v39  ;;  %3222 = vmatpush1.bf16.msra.mxu0 %v7127_v60  ;;  %3265 = vmatpush1.bf16.msra.mxu1 %v7133_v49  ;;  %v8593_v4 = vld [vmem:[#allocation90_spill] sm:$0xff] }
 0x5d5   :  { %v4982_v26 = vpop.eup %4981  ;;  %v3080_v42 = vadd.f32 1.0, %v4980_v23  ;;  %3223 = vmatprep.subr.bf16.mxu0 %v7139_v62  ;;  %3266 = vmatprep.subr.bf16.mxu1 %v7145_v33 }
 0x5d6   :  { %v7551_v35 = vadd.f32 %v3087_v15, %v3085_v29  ;;  %v3088_v3 = vmul.f32 %v4982_v26, %v4974_v50  ;;  %v4984_v25 = vpop.eup %4983  ;;  %v8590_v50 = vld [vmem:[#allocation87_spill] sm:$0xff]  ;;  %v7626_v15 = vld [vmem:[#allocation4] ss:$0 sm:$0xff] }
 0x5d7   :  { %v3086_v8 = vmul.f32 %v4984_v25, %v7201_v13  ;;  %v8558_v13 = vld [vmem:[#allocation7_spill] sm:$0xff] }
 0x5d8   :  { %4987 = vtanh.f32 %v7551_v35  ;;  %3224 = vmatpush1.bf16.msra.mxu0 %v7151_v28  ;;  %3267 = vmatpush1.bf16.msra.mxu1 %v7157_v44  ;;  %v4097_v28 = vmul.f32 %v7531_v1, %v7092_v5 }
 0x5d9   :  { %v7559_v39 = vadd.f32 %v3088_v3, %v3086_v8  ;;  %4989 = vrcp.f32 %v3080_v42  ;;  %3225 = vmatprep.subr.bf16.mxu0 %v7163_v6  ;;  %3268 = vmatprep.subr.bf16.mxu1 %v7169_v37  ;;  %v4986_v60 = vpop.eup %4985 }
 0x5db   :  { %4991 = vtanh.f32 %v7559_v39 }
 0x5dc   :  { %3226 = vmatpush1.bf16.msra.mxu0 %v7178_v40  ;;  %3269 = vmatpush1.bf16.msra.mxu1 %v7184_v46 }
 0x5dd   :  { %3227 = vmatprep.subr.bf16.mxu0 %v7190_v10  ;;  %3270 = vmatprep.subr.bf16.mxu1 %v7196_v55  ;;  %v4099_v10 = vmul.f32 %v7531_v1, %v7094_v47  ;;  %v8562_v47 = vld [vmem:[#allocation51_spill] sm:$0xff] }
 0x5e0   :  { %3228 = vmatpush1.bf16.msra.mxu0 %v7206_v41  ;;  %3271 = vmatpush1.bf16.msra.mxu1 %v7212_v17  ;;  %v8559_v41 = vld [vmem:[#allocation9_spill] sm:$0xff]  ;;  %v8560_v17 = vld [vmem:[#allocation50_spill] sm:$0xff] }
 0x5e1   :  { %3229 = vmatprep.subr.bf16.mxu0 %v7218_v20  ;;  %3272 = vmatprep.subr.bf16.mxu1 %v7224_v54  ;;  %v8561_v20 = vld [vmem:[#allocation52_spill] sm:$0xff]  ;;  %v8563_v54 = vld [vmem:[#allocation53_spill] sm:$0xff] }
 0x5e2   :  { %v4988_v49 = vpop.eup %4987 }
 0x5e3   :  { %v3093_v62 = vmul.f32 %v4988_v49, %v4986_v60  ;;  %v4990_v33 = vpop.eup %4989 }
 0x5e4   :  { %3230 = vmatpush1.bf16.msra.mxu0 %v7231_v48  ;;  %3273 = vmatpush1.bf16.msra.mxu1 %v7237_v19  ;;  %v8564_v48 = vld [vmem:[#allocation61_spill] sm:$0xff]  ;;  %v8565_v19 = vld [vmem:[#allocation62_spill] sm:$0xff] }
 0x5e5   :  { %v4098_v44 = vmul.f32 %v7535_v16, %v3093_v62  ;;  %v4992_v6 = vpop.eup %4991  ;;  %3231 = vmatprep.subr.bf16.mxu0 %v7243_v18  ;;  %3274 = vmatprep.subr.bf16.mxu1 %v7249_v2  ;;  %v8566_v18 = vld [vmem:[#allocation63_spill] sm:$0xff]  ;;  %v8567_v2 = vld [vmem:[#allocation64_spill] sm:$0xff] }
 0x5e6   :  { %v3094_v40 = vmul.f32 %v4992_v6, %v4990_v33 }
 0x5e7   :  { %v4135_v37 = vadd.f32 %v4098_v44, %v4097_v28 }
 0x5e8   :  { %v3218_v46 = vpack.c.bf16 %v3094_v40, %v3093_v62  ;;  %v4100_v5 = vmul.f32 %v7535_v16, %v3094_v40  ;;  %3232 = vmatpush1.bf16.msra.mxu0 %v7255_v56  ;;  %3275 = vmatpush1.bf16.msra.mxu1 %v7261_v43  ;;  %v8568_v56 = vld [vmem:[#allocation65_spill] sm:$0xff]  ;;  %v8569_v43 = vld [vmem:[#allocation66_spill] sm:$0xff] }
 0x5e9   :  { %4136 = vadd.xlane.f32.xlu0 %v4135_v37  ;;  %3233 = vmatprep.subr.bf16.mxu0 %v7267_v51  ;;  %v8570_v51 = vld [vmem:[#allocation67_spill] sm:$0xff] }
 0x5ea   :  { %3276 = vmatprep.subr.bf16.mxu1 %v7273_v45  ;;  %v4138_v55 = vadd.f32 %v4100_v5, %v4099_v10  ;;  %v8571_v45 = vld [vmem:[#allocation68_spill] sm:$0xff] }
 0x5ec   :  { %4139 = vadd.xlane.f32.xlu1 %v4138_v55  ;;  %3234 = vmatpush1.bf16.msra.mxu0 %v8558_v13 }
 0x5ed   :  { %3277 = vmatpush1.bf16.msra.mxu1 %v8559_v41  ;;  %3426 = vmatprep.subr.bf16.mxu0 %v8560_v17 }
 0x5ee   :  { %3469 = vmatprep.subr.bf16.mxu1 %v8561_v20  ;;  %v8594_v20 = vld [vmem:[#allocation18_spill] sm:$0xff] }
 0x5ef   :  { %3252 = vmatmul.mubr.bf16.vlgmr.msra.gmra.mrb[108].mxu0 %v3218_v46 }
 0x5f0   :  { %3295 = vmatmul.mubr.bf16.vlgmr.msra.gmra.mrb[108].mxu1 %v3218_v46  ;;  %3427 = vmatpush1.bf16.msra.mxu0 %v8562_v47  ;;  %v3103_v47 = vunpack.c.l.bf16 %v8594_v20 }
 0x5f1   :  { %3470 = vmatpush1.bf16.msra.mxu1 %v8563_v54  ;;  %3428 = vmatprep.subr.bf16.mxu0 %v8564_v48  ;;  %v8595_v54 = vld [vmem:[#allocation20_spill] sm:$0xff] }
 0x5f2   :  { %3471 = vmatprep.subr.bf16.mxu1 %v8565_v19  ;;  %3458 = vmatprep.mubr.bf16.mxu0 %v8381_v34  ;;  %v3105_v48 = vunpack.c.l.bf16 %v8595_v54 }
 0x5f3   :  { %3501 = vmatprep.mubr.bf16.mxu1 %v8381_v34 }
 0x5f4   :  { %3429 = vmatpush1.bf16.msra.mxu0 %v8566_v18 }
 0x5f5   :  { %3472 = vmatpush1.bf16.msra.mxu1 %v8567_v2  ;;  %3430 = vmatprep.subr.bf16.mxu0 %v8568_v56  ;;  %v8596_v2 = vld [vmem:[#allocation19_spill] sm:$0xff] }
 0x5f6   :  { %3473 = vmatprep.subr.bf16.mxu1 %v8569_v43  ;;  %v3104_v56 = vunpack.c.l.bf16 %v8596_v2  ;;  %v8597_v43 = vld [vmem:[#allocation21_spill] sm:$0xff] }
 0x5f8   :  { %3431 = vmatpush1.bf16.msra.mxu0 %v8570_v51  ;;  %v3106_v51 = vunpack.c.l.bf16 %v8597_v43 }
 0x5f9   :  { %3474 = vmatpush1.bf16.msra.mxu1 %v8571_v45  ;;  %3432 = vmatprep.subr.bf16.mxu0 %v8572_v7 }
 0x5fa   :  { %3475 = vmatprep.subr.bf16.mxu1 %v8573_v63 }
 0x5fc   :  { %3433 = vmatpush1.bf16.msra.mxu0 %v8574_v9 }
 0x5fd   :  { %3476 = vmatpush1.bf16.msra.mxu1 %v8575_v53  ;;  %3434 = vmatprep.subr.bf16.mxu0 %v8576_v24  ;;  %v3107_v53 = vunpack.c.h.bf16 %v8594_v20  ;;  %v3109_v24 = vunpack.c.h.bf16 %v8595_v54  ;;  %v8601_v20 = vld [vmem:[#allocation39_spill] sm:$0xff] }
 0x5fe   :  { %3477 = vmatprep.subr.bf16.mxu1 %v8577_v30 }
 0x600   :  { %3435 = vmatpush1.bf16.msra.mxu0 %v8578_v27 }
 0x601   :  { %3478 = vmatpush1.bf16.msra.mxu1 %v8579_v14  ;;  %3436 = vmatprep.subr.bf16.mxu0 %v8580_v31 }
 0x602   :  { %3479 = vmatprep.subr.bf16.mxu1 %v8581_v52  ;;  %v3108_v52 = vunpack.c.h.bf16 %v8596_v2 }
 0x604   :  { %3437 = vmatpush1.bf16.msra.mxu0 %v8582_v22  ;;  %v3110_v22 = vunpack.c.h.bf16 %v8597_v43 }
 0x605   :  { %3480 = vmatpush1.bf16.msra.mxu1 %v8583_v59  ;;  %3438 = vmatprep.subr.bf16.mxu0 %v8584_v57 }
 0x606   :  { %3481 = vmatprep.subr.bf16.mxu1 %v8585_v11 }
 0x608   :  { %3439 = vmatpush1.bf16.msra.mxu0 %v8586_v12 }
 0x609   :  { %3482 = vmatpush1.bf16.msra.mxu1 %v8587_v36  ;;  %3440 = vmatprep.subr.bf16.mxu0 %v8588_v21 }
 0x60a   :  { %3483 = vmatprep.subr.bf16.mxu1 %v8589_v61 }
 0x60c   :  { %3441 = vmatpush1.bf16.msra.mxu0 %v8590_v50 }
 0x60d   :  { %3484 = vmatpush1.bf16.msra.mxu1 %v8591_v58  ;;  %3533 = vmatprep.subr.bf16.mxu0 %v8592_v38 }
 0x60e   :  { %3576 = vmatprep.subr.bf16.mxu1 %v8593_v4 }
 0x655   :  { %v4143_v32 = vpop.xlane.xlu0 %4142 }
 0x656   :  { %v4180_v23 = vadd.f32 %v7626_v15, %v4143_v32 }
 0x658   :  { %v4560_v29 = vmul.f32 -1.442695, %v4180_v23 }
 0x65a   :  { %4993 = vpow2.f32 %v4560_v29 }
 0x65e   :  { %v4146_v26 = vpop.xlane.xlu1 %4145 }
 0x65f   :  { %v4181_v3 = vadd.f32 %v7626_v15, %v4146_v26 }
 0x661   :  { %v4561_v42 = vmul.f32 -1.442695, %v4181_v3 }
 0x663   :  { %4995 = vpow2.f32 %v4561_v42 }
 0x664   :  { %v4994_v25 = vpop.eup %4993 }
 0x665   :  { %v4244_v8 = vadd.f32 1.0, %v4994_v25 }
 0x667   :  { %4997 = vrcp.f32 %v4244_v8 }
 0x66d   :  { %v4996_v60 = vpop.eup %4995 }
 0x66e   :  { %v4245_v62 = vadd.f32 1.0, %v4996_v60 }
 0x670   :  { %4999 = vrcp.f32 %v4245_v62 }
 0x671   :  { %v4998_v49 = vpop.eup %4997 }
 0x672   :  { %4293 = vst.msk [vmem:[%s8155_s7 + $0x40] sm:$0xff] %vm4284_vm0, %v4998_v49 }
 0x676   :  { %v4137_v33 = vpop.xlane.xlu0 %4136 }
 0x677   :  { %v4178_v28 = vadd.f32 %v7626_v15, %v4137_v33 }
 0x679   :  { %v4558_v44 = vmul.f32 -1.442695, %v4178_v28  ;;  %v4140_v6 = vpop.xlane.xlu1 %4139 }
 0x67a   :  { %v4179_v37 = vadd.f32 %v7626_v15, %v4140_v6  ;;  %v5000_v40 = vpop.eup %4999 }
 0x67b   :  { %5001 = vpow2.f32 %v4558_v44  ;;  %4294 = vst.msk [vmem:[%s8155_s7 + $0x48] sm:$0xff] %vm4284_vm0, %v5000_v40 }
 0x67c   :  { %v4559_v46 = vmul.f32 -1.442695, %v4179_v37 }
 0x67e   :  { %5003 = vpow2.f32 %v4559_v46  ;;  %v8598_v46 = vld [vmem:[#allocation91_spill] sm:$0xff] }
 0x685   :  { %v5002_v10 = vpop.eup %5001 }
 0x686   :  { %v4242_v5 = vadd.f32 1.0, %v5002_v10 }
 0x688   :  { %5005 = vrcp.f32 %v4242_v5  ;;  %v5004_v55 = vpop.eup %5003  ;;  %v8599_v5 = vld [vmem:[#allocation38_spill] sm:$0xff] }
 0x689   :  { %v4243_v13 = vadd.f32 1.0, %v5004_v55  ;;  %v3210_v55 = vunpack.c.l.bf16 %v8599_v5  ;;  %v3214_v54 = vunpack.c.h.bf16 %v8599_v5  ;;  %v8604_v5 = vld [vmem:[#allocation8_spill] sm:$0xff] }
 0x68b   :  { %5007 = vrcp.f32 %v4243_v13 }
 0x692   :  { %v5006_v41 = vpop.eup %5005 }
 0x693   :  { %4291 = vst.msk [vmem:[%s8155_s7 + $0x30] sm:$0xff] %vm4284_vm0, %v5006_v41  ;;  %v8600_v41 = vld [vmem:[#allocation40_spill] sm:$0xff] }
 0x695   :  { %v5008_v17 = vpop.eup %5007 }
 0x696   :  { %4292 = vst.msk [vmem:[%s8155_s7 + $0x38] sm:$0xff] %vm4284_vm0, %v5008_v17  ;;  %v3212_v17 = vunpack.c.l.bf16 %v8600_v41 }
 0x6a2   :  { %v3146_v19 = vpop.f32.mrb[104].mxu0  ;;  %v3189_v18 = vpop.f32.mrb[104].mxu1 }
 0x6a3   :  { %v3198_v45 = vadd.f32 %v3146_v19, %v3103_v47  ;;  %v3200_v7 = vadd.f32 %v3189_v18, %v3105_v48  ;;  %v3148_v63 = vpop.f32.mrb[105].mxu0  ;;  %v3191_v9 = vpop.f32.mrb[105].mxu1  ;;  %v3211_v47 = vunpack.c.l.bf16 %v8601_v20  ;;  %v3216_v48 = vunpack.c.h.bf16 %v8600_v41 }
 0x6a4   :  { %v3199_v30 = vadd.f32 %v3148_v63, %v3104_v56  ;;  %v3201_v27 = vadd.f32 %v3191_v9, %v3106_v51  ;;  %v3150_v14 = vpop.f32.mrb[106].mxu0  ;;  %v3193_v31 = vpop.f32.mrb[106].mxu1  ;;  %v8602_v51 = vld [vmem:[#allocation41_spill] sm:$0xff] }
 0x6a5   :  { %v4515_v59 = vmul.f32 -1.442695, %v3198_v45  ;;  %v3202_v57 = vadd.f32 %v3150_v14, %v3107_v53  ;;  %v3204_v11 = vadd.f32 %v3193_v31, %v3109_v24  ;;  %v3152_v12 = vpop.f32.mrb[107].mxu0  ;;  %v3195_v36 = vpop.f32.mrb[107].mxu1  ;;  %v3213_v45 = vunpack.c.l.bf16 %v8602_v51 }
 0x6a6   :  { %v4517_v21 = vmul.f32 -1.442695, %v3199_v30  ;;  %v3203_v61 = vadd.f32 %v3152_v12, %v3108_v52  ;;  %v3205_v50 = vadd.f32 %v3195_v36, %v3110_v22  ;;  %v4519_v4 = vmul.f32 -1.442695, %v3201_v27 }
 0x6a7   :  { %5009 = vpow2.f32 %v4515_v59  ;;  %v4516_v58 = vmul.f32 -1.442695, %v3202_v57  ;;  %v3215_v30 = vunpack.c.h.bf16 %v8601_v20  ;;  %v3217_v36 = vunpack.c.h.bf16 %v8602_v51 }
 0x6a8   :  { %5011 = vpow2.f32 %v4517_v21  ;;  %v4518_v38 = vmul.f32 -1.442695, %v3203_v61  ;;  %v4520_v32 = vmul.f32 -1.442695, %v3205_v50 }
 0x6a9   :  { %5013 = vpow2.f32 %v4516_v58 }
 0x6aa   :  { %5015 = vpow2.f32 %v4518_v38 }
 0x6ab   :  { %5017 = vtanh.f32 %v3200_v7 }
 0x6ac   :  { %5019 = vpow2.f32 %v4519_v4 }
 0x6ad   :  { %5021 = vpow2.f32 %v4520_v32 }
 0x6b1   :  { %v5010_v23 = vpop.eup %5009 }
 0x6b2   :  { %v5012_v29 = vpop.eup %5011  ;;  %v3319_v26 = vadd.f32 1.0, %v5010_v23 }
 0x6b3   :  { %v3331_v3 = vadd.f32 1.0, %v5012_v29  ;;  %v5014_v25 = vpop.eup %5013 }
 0x6b4   :  { %5023 = vrcp.f32 %v3319_v26  ;;  %v3320_v42 = vadd.f32 1.0, %v5014_v25  ;;  %v5016_v8 = vpop.eup %5015 }
 0x6b5   :  { %5025 = vrcp.f32 %v3331_v3  ;;  %v3332_v60 = vadd.f32 1.0, %v5016_v8  ;;  %v5018_v49 = vpop.eup %5017  ;;  %v8603_v8 = vld [vmem:[#allocation6_spill] sm:$0xff] }
 0x6b6   :  { %5027 = vtanh.f32 %v3204_v11  ;;  %v5020_v62 = vpop.eup %5019 }
 0x6b7   :  { %5029 = vrcp.f32 %v3320_v42  ;;  %v5022_v33 = vpop.eup %5021  ;;  %v3345_v37 = vadd.f32 1.0, %v5020_v62 }
 0x6b8   :  { %5031 = vrcp.f32 %v3332_v60  ;;  %v3346_v2 = vadd.f32 1.0, %v5022_v33  ;;  %v4106_v60 = vmul.f32 %v7535_v16, %v8603_v8 }
 0x6b9   :  { %5033 = vrcp.f32 %v3345_v37 }
 0x6be   :  { %v5024_v28 = vpop.eup %5023 }
 0x6bf   :  { %v5026_v44 = vpop.eup %5025  ;;  %v3353_v6 = vmul.f32 %v5024_v28, %v5018_v49 }
 0x6c0   :  { %v5028_v40 = vpop.eup %5027  ;;  %v3351_v10 = vmul.f32 %v5026_v44, %v8598_v46 }
 0x6c1   :  { %v5030_v13 = vpop.eup %5029 }
 0x6c2   :  { %v7662_v19 = vadd.f32 %v3353_v6, %v3351_v10  ;;  %v3354_v18 = vmul.f32 %v5030_v13, %v5028_v40  ;;  %v3253_v56 = vpop.f32.mrb[108].mxu0  ;;  %v5032_v7 = vpop.eup %5031 }
 0x6c3   :  { %v3296_v43 = vpop.f32.mrb[108].mxu1  ;;  %v3305_v63 = vadd.f32 %v3253_v56, %v3210_v55  ;;  %v3255_v53 = vpop.f32.mrb[109].mxu0  ;;  %v3352_v27 = vmul.f32 %v5032_v7, %v7523_v0  ;;  %v4108_v55 = vmul.f32 %v7535_v16, %v8604_v5  ;;  %v7707_v56 = vld [vmem:[%s8151_s4 + $0x20] ss:$16 sps:$4 sm:$0xff]   ;;  %v7725_v7 = vld [vmem:[%s8151_s4 + $0x4c] ss:$16 sps:$4 sm:$0xff]  }
 0x6c4   :  { %v3307_v9 = vadd.f32 %v3296_v43, %v3212_v17  ;;  %v3298_v24 = vpop.f32.mrb[109].mxu1  ;;  %v3306_v14 = vadd.f32 %v3255_v53, %v3211_v47  ;;  %v3257_v52 = vpop.f32.mrb[110].mxu0  ;;  %5035 = vtanh.f32 %v7662_v19  ;;  %v7681_v47 = vld [vmem:[%s8151_s4] ss:$16 sps:$4 sm:$0xff]   ;;  %v7713_v43 = vld [vmem:[%s8151_s4 + $0x28] ss:$16 sps:$4 sm:$0xff]  }
 0x6c5   :  { %v3308_v31 = vadd.f32 %v3298_v24, %v3213_v45  ;;  %v3300_v22 = vpop.f32.mrb[110].mxu1  ;;  %v4521_v59 = vmul.f32 -1.442695, %v3305_v63  ;;  %v3309_v57 = vadd.f32 %v3257_v52, %v3214_v54  ;;  %v3259_v12 = vpop.f32.mrb[111].mxu0  ;;  %v7669_v61 = vadd.f32 %v3354_v18, %v3352_v27  ;;  %v7687_v54 = vld [vmem:[%s8151_s4 + $0x8] ss:$16 sps:$4 sm:$0xff]  }
 0x6c6   :  { %v3311_v11 = vadd.f32 %v3300_v22, %v3216_v48  ;;  %v3302_v21 = vpop.f32.mrb[111].mxu1  ;;  %5037 = vrcp.f32 %v3346_v2  ;;  %v4523_v50 = vmul.f32 -1.442695, %v3306_v14  ;;  %v3310_v58 = vadd.f32 %v3259_v12, %v3215_v30  ;;  %v5034_v32 = vpop.eup %5033  ;;  %v7693_v48 = vld [vmem:[%s8151_s4 + $0x24] ss:$16 sps:$4 sm:$0xff]  }
 0x6c7   :  { %5039 = vpow2.f32 %v4521_v59  ;;  %v4522_v0 = vmul.f32 -1.442695, %v3309_v57  ;;  %v3312_v38 = vadd.f32 %v3302_v21, %v3217_v36  ;;  %v4525_v29 = vmul.f32 -1.442695, %v3308_v31  ;;  %v7699_v18 = vld [vmem:[%s8151_s4 + $0x2c] ss:$16 sps:$4 sm:$0xff]  }
 0x6c8   :  { %5041 = vtanh.f32 %v7669_v61  ;;  %v4524_v4 = vmul.f32 -1.442695, %v3310_v58  ;;  %v7719_v45 = vld [vmem:[%s8151_s4 + $0x44] ss:$16 sps:$4 sm:$0xff]   ;;  %v7731_v27 = vld [vmem:[%s8151_s4 + $0x40] ss:$16 sps:$4 sm:$0xff]  }
 0x6c9   :  { %5043 = vpow2.f32 %v4523_v50  ;;  %v4526_v28 = vmul.f32 -1.442695, %v3312_v38  ;;  %v7737_v14 = vld [vmem:[%s8151_s4 + $0x48] ss:$16 sps:$4 sm:$0xff]   ;;  %v7744_v22 = vld [vmem:[%s8151_s4 + $0x64] ss:$16 sps:$4 sm:$0xff]  }
 0x6ca   :  { %5045 = vpow2.f32 %v4522_v0  ;;  %v7750_v59 = vld [vmem:[%s8151_s4 + $0x6c] ss:$16 sps:$4 sm:$0xff]   ;;  %v7758_v21 = vld [vmem:[%s8151_s4 + $0x60] ss:$16 sps:$4 sm:$0xff]   ;;  %v7764_v50 = vld [vmem:[%s8151_s4 + $0x68] ss:$16 sps:$4 sm:$0xff]  }
 0x6cb   :  { %5047 = vpow2.f32 %v4524_v4  ;;  %v7771_v0 = vld [vmem:[%s8151_s4 + $0x84] ss:$16 sps:$4 sm:$0xff]   ;;  %v7777_v38 = vld [vmem:[%s8151_s4 + $0x8c] ss:$16 sps:$4 sm:$0xff]   ;;  %v7862_v5 = vld [vmem:[%s8151_s4 + $0xe0] ss:$16 sps:$4 sm:$0xff]  }
 0x6cc   :  { %5049 = vtanh.f32 %v3307_v9 }
 0x6cd   :  { %5051 = vpow2.f32 %v4525_v29  ;;  %v7805_v29 = vld [vmem:[%s8151_s4 + $0xac] ss:$16 sps:$4 sm:$0xff]  }
 0x6ce   :  { %v5036_v23 = vpop.eup %5035 }
 0x6cf   :  { %v3359_v26 = vmul.f32 %v5036_v23, %v5034_v32  ;;  %v7792_v32 = vld [vmem:[%s8151_s4 + $0x88] ss:$16 sps:$4 sm:$0xff]   ;;  %v7799_v23 = vld [vmem:[%s8151_s4 + $0xa4] ss:$16 sps:$4 sm:$0xff]  }
 0x6d0   :  { %v5038_v3 = vpop.eup %5037 }
 0x6d1   :  { %v5040_v25 = vpop.eup %5039  ;;  %v4105_v42 = vmul.f32 %v7531_v1, %v3359_v26 }
 0x6d2   :  { %v5042_v49 = vpop.eup %5041  ;;  %v3367_v62 = vadd.f32 1.0, %v5040_v25  ;;  %v7823_v25 = vld [vmem:[%s8151_s4 + $0xc4] ss:$16 sps:$4 sm:$0xff]  }
 0x6d3   :  { %v5044_v33 = vpop.eup %5043  ;;  %v4147_v44 = vadd.f32 %v4106_v60, %v4105_v42  ;;  %v3360_v6 = vmul.f32 %v5042_v49, %v5038_v3  ;;  %v7817_v3 = vld [vmem:[%s8151_s4 + $0xa8] ss:$16 sps:$4 sm:$0xff]   ;;  %v7829_v42 = vld [vmem:[%s8151_s4 + $0xcc] ss:$16 sps:$4 sm:$0xff]   ;;  %v7835_v49 = vld [vmem:[%s8151_s4 + $0xc0] ss:$16 sps:$4 sm:$0xff]  }
 0x6d4   :  { %5053 = vrcp.f32 %v3367_v62  ;;  %v3379_v37 = vadd.f32 1.0, %v5044_v33  ;;  %v5046_v40 = vpop.eup %5045  ;;  %v7841_v62 = vld [vmem:[%s8151_s4 + $0xc8] ss:$16 sps:$4 sm:$0xff]  }
 0x6d5   :  { %5055 = vtanh.f32 %v3311_v11  ;;  %4148 = vadd.xlane.f32.xlu0 %v4147_v44  ;;  %v3425_v46 = vpack.c.bf16 %v3360_v6, %v3359_v26  ;;  %v4107_v10 = vmul.f32 %v7531_v1, %v3360_v6  ;;  %v3368_v13 = vadd.f32 1.0, %v5046_v40  ;;  %v5048_v41 = vpop.eup %5047  ;;  %v7811_v26 = vld [vmem:[%s8151_s4 + $0xa0] ss:$16 sps:$4 sm:$0xff]   ;;  %v7853_v44 = vld [vmem:[%s8151_s4 + $0xec] ss:$16 sps:$4 sm:$0xff]  }
 0x6d6   :  { %5057 = vrcp.f32 %v3379_v37  ;;  %v3380_v20 = vadd.f32 1.0, %v5048_v41  ;;  %v5050_v2 = vpop.eup %5049  ;;  %v8605_v37 = vld [vmem:[#allocation59_spill] sm:$0xff] }
 0x6d7   :  { %5059 = vpow2.f32 %v4526_v28  ;;  %3459 = vmatmul.mubr.bf16.vlgmr.msra.gmra.mrb[112].mxu0 %v3425_v46  ;;  %3502 = vmatmul.mubr.bf16.vlgmr.msra.gmra.mrb[112].mxu1 %v3425_v46  ;;  %v4150_v17 = vadd.f32 %v4108_v55, %v4107_v10  ;;  %v5052_v51 = vpop.eup %5051  ;;  %v7847_v28 = vld [vmem:[%s8151_s4 + $0xe4] ss:$16 sps:$4 sm:$0xff]   ;;  %v4093_v40 = vmul.f32 %v7531_v1, %v8605_v37  ;;  %v7868_v55 = vld [vmem:[%s8151_s4 + $0xe8] ss:$16 sps:$4 sm:$0xff]  }
 0x6d8   :  { %5061 = vrcp.f32 %v3368_v13  ;;  %3534 = vmatpush1.bf16.msra.mxu0 %v7681_v47  ;;  %3577 = vmatpush1.bf16.msra.mxu1 %v7687_v54  ;;  %v3393_v30 = vadd.f32 1.0, %v5052_v51  ;;  %8606 = vst [vmem:[#allocation92_spill] sm:$0xff] %v7868_v55  ;;  %v8607_v51 = vld [vmem:[#allocation60_spill] sm:$0xff] }
 0x6d9   :  { %4151 = vadd.xlane.f32.xlu1 %v4150_v17  ;;  %3535 = vmatprep.subr.bf16.mxu0 %v7693_v48  ;;  %5063 = vrcp.f32 %v3380_v20  ;;  %v5407_v17 = vld [vmem:[%s8150_s3 + $0x4] ss:$16 sps:$4 sm:$0xff]   ;;  %v5408_v20 = vld [vmem:[%s8150_s3 + $0xc] ss:$16 sps:$4 sm:$0xff]   ;;  %v5422_v37 = vld [vmem:[%s8150_s3 + $0x68] ss:$16 sps:$4 sm:$0xff]  }
 0x6da   :  { %3578 = vmatprep.subr.bf16.mxu1 %v7699_v18  ;;  %3565 = vmatprep.mubr.bf16.mxu0 %v8381_v34  ;;  %5065 = vrcp.f32 %v3393_v30  ;;  %v5410_v30 = vld [vmem:[%s8150_s3 + $0x8] ss:$16 sps:$4 sm:$0xff]  }
 0x6db   :  { %3608 = vmatprep.mubr.bf16.mxu1 %v8381_v34 }
 0x6dc   :  { %3536 = vmatpush1.bf16.msra.mxu0 %v7707_v56  ;;  %3579 = vmatpush1.bf16.msra.mxu1 %v7713_v43 }
 0x6dd   :  { %3537 = vmatprep.subr.bf16.mxu0 %v7719_v45  ;;  %3580 = vmatprep.subr.bf16.mxu1 %v7725_v7 }
 0x6de   :  { %v5054_v63 = vpop.eup %5053 }
 0x6df   :  { %v5056_v9 = vpop.eup %5055  ;;  %v3401_v53 = vmul.f32 %v5054_v63, %v5050_v2  ;;  %v4095_v63 = vmul.f32 %v7531_v1, %v8607_v51  ;;  %v5431_v51 = vld [vmem:[%s8150_s3 + $0xc4] ss:$16 sps:$4 sm:$0xff]  }
 0x6e0   :  { %v5058_v24 = vpop.eup %5057  ;;  %3538 = vmatpush1.bf16.msra.mxu0 %v7731_v27  ;;  %3581 = vmatpush1.bf16.msra.mxu1 %v7737_v14 }
 0x6e1   :  { %v5060_v31 = vpop.eup %5059  ;;  %v3399_v52 = vmul.f32 %v5058_v24, %v7551_v35  ;;  %3539 = vmatprep.subr.bf16.mxu0 %v7744_v22  ;;  %3582 = vmatprep.subr.bf16.mxu1 %v7750_v59  ;;  %v5409_v24 = vld [vmem:[%s8150_s3] ss:$16 sps:$4 sm:$0xff]  }
 0x6e2   :  { %v5062_v57 = vpop.eup %5061  ;;  %v3394_v35 = vadd.f32 1.0, %v5060_v31  ;;  %v5411_v31 = vld [vmem:[%s8150_s3 + $0x24] ss:$16 sps:$4 sm:$0xff]  }
 0x6e3   :  { %v7753_v11 = vadd.f32 %v3401_v53, %v3399_v52  ;;  %v3402_v12 = vmul.f32 %v5062_v57, %v5056_v9  ;;  %v5064_v36 = vpop.eup %5063  ;;  %v5412_v52 = vld [vmem:[%s8150_s3 + $0x2c] ss:$16 sps:$4 sm:$0xff]   ;;  %v5413_v57 = vld [vmem:[%s8150_s3 + $0x20] ss:$16 sps:$4 sm:$0xff]  }
 0x6e4   :  { %3540 = vmatpush1.bf16.msra.mxu0 %v7758_v21  ;;  %3583 = vmatpush1.bf16.msra.mxu1 %v7764_v50  ;;  %v3400_v58 = vmul.f32 %v5064_v36, %v7559_v39  ;;  %v7786_v39 = vld [vmem:[%s8151_s4 + $0x80] ss:$16 sps:$4 sm:$0xff]   ;;  %v5066_v8 = vpop.eup %5065  ;;  %v5415_v36 = vld [vmem:[%s8150_s3 + $0x44] ss:$16 sps:$4 sm:$0xff]  }
 0x6e5   :  { %3541 = vmatprep.subr.bf16.mxu0 %v7771_v0  ;;  %3584 = vmatprep.subr.bf16.mxu1 %v7777_v38  ;;  %5067 = vtanh.f32 %v7753_v11 }
 0x6e6   :  { %v7781_v4 = vadd.f32 %v3402_v12, %v3400_v58  ;;  %5069 = vrcp.f32 %v3394_v35  ;;  %v5414_v12 = vld [vmem:[%s8150_s3 + $0x28] ss:$16 sps:$4 sm:$0xff]   ;;  %v5416_v35 = vld [vmem:[%s8150_s3 + $0x4c] ss:$16 sps:$4 sm:$0xff]   ;;  %v5417_v58 = vld [vmem:[%s8150_s3 + $0x40] ss:$16 sps:$4 sm:$0xff]  }
 0x6e8   :  { %3542 = vmatpush1.bf16.msra.mxu0 %v7786_v39  ;;  %3585 = vmatpush1.bf16.msra.mxu1 %v7792_v32  ;;  %5071 = vtanh.f32 %v7781_v4 }
 0x6e9   :  { %3543 = vmatprep.subr.bf16.mxu0 %v7799_v23  ;;  %3586 = vmatprep.subr.bf16.mxu1 %v7805_v29 }
 0x6ec   :  { %3544 = vmatpush1.bf16.msra.mxu0 %v7811_v26  ;;  %3587 = vmatpush1.bf16.msra.mxu1 %v7817_v3 }
 0x6ed   :  { %3545 = vmatprep.subr.bf16.mxu0 %v7823_v25  ;;  %3588 = vmatprep.subr.bf16.mxu1 %v7829_v42 }
 0x6ef   :  { %v5068_v60 = vpop.eup %5067 }
 0x6f0   :  { %3546 = vmatpush1.bf16.msra.mxu0 %v7835_v49  ;;  %3589 = vmatpush1.bf16.msra.mxu1 %v7841_v62  ;;  %v3407_v33 = vmul.f32 %v5068_v60, %v5066_v8  ;;  %v5070_v6 = vpop.eup %5069  ;;  %v5418_v8 = vld [vmem:[%s8150_s3 + $0x48] ss:$16 sps:$4 sm:$0xff]   ;;  %v5419_v60 = vld [vmem:[%s8150_s3 + $0x64] ss:$16 sps:$4 sm:$0xff]  }
 0x6f1   :  { %3547 = vmatprep.subr.bf16.mxu0 %v7847_v28  ;;  %3590 = vmatprep.subr.bf16.mxu1 %v7853_v44 }
 0x6f2   :  { %v4094_v46 = vmul.f32 %v7535_v16, %v3407_v33  ;;  %v5072_v10 = vpop.eup %5071 }
 0x6f3   :  { %v3408_v41 = vmul.f32 %v5072_v10, %v5070_v6  ;;  %v5421_v6 = vld [vmem:[%s8150_s3 + $0x60] ss:$16 sps:$4 sm:$0xff]  }
 0x6f4   :  { %3548 = vmatpush1.bf16.msra.mxu0 %v7862_v5  ;;  %3591 = vmatpush1.bf16.msra.mxu1 %v7868_v55  ;;  %v4129_v13 = vadd.f32 %v4094_v46, %v4093_v40  ;;  %v5423_v40 = vld [vmem:[%s8150_s3 + $0x84] ss:$16 sps:$4 sm:$0xff]   ;;  %v5424_v46 = vld [vmem:[%s8150_s3 + $0x8c] ss:$16 sps:$4 sm:$0xff]   ;;  %v5425_v10 = vld [vmem:[%s8150_s3 + $0x80] ss:$16 sps:$4 sm:$0xff]  }
 0x6f5   :  { %3740 = vmatprep.subr.bf16.mxu0 %v5407_v17  ;;  %3783 = vmatprep.subr.bf16.mxu1 %v5408_v20  ;;  %v3532_v2 = vpack.c.bf16 %v3408_v41, %v3407_v33  ;;  %v4096_v9 = vmul.f32 %v7535_v16, %v3408_v41  ;;  %v5420_v33 = vld [vmem:[%s8150_s3 + $0x6c] ss:$16 sps:$4 sm:$0xff]   ;;  %v5427_v41 = vld [vmem:[%s8150_s3 + $0xa4] ss:$16 sps:$4 sm:$0xff]   ;;  %v5429_v20 = vld [vmem:[%s8150_s3 + $0xa0] ss:$16 sps:$4 sm:$0xff]  }
 0x6f6   :  { %4130 = vadd.xlane.f32.xlu0 %v4129_v13  ;;  %v5426_v13 = vld [vmem:[%s8150_s3 + $0x88] ss:$16 sps:$4 sm:$0xff]   ;;  %v5428_v17 = vld [vmem:[%s8150_s3 + $0xac] ss:$16 sps:$4 sm:$0xff]  }
 0x6f7   :  { %3566 = vmatmul.mubr.bf16.vlgmr.msra.gmra.mrb[116].mxu0 %v3532_v2  ;;  %3609 = vmatmul.mubr.bf16.vlgmr.msra.gmra.mrb[116].mxu1 %v3532_v2  ;;  %v4132_v53 = vadd.f32 %v4096_v9, %v4095_v63  ;;  %v5430_v2 = vld [vmem:[%s8150_s3 + $0xa8] ss:$16 sps:$4 sm:$0xff]   ;;  %v5432_v63 = vld [vmem:[%s8150_s3 + $0xcc] ss:$16 sps:$4 sm:$0xff]   ;;  %v5433_v9 = vld [vmem:[%s8150_s3 + $0xc0] ss:$16 sps:$4 sm:$0xff]  }
 0x6f8   :  { %3741 = vmatpush1.bf16.msra.mxu0 %v5409_v24  ;;  %3784 = vmatpush1.bf16.msra.mxu1 %v5410_v30  ;;  %v5435_v24 = vld [vmem:[%s8150_s3 + $0xe4] ss:$16 sps:$4 sm:$0xff]   ;;  %v5436_v30 = vld [vmem:[%s8150_s3 + $0xec] ss:$16 sps:$4 sm:$0xff]  }
 0x6f9   :  { %4133 = vadd.xlane.f32.xlu1 %v4132_v53  ;;  %3742 = vmatprep.subr.bf16.mxu0 %v5411_v31  ;;  %v5434_v53 = vld [vmem:[%s8150_s3 + $0xc8] ss:$16 sps:$4 sm:$0xff]   ;;  %v5437_v31 = vld [vmem:[%s8150_s3 + $0xe0] ss:$16 sps:$4 sm:$0xff]  }
 0x6fa   :  { %3785 = vmatprep.subr.bf16.mxu1 %v5412_v52  ;;  %3772 = vmatprep.mubr.bf16.mxu0 %v8381_v34  ;;  %v5438_v52 = vld [vmem:[%s8150_s3 + $0xe8] ss:$16 sps:$4 sm:$0xff]  }
 0x6fb   :  { %3815 = vmatprep.mubr.bf16.mxu1 %v8381_v34 }
 0x6fc   :  { %3743 = vmatpush1.bf16.msra.mxu0 %v5413_v57  ;;  %3786 = vmatpush1.bf16.msra.mxu1 %v5414_v12  ;;  %v5439_v57 = vld [vmem:[%s8151_s4 + $0x4] ss:$16 sps:$4 sm:$0xff]   ;;  %v5440_v12 = vld [vmem:[%s8151_s4 + $0xc] ss:$16 sps:$4 sm:$0xff]  }
 0x6fd   :  { %3744 = vmatprep.subr.bf16.mxu0 %v5415_v36  ;;  %3787 = vmatprep.subr.bf16.mxu1 %v5416_v35 }
 0x700   :  { %3745 = vmatpush1.bf16.msra.mxu0 %v5417_v58  ;;  %3788 = vmatpush1.bf16.msra.mxu1 %v5418_v8 }
 0x701   :  { %3746 = vmatprep.subr.bf16.mxu0 %v5419_v60  ;;  %3789 = vmatprep.subr.bf16.mxu1 %v5420_v33 }
 0x704   :  { %3747 = vmatpush1.bf16.msra.mxu0 %v5421_v6  ;;  %3790 = vmatpush1.bf16.msra.mxu1 %v5422_v37 }
 0x705   :  { %3748 = vmatprep.subr.bf16.mxu0 %v5423_v40  ;;  %3791 = vmatprep.subr.bf16.mxu1 %v5424_v46 }
 0x708   :  { %3749 = vmatpush1.bf16.msra.mxu0 %v5425_v10  ;;  %3792 = vmatpush1.bf16.msra.mxu1 %v5426_v13 }
 0x709   :  { %3750 = vmatprep.subr.bf16.mxu0 %v5427_v41  ;;  %3793 = vmatprep.subr.bf16.mxu1 %v5428_v17 }
 0x70c   :  { %3751 = vmatpush1.bf16.msra.mxu0 %v5429_v20  ;;  %3794 = vmatpush1.bf16.msra.mxu1 %v5430_v2 }
 0x70d   :  { %3752 = vmatprep.subr.bf16.mxu0 %v5431_v51  ;;  %3795 = vmatprep.subr.bf16.mxu1 %v5432_v63 }
 0x710   :  { %3753 = vmatpush1.bf16.msra.mxu0 %v5433_v9  ;;  %3796 = vmatpush1.bf16.msra.mxu1 %v5434_v53 }
 0x711   :  { %3754 = vmatprep.subr.bf16.mxu0 %v5435_v24  ;;  %3797 = vmatprep.subr.bf16.mxu1 %v5436_v30 }
 0x714   :  { %3755 = vmatpush1.bf16.msra.mxu0 %v5437_v31  ;;  %3798 = vmatpush1.bf16.msra.mxu1 %v5438_v52 }
 0x715   :  { %3847 = vmatprep.subr.bf16.mxu0 %v5439_v57  ;;  %3890 = vmatprep.subr.bf16.mxu1 %v5440_v12  ;;  %v8609_v12 = vld [vmem:[#allocation24_spill] sm:$0xff] }
 0x762   :  { %v4149_v36 = vpop.xlane.xlu0 %4148 }
 0x763   :  { %v4182_v35 = vadd.f32 %v7626_v15, %v4149_v36  ;;  %v3419_v36 = vunpack.c.l.bf16 %v8609_v12 }
 0x765   :  { %v4562_v58 = vmul.f32 -1.442695, %v4182_v35 }
 0x766   :  { %v4152_v8 = vpop.xlane.xlu1 %4151 }
 0x767   :  { %5073 = vpow2.f32 %v4562_v58  ;;  %v4183_v60 = vadd.f32 %v7626_v15, %v4152_v8  ;;  %v8610_v8 = vld [vmem:[#allocation23_spill] sm:$0xff] }
 0x769   :  { %v4563_v33 = vmul.f32 -1.442695, %v4183_v60  ;;  %v3418_v60 = vunpack.c.l.bf16 %v8610_v8 }
 0x76b   :  { %5075 = vpow2.f32 %v4563_v33  ;;  %v8611_v33 = vld [vmem:[#allocation25_spill] sm:$0xff] }
 0x771   :  { %v5074_v6 = vpop.eup %5073 }
 0x772   :  { %v4246_v37 = vadd.f32 1.0, %v5074_v6  ;;  %v3420_v6 = vunpack.c.l.bf16 %v8611_v33 }
 0x774   :  { %5077 = vrcp.f32 %v4246_v37 }
 0x775   :  { %v5076_v40 = vpop.eup %5075 }
 0x776   :  { %v4247_v46 = vadd.f32 1.0, %v5076_v40 }
 0x778   :  { %5079 = vrcp.f32 %v4247_v46 }
 0x77e   :  { %v5078_v10 = vpop.eup %5077 }
 0x77f   :  { %4295 = vst.msk [vmem:[%s8155_s7 + $0x50] sm:$0xff] %vm4284_vm0, %v5078_v10 }
 0x782   :  { %v5080_v13 = vpop.eup %5079 }
 0x783   :  { %4296 = vst.msk [vmem:[%s8155_s7 + $0x58] sm:$0xff] %vm4284_vm0, %v5080_v13  ;;  %v4131_v41 = vpop.xlane.xlu0 %4130 }
 0x784   :  { %v4176_v17 = vadd.f32 %v7626_v15, %v4131_v41  ;;  %v3423_v41 = vunpack.c.h.bf16 %v8609_v12 }
 0x786   :  { %v4556_v20 = vmul.f32 -1.442695, %v4176_v17  ;;  %v4134_v2 = vpop.xlane.xlu1 %4133 }
 0x787   :  { %v4177_v51 = vadd.f32 %v7626_v15, %v4134_v2  ;;  %v8608_v15 = vld [vmem:[#allocation22_spill] sm:$0xff] }
 0x788   :  { %5081 = vpow2.f32 %v4556_v20  ;;  %v3417_v57 = vunpack.c.l.bf16 %v8608_v15  ;;  %v3421_v13 = vunpack.c.h.bf16 %v8608_v15 }
 0x789   :  { %v4557_v63 = vmul.f32 -1.442695, %v4177_v51 }
 0x78b   :  { %5083 = vpow2.f32 %v4557_v63  ;;  %v3422_v63 = vunpack.c.h.bf16 %v8610_v8 }
 0x792   :  { %v5082_v9 = vpop.eup %5081 }
 0x793   :  { %v4240_v53 = vadd.f32 1.0, %v5082_v9  ;;  %v3424_v9 = vunpack.c.h.bf16 %v8611_v33 }
 0x795   :  { %5085 = vrcp.f32 %v4240_v53  ;;  %v5084_v24 = vpop.eup %5083 }
 0x796   :  { %v4241_v30 = vadd.f32 1.0, %v5084_v24 }
 0x798   :  { %5087 = vrcp.f32 %v4241_v30 }
 0x79f   :  { %v5086_v31 = vpop.eup %5085 }
 0x7a0   :  { %4289 = vst.msk [vmem:[%s8155_s7 + $0x20] sm:$0xff] %vm4284_vm0, %v5086_v31 }
 0x7a2   :  { %v5088_v52 = vpop.eup %5087 }
 0x7a3   :  { %4290 = vst.msk [vmem:[%s8155_s7 + $0x28] sm:$0xff] %vm4284_vm0, %v5088_v52 }
 0x7aa   :  { %v3460_v35 = vpop.f32.mrb[112].mxu0  ;;  %v3503_v58 = vpop.f32.mrb[112].mxu1 }
 0x7ab   :  { %v3512_v37 = vadd.f32 %v3460_v35, %v3417_v57  ;;  %v3514_v40 = vadd.f32 %v3503_v58, %v3419_v36  ;;  %v3462_v46 = vpop.f32.mrb[113].mxu0  ;;  %v3505_v10 = vpop.f32.mrb[113].mxu1 }
 0x7ac   :  { %v3513_v17 = vadd.f32 %v3462_v46, %v3418_v60  ;;  %v3515_v20 = vadd.f32 %v3505_v10, %v3420_v6  ;;  %v3464_v2 = vpop.f32.mrb[114].mxu0  ;;  %v3507_v51 = vpop.f32.mrb[114].mxu1 }
 0x7ad   :  { %v4527_v53 = vmul.f32 -1.442695, %v3512_v37  ;;  %v3516_v24 = vadd.f32 %v3464_v2, %v3421_v13  ;;  %v3518_v30 = vadd.f32 %v3507_v51, %v3423_v41  ;;  %v3466_v31 = vpop.f32.mrb[115].mxu0  ;;  %v3509_v52 = vpop.f32.mrb[115].mxu1 }
 0x7ae   :  { %v4529_v57 = vmul.f32 -1.442695, %v3513_v17  ;;  %v3517_v36 = vadd.f32 %v3466_v31, %v3422_v63  ;;  %v3519_v35 = vadd.f32 %v3509_v52, %v3424_v9  ;;  %v4531_v58 = vmul.f32 -1.442695, %v3515_v20  ;;  %v8612_v31 = vld [vmem:[#allocation34_spill] sm:$0xff] }
 0x7af   :  { %5089 = vpow2.f32 %v4527_v53  ;;  %v4528_v15 = vmul.f32 -1.442695, %v3516_v24  ;;  %v3524_v52 = vunpack.c.l.bf16 %v8612_v31 }
 0x7b0   :  { %5091 = vpow2.f32 %v4529_v57  ;;  %v4530_v12 = vmul.f32 -1.442695, %v3517_v36  ;;  %v4532_v33 = vmul.f32 -1.442695, %v3519_v35  ;;  %v8613_v35 = vld [vmem:[#allocation36_spill] sm:$0xff] }
 0x7b1   :  { %5093 = vpow2.f32 %v4528_v15  ;;  %v3526_v15 = vunpack.c.l.bf16 %v8613_v35 }
 0x7b2   :  { %5095 = vpow2.f32 %v4530_v12  ;;  %v3528_v12 = vunpack.c.h.bf16 %v8612_v31 }
 0x7b3   :  { %5097 = vtanh.f32 %v3514_v40 }
 0x7b4   :  { %5099 = vpow2.f32 %v4531_v58 }
 0x7b5   :  { %5101 = vtanh.f32 %v3518_v30 }
 0x7b9   :  { %v5090_v60 = vpop.eup %5089 }
 0x7ba   :  { %v5092_v8 = vpop.eup %5091  ;;  %v3633_v6 = vadd.f32 1.0, %v5090_v60 }
 0x7bb   :  { %v3645_v37 = vadd.f32 1.0, %v5092_v8  ;;  %v5094_v46 = vpop.eup %5093 }
 0x7bc   :  { %5103 = vrcp.f32 %v3633_v6  ;;  %v3634_v10 = vadd.f32 1.0, %v5094_v46  ;;  %v5096_v13 = vpop.eup %5095  ;;  %v8615_v46 = vld [vmem:[#allocation37_spill] sm:$0xff] }
 0x7bd   :  { %5105 = vrcp.f32 %v3645_v37  ;;  %v3646_v41 = vadd.f32 1.0, %v5096_v13  ;;  %v5098_v17 = vpop.eup %5097 }
 0x7be   :  { %5107 = vpow2.f32 %v4532_v33  ;;  %v5100_v2 = vpop.eup %5099  ;;  %v8614_v33 = vld [vmem:[#allocation35_spill] sm:$0xff] }
 0x7bf   :  { %5109 = vrcp.f32 %v3634_v10  ;;  %v5102_v20 = vpop.eup %5101  ;;  %v3659_v9 = vadd.f32 1.0, %v5100_v2  ;;  %v3525_v37 = vunpack.c.l.bf16 %v8614_v33  ;;  %v3527_v10 = vunpack.c.l.bf16 %v8615_v46 }
 0x7c0   :  { %5111 = vrcp.f32 %v3646_v41 }
 0x7c1   :  { %5113 = vrcp.f32 %v3659_v9 }
 0x7c6   :  { %v5104_v51 = vpop.eup %5103 }
 0x7c7   :  { %v5106_v40 = vpop.eup %5105  ;;  %v3667_v63 = vmul.f32 %v5104_v51, %v5098_v17 }
 0x7c8   :  { %v5108_v53 = vpop.eup %5107  ;;  %v3665_v24 = vmul.f32 %v5106_v40, %v7662_v19 }
 0x7c9   :  { %v5110_v30 = vpop.eup %5109  ;;  %v3660_v60 = vadd.f32 1.0, %v5108_v53  ;;  %v3529_v53 = vunpack.c.h.bf16 %v8614_v33 }
 0x7ca   :  { %v8008_v57 = vadd.f32 %v3667_v63, %v3665_v24  ;;  %v3668_v36 = vmul.f32 %v5110_v30, %v5102_v20  ;;  %v5112_v58 = vpop.eup %5111  ;;  %v3567_v8 = vpop.f32.mrb[116].mxu0  ;;  %v3530_v63 = vunpack.c.h.bf16 %v8613_v35 }
 0x7cb   :  { %v3610_v6 = vpop.f32.mrb[116].mxu1  ;;  %v3666_v19 = vmul.f32 %v5112_v58, %v7669_v61  ;;  %v3619_v13 = vadd.f32 %v3567_v8, %v3524_v52  ;;  %v3569_v17 = vpop.f32.mrb[117].mxu0  ;;  %v3531_v61 = vunpack.c.h.bf16 %v8615_v46 }
 0x7cc   :  { %v3621_v41 = vadd.f32 %v3610_v6, %v3526_v15  ;;  %v3612_v2 = vpop.f32.mrb[117].mxu1  ;;  %5115 = vtanh.f32 %v8008_v57  ;;  %v3620_v20 = vadd.f32 %v3569_v17, %v3525_v37  ;;  %v3571_v40 = vpop.f32.mrb[118].mxu0 }
 0x7cd   :  { %v3622_v51 = vadd.f32 %v3612_v2, %v3527_v10  ;;  %v3614_v9 = vpop.f32.mrb[118].mxu1  ;;  %v8018_v24 = vadd.f32 %v3668_v36, %v3666_v19  ;;  %v4533_v30 = vmul.f32 -1.442695, %v3619_v13  ;;  %v3623_v31 = vadd.f32 %v3571_v40, %v3528_v12  ;;  %v3573_v55 = vpop.f32.mrb[119].mxu0 }
 0x7ce   :  { %v3616_v52 = vpop.f32.mrb[119].mxu1  ;;  %5117 = vrcp.f32 %v3660_v60  ;;  %v4535_v15 = vmul.f32 -1.442695, %v3620_v20  ;;  %v3625_v58 = vadd.f32 %v3614_v9, %v3530_v63  ;;  %v3624_v8 = vadd.f32 %v3573_v55, %v3529_v53  ;;  %v5114_v36 = vpop.eup %5113  ;;  %v8616_v60 = vld [vmem:[#allocation56_spill] sm:$0xff]  ;;  %v8617_v53 = vld [vmem:[#allocation95_spill] sm:$0xff] }
 0x7cf   :  { %5119 = vtanh.f32 %v8018_v24  ;;  %v4534_v6 = vmul.f32 -1.442695, %v3623_v31  ;;  %v3626_v37 = vadd.f32 %v3616_v52, %v3531_v61  ;;  %v4537_v10 = vmul.f32 -1.442695, %v3622_v51 }
 0x7d0   :  { %5121 = vpow2.f32 %v4533_v30  ;;  %v4536_v35 = vmul.f32 -1.442695, %v3624_v8  ;;  %v4110_v13 = vmul.f32 %v7535_v16, %v8616_v60  ;;  %v4112_v30 = vmul.f32 %v7535_v16, %v8617_v53 }
 0x7d1   :  { %5123 = vpow2.f32 %v4535_v15  ;;  %v4538_v9 = vmul.f32 -1.442695, %v3626_v37 }
 0x7d2   :  { %5125 = vpow2.f32 %v4534_v6 }
 0x7d3   :  { %5127 = vpow2.f32 %v4536_v35 }
 0x7d4   :  { %5129 = vtanh.f32 %v3621_v41 }
 0x7d5   :  { %5131 = vpow2.f32 %v4537_v10 }
 0x7d6   :  { %v5116_v33 = vpop.eup %5115  ;;  %5133 = vtanh.f32 %v3625_v58 }
 0x7d7   :  { %v3673_v12 = vmul.f32 %v5116_v33, %v5114_v36 }
 0x7d8   :  { %v5118_v19 = vpop.eup %5117 }
 0x7d9   :  { %v4109_v46 = vmul.f32 %v7531_v1, %v3673_v12  ;;  %v5120_v55 = vpop.eup %5119 }
 0x7da   :  { %v5122_v17 = vpop.eup %5121  ;;  %v3674_v20 = vmul.f32 %v5120_v55, %v5118_v19 }
 0x7db   :  { %v4153_v2 = vadd.f32 %v4110_v13, %v4109_v46  ;;  %v5124_v40 = vpop.eup %5123  ;;  %v3681_v63 = vadd.f32 1.0, %v5122_v17 }
 0x7dc   :  { %v3693_v31 = vadd.f32 1.0, %v5124_v40  ;;  %v3739_v51 = vpack.c.bf16 %v3674_v20, %v3673_v12  ;;  %v4111_v61 = vmul.f32 %v7531_v1, %v3674_v20  ;;  %v5126_v52 = vpop.eup %5125 }
 0x7dd   :  { %4154 = vadd.xlane.f32.xlu0 %v4153_v2  ;;  %5135 = vrcp.f32 %v3681_v63  ;;  %v3682_v15 = vadd.f32 1.0, %v5126_v52  ;;  %v5128_v8 = vpop.eup %5127 }
 0x7de   :  { %5137 = vrcp.f32 %v3693_v31  ;;  %3773 = vmatmul.mubr.bf16.vlgmr.msra.gmra.mrb[120].mxu0 %v3739_v51  ;;  %3816 = vmatmul.mubr.bf16.vlgmr.msra.gmra.mrb[120].mxu1 %v3739_v51  ;;  %v4156_v41 = vadd.f32 %v4112_v30, %v4111_v61  ;;  %v3694_v6 = vadd.f32 1.0, %v5128_v8  ;;  %v5130_v58 = vpop.eup %5129 }
 0x7df   :  { %5139 = vpow2.f32 %v4538_v9  ;;  %3848 = vmatpush1.bf16.msra.mxu0 %v7681_v47  ;;  %3891 = vmatpush1.bf16.msra.mxu1 %v7687_v54  ;;  %v5132_v47 = vpop.eup %5131 }
 0x7e0   :  { %5141 = vrcp.f32 %v3682_v15  ;;  %4157 = vadd.xlane.f32.xlu1 %v4156_v41  ;;  %3849 = vmatprep.subr.bf16.mxu0 %v7693_v48  ;;  %v5134_v54 = vpop.eup %5133  ;;  %v3707_v35 = vadd.f32 1.0, %v5132_v47  ;;  %v8621_v41 = vld [vmem:[#allocation26_spill] sm:$0xff] }
 0x7e1   :  { %3892 = vmatprep.subr.bf16.mxu1 %v7699_v18  ;;  %3879 = vmatprep.mubr.bf16.mxu0 %v8381_v34  ;;  %5143 = vrcp.f32 %v3694_v6  ;;  %v3731_v8 = vunpack.c.l.bf16 %v8621_v41  ;;  %v8622_v6 = vld [vmem:[#allocation28_spill] sm:$0xff] }
 0x7e2   :  { %3922 = vmatprep.mubr.bf16.mxu1 %v8381_v34  ;;  %5145 = vrcp.f32 %v3707_v35 }
 0x7e3   :  { %3850 = vmatpush1.bf16.msra.mxu0 %v7707_v56  ;;  %3893 = vmatpush1.bf16.msra.mxu1 %v7713_v43 }
 0x7e4   :  { %3851 = vmatprep.subr.bf16.mxu0 %v7719_v45  ;;  %3894 = vmatprep.subr.bf16.mxu1 %v7725_v7 }
 0x7e7   :  { %v5136_v37 = vpop.eup %5135  ;;  %3852 = vmatpush1.bf16.msra.mxu0 %v7731_v27  ;;  %3895 = vmatpush1.bf16.msra.mxu1 %v7737_v14 }
 0x7e8   :  { %v5138_v48 = vpop.eup %5137  ;;  %v3715_v18 = vmul.f32 %v5136_v37, %v5130_v58  ;;  %3853 = vmatprep.subr.bf16.mxu0 %v7744_v22  ;;  %3896 = vmatprep.subr.bf16.mxu1 %v7750_v59  ;;  %v3733_v58 = vunpack.c.l.bf16 %v8622_v6  ;;  %v8623_v37 = vld [vmem:[#allocation27_spill] sm:$0xff] }
 0x7e9   :  { %v5140_v34 = vpop.eup %5139  ;;  %v3713_v56 = vmul.f32 %v5138_v48, %v7753_v11  ;;  %v3732_v48 = vunpack.c.l.bf16 %v8623_v37 }
 0x7ea   :  { %v5142_v43 = vpop.eup %5141  ;;  %v3708_v14 = vadd.f32 1.0, %v5140_v34 }
 0x7eb   :  { %v8043_v45 = vadd.f32 %v3715_v18, %v3713_v56  ;;  %v3716_v7 = vmul.f32 %v5142_v43, %v5134_v54  ;;  %3854 = vmatpush1.bf16.msra.mxu0 %v7758_v21  ;;  %3897 = vmatpush1.bf16.msra.mxu1 %v7764_v50  ;;  %v5144_v27 = vpop.eup %5143  ;;  %v8624_v18 = vld [vmem:[#allocation29_spill] sm:$0xff] }
 0x7ec   :  { %3855 = vmatprep.subr.bf16.mxu0 %v7771_v0  ;;  %3898 = vmatprep.subr.bf16.mxu1 %v7777_v38  ;;  %v3714_v22 = vmul.f32 %v5144_v27, %v7781_v4  ;;  %v5146_v11 = vpop.eup %5145  ;;  %v8618_v38 = vld [vmem:[#allocation93_spill] sm:$0xff]  ;;  %v3734_v35 = vunpack.c.l.bf16 %v8624_v18  ;;  %v3735_v27 = vunpack.c.h.bf16 %v8621_v41 }
 0x7ed   :  { %5147 = vtanh.f32 %v8043_v45  ;;  %v4089_v4 = vmul.f32 %v7531_v1, %v8618_v38  ;;  %v3738_v38 = vunpack.c.h.bf16 %v8624_v18 }
 0x7ee   :  { %v8051_v59 = vadd.f32 %v3716_v7, %v3714_v22  ;;  %5149 = vrcp.f32 %v3708_v14  ;;  %v3737_v14 = vunpack.c.h.bf16 %v8622_v6 }
 0x7ef   :  { %3856 = vmatpush1.bf16.msra.mxu0 %v7786_v39  ;;  %3899 = vmatpush1.bf16.msra.mxu1 %v7792_v32 }
 0x7f0   :  { %3857 = vmatprep.subr.bf16.mxu0 %v7799_v23  ;;  %3900 = vmatprep.subr.bf16.mxu1 %v7805_v29  ;;  %5151 = vtanh.f32 %v8051_v59  ;;  %v8619_v23 = vld [vmem:[#allocation92_spill] sm:$0xff] }
 0x7f3   :  { %3858 = vmatpush1.bf16.msra.mxu0 %v7811_v26  ;;  %3901 = vmatpush1.bf16.msra.mxu1 %v7817_v3 }
 0x7f4   :  { %3859 = vmatprep.subr.bf16.mxu0 %v7823_v25  ;;  %3902 = vmatprep.subr.bf16.mxu1 %v7829_v42  ;;  %v8620_v25 = vld [vmem:[#allocation94_spill] sm:$0xff] }
 0x7f5   :  { %v4091_v42 = vmul.f32 %v7531_v1, %v8620_v25 }
 0x7f7   :  { %v5148_v21 = vpop.eup %5147  ;;  %3860 = vmatpush1.bf16.msra.mxu0 %v7835_v49  ;;  %3903 = vmatpush1.bf16.msra.mxu1 %v7841_v62 }
 0x7f8   :  { %3861 = vmatprep.subr.bf16.mxu0 %v7847_v28  ;;  %3904 = vmatprep.subr.bf16.mxu1 %v7853_v44  ;;  %v3721_v50 = vmul.f32 %v5148_v21, %v5146_v11  ;;  %v5150_v0 = vpop.eup %5149  ;;  %v8074_v44 = vld [vmem:[#allocation4] ss:$0 sm:$0xff] }
 0x7fa   :  { %v4090_v39 = vmul.f32 %v7535_v16, %v3721_v50  ;;  %v5152_v32 = vpop.eup %5151 }
 0x7fb   :  { %3862 = vmatpush1.bf16.msra.mxu0 %v7862_v5  ;;  %3905 = vmatpush1.bf16.msra.mxu1 %v8619_v23  ;;  %v3722_v26 = vmul.f32 %v5152_v32, %v5150_v0  ;;  %v3736_v0 = vunpack.c.h.bf16 %v8623_v37 }
 0x7fc   :  { %v4123_v29 = vadd.f32 %v4090_v39, %v4089_v4 }
 0x7fd   :  { %v3846_v3 = vpack.c.bf16 %v3722_v26, %v3721_v50  ;;  %v4092_v49 = vmul.f32 %v7535_v16, %v3722_v26 }
 0x7fe   :  { %4124 = vadd.xlane.f32.xlu1 %v4123_v29 }
 0x7ff   :  { %3880 = vmatmul.mubr.bf16.vlgmr.msra.gmra.mrb[124].mxu0 %v3846_v3  ;;  %3923 = vmatmul.mubr.bf16.vlgmr.msra.gmra.mrb[124].mxu1 %v3846_v3  ;;  %v4126_v62 = vadd.f32 %v4092_v49, %v4091_v42 }
 0x802   :  { %4127 = vadd.xlane.f32.xlu1 %v4126_v62 }
 0x86a   :  { %v4155_v28 = vpop.xlane.xlu0 %4154 }
 0x86b   :  { %v4184_v5 = vadd.f32 %v8074_v44, %v4155_v28 }
 0x86d   :  { %v4564_v36 = vmul.f32 -1.442695, %v4184_v5  ;;  %v4158_v33 = vpop.xlane.xlu1 %4157 }
 0x86e   :  { %v4185_v12 = vadd.f32 %v8074_v44, %v4158_v33 }
 0x86f   :  { %5153 = vpow2.f32 %v4564_v36 }
 0x870   :  { %v4565_v10 = vmul.f32 -1.442695, %v4185_v12 }
 0x872   :  { %5155 = vpow2.f32 %v4565_v10 }
 0x879   :  { %v5154_v19 = vpop.eup %5153 }
 0x87a   :  { %v4248_v46 = vadd.f32 1.0, %v5154_v19 }
 0x87c   :  { %5157 = vrcp.f32 %v4248_v46  ;;  %v5156_v60 = vpop.eup %5155 }
 0x87d   :  { %v4249_v13 = vadd.f32 1.0, %v5156_v60 }
 0x87f   :  { %5159 = vrcp.f32 %v4249_v13 }
 0x886   :  { %v5158_v55 = vpop.eup %5157 }
 0x887   :  { %4297 = vst.msk [vmem:[%s8155_s7 + $0x60] sm:$0xff] %vm4284_vm0, %v5158_v55 }
 0x889   :  { %v5160_v17 = vpop.eup %5159 }
 0x88a   :  { %4298 = vst.msk [vmem:[%s8155_s7 + $0x68] sm:$0xff] %vm4284_vm0, %v5160_v17 }
 0x88b   :  { %v4125_v2 = vpop.xlane.xlu1 %4124 }
 0x88c   :  { %v4174_v20 = vadd.f32 %v8074_v44, %v4125_v2 }
 0x88e   :  { %v4554_v40 = vmul.f32 -1.442695, %v4174_v20 }
 0x88f   :  { %v4128_v63 = vpop.xlane.xlu1 %4127 }
 0x890   :  { %5161 = vpow2.f32 %v4554_v40  ;;  %v4175_v9 = vadd.f32 %v8074_v44, %v4128_v63 }
 0x892   :  { %v4555_v53 = vmul.f32 -1.442695, %v4175_v9 }
 0x894   :  { %5163 = vpow2.f32 %v4555_v53 }
 0x89a   :  { %v5162_v30 = vpop.eup %5161 }
 0x89b   :  { %v4238_v31 = vadd.f32 1.0, %v5162_v30 }
 0x89d   :  { %5165 = vrcp.f32 %v4238_v31 }
 0x89e   :  { %v5164_v51 = vpop.eup %5163 }
 0x89f   :  { %v4239_v61 = vadd.f32 1.0, %v5164_v51 }
 0x8a1   :  { %5167 = vrcp.f32 %v4239_v61  ;;  %v8625_v61 = vld [vmem:[#allocation30_spill] sm:$0xff] }
 0x8a7   :  { %v5166_v52 = vpop.eup %5165 }
 0x8a8   :  { %4287 = vst.msk [vmem:[%s8155_s7 + $0x10] sm:$0xff] %vm4284_vm0, %v5166_v52  ;;  %v3838_v52 = vunpack.c.l.bf16 %v8625_v61 }
 0x8ab   :  { %v5168_v15 = vpop.eup %5167 }
 0x8ac   :  { %4288 = vst.msk [vmem:[%s8155_s7 + $0x18] sm:$0xff] %vm4284_vm0, %v5168_v15  ;;  %v8626_v15 = vld [vmem:[#allocation32_spill] sm:$0xff] }
 0x8ad   :  { %v3840_v41 = vunpack.c.l.bf16 %v8626_v15 }
 0x8b1   :  { %v3774_v47 = vpop.f32.mrb[120].mxu0  ;;  %v3817_v54 = vpop.f32.mrb[120].mxu1 }
 0x8b2   :  { %v3826_v34 = vadd.f32 %v3774_v47, %v3731_v8  ;;  %v3828_v56 = vadd.f32 %v3817_v54, %v3733_v58  ;;  %v3776_v43 = vpop.f32.mrb[121].mxu0  ;;  %v3819_v7 = vpop.f32.mrb[121].mxu1  ;;  %v3842_v8 = vunpack.c.h.bf16 %v8625_v61  ;;  %v8627_v54 = vld [vmem:[#allocation31_spill] sm:$0xff] }
 0x8b3   :  { %v3827_v22 = vadd.f32 %v3776_v43, %v3732_v48  ;;  %v3829_v11 = vadd.f32 %v3819_v7, %v3734_v35  ;;  %v3778_v21 = vpop.f32.mrb[122].mxu0  ;;  %v3821_v50 = vpop.f32.mrb[122].mxu1  ;;  %v3839_v37 = vunpack.c.l.bf16 %v8627_v54  ;;  %v8628_v48 = vld [vmem:[#allocation33_spill] sm:$0xff]  ;;  %v3844_v43 = vunpack.c.h.bf16 %v8626_v15 }
 0x8b4   :  { %v4539_v4 = vmul.f32 -1.442695, %v3826_v34  ;;  %v3830_v39 = vadd.f32 %v3778_v21, %v3735_v27  ;;  %v3832_v32 = vadd.f32 %v3821_v50, %v3737_v14  ;;  %v3780_v23 = vpop.f32.mrb[123].mxu0  ;;  %v3823_v29 = vpop.f32.mrb[123].mxu1  ;;  %v3841_v18 = vunpack.c.l.bf16 %v8628_v48 }
 0x8b5   :  { %v4541_v26 = vmul.f32 -1.442695, %v3827_v22  ;;  %v3831_v3 = vadd.f32 %v3780_v23, %v3736_v0  ;;  %v3833_v25 = vadd.f32 %v3823_v29, %v3738_v38  ;;  %v4543_v62 = vmul.f32 -1.442695, %v3829_v11 }
 0x8b6   :  { %5169 = vpow2.f32 %v4539_v4  ;;  %v4540_v42 = vmul.f32 -1.442695, %v3830_v39  ;;  %v3843_v7 = vunpack.c.h.bf16 %v8627_v54 }
 0x8b7   :  { %5171 = vpow2.f32 %v4541_v26  ;;  %v4542_v49 = vmul.f32 -1.442695, %v3831_v3  ;;  %v4544_v60 = vmul.f32 -1.442695, %v3833_v25 }
 0x8b8   :  { %5173 = vpow2.f32 %v4540_v42 }
 0x8b9   :  { %5175 = vpow2.f32 %v4542_v49 }
 0x8ba   :  { %5177 = vpow2.f32 %v4543_v62 }
 0x8bb   :  { %5179 = vtanh.f32 %v3828_v56 }
 0x8c0   :  { %v5170_v28 = vpop.eup %5169 }
 0x8c1   :  { %v5172_v5 = vpop.eup %5171  ;;  %v3947_v36 = vadd.f32 1.0, %v5170_v28 }
 0x8c2   :  { %v3959_v33 = vadd.f32 1.0, %v5172_v5  ;;  %v5174_v12 = vpop.eup %5173 }
 0x8c3   :  { %5181 = vrcp.f32 %v3947_v36  ;;  %v3948_v10 = vadd.f32 1.0, %v5174_v12  ;;  %v5176_v19 = vpop.eup %5175 }
 0x8c4   :  { %5183 = vrcp.f32 %v3959_v33  ;;  %v3960_v46 = vadd.f32 1.0, %v5176_v19  ;;  %v5178_v13 = vpop.eup %5177  ;;  %v8629_v33 = vld [vmem:[#allocation57_spill] sm:$0xff] }
 0x8c5   :  { %5185 = vtanh.f32 %v3832_v32  ;;  %v5180_v55 = vpop.eup %5179  ;;  %v3973_v40 = vadd.f32 1.0, %v5178_v13  ;;  %v4114_v12 = vmul.f32 %v7535_v16, %v8629_v33 }
 0x8c6   :  { %5187 = vrcp.f32 %v3948_v10 }
 0x8c7   :  { %5189 = vrcp.f32 %v3960_v46 }
 0x8c8   :  { %5191 = vpow2.f32 %v4544_v60 }
 0x8c9   :  { %5193 = vrcp.f32 %v3973_v40 }
 0x8cd   :  { %v5182_v17 = vpop.eup %5181 }
 0x8ce   :  { %v5184_v2 = vpop.eup %5183  ;;  %v3981_v20 = vmul.f32 %v5182_v17, %v5180_v55 }
 0x8cf   :  { %v5186_v63 = vpop.eup %5185  ;;  %v3979_v9 = vmul.f32 %v5184_v2, %v8008_v57 }
 0x8d0   :  { %v5188_v53 = vpop.eup %5187 }
 0x8d1   :  { %v3982_v30 = vmul.f32 %v5188_v53, %v5186_v63  ;;  %v3983_v31 = vadd.f32 %v3981_v20, %v3979_v9  ;;  %v5190_v51 = vpop.eup %5189 }
 0x8d2   :  { %v3980_v6 = vmul.f32 %v5190_v51, %v8018_v24  ;;  %v3881_v58 = vpop.f32.mrb[124].mxu0  ;;  %v3924_v47 = vpop.f32.mrb[124].mxu1  ;;  %v3845_v24 = vunpack.c.h.bf16 %v8628_v48  ;;  %v8630_v51 = vld [vmem:[#allocation58_spill] sm:$0xff] }
 0x8d3   :  { %5195 = vtanh.f32 %v3983_v31  ;;  %v3933_v57 = vadd.f32 %v3881_v58, %v3838_v52  ;;  %v3935_v35 = vadd.f32 %v3924_v47, %v3840_v41  ;;  %v3883_v34 = vpop.f32.mrb[125].mxu0  ;;  %v3926_v56 = vpop.f32.mrb[125].mxu1  ;;  %v4116_v61 = vmul.f32 %v7535_v16, %v8630_v51 }
 0x8d4   :  { %v3934_v27 = vadd.f32 %v3883_v34, %v3839_v37  ;;  %v3936_v14 = vadd.f32 %v3926_v56, %v3841_v18  ;;  %v3885_v22 = vpop.f32.mrb[126].mxu0  ;;  %v3928_v11 = vpop.f32.mrb[126].mxu1  ;;  %v3984_v21 = vadd.f32 %v3982_v30, %v3980_v6 }
 0x8d5   :  { %v4545_v50 = vmul.f32 -1.442695, %v3933_v57  ;;  %v3937_v0 = vadd.f32 %v3885_v22, %v3842_v8  ;;  %v3939_v38 = vadd.f32 %v3928_v11, %v3844_v43  ;;  %v3887_v4 = vpop.f32.mrb[127].mxu0  ;;  %v3930_v39 = vpop.f32.mrb[127].mxu1  ;;  %v8631_v11 = vld [vmem:[#allocation54_spill] sm:$0xff] }
 0x8d6   :  { %v5192_v32 = vpop.eup %5191  ;;  %v4547_v23 = vmul.f32 -1.442695, %v3934_v27  ;;  %v3938_v29 = vadd.f32 %v3887_v4, %v3843_v7  ;;  %v3940_v26 = vadd.f32 %v3930_v39, %v3845_v24  ;;  %v4549_v5 = vmul.f32 -1.442695, %v3936_v14 }
 0x8d7   :  { %5197 = vpow2.f32 %v4545_v50  ;;  %v4546_v3 = vmul.f32 -1.442695, %v3937_v0  ;;  %v3974_v42 = vadd.f32 1.0, %v5192_v32  ;;  %v5194_v49 = vpop.eup %5193  ;;  %v4085_v24 = vmul.f32 %v7531_v1, %v8631_v11 }
 0x8d8   :  { %5199 = vpow2.f32 %v4547_v23  ;;  %v4548_v25 = vmul.f32 -1.442695, %v3938_v29  ;;  %v4550_v13 = vmul.f32 -1.442695, %v3940_v26 }
 0x8d9   :  { %5201 = vpow2.f32 %v4546_v3 }
 0x8da   :  { %5203 = vpow2.f32 %v4548_v25 }
 0x8db   :  { %5205 = vrcp.f32 %v3974_v42 }
 0x8dc   :  { %5207 = vtanh.f32 %v3984_v21 }
 0x8dd   :  { %v5196_v62 = vpop.eup %5195  ;;  %5209 = vtanh.f32 %v3935_v35 }
 0x8de   :  { %v3987_v28 = vmul.f32 %v5196_v62, %v5194_v49  ;;  %5211 = vpow2.f32 %v4549_v5 }
 0x8df   :  { %5213 = vtanh.f32 %v3939_v38  ;;  %v8632_v38 = vld [vmem:[#allocation55_spill] sm:$0xff] }
 0x8e0   :  { %v4113_v36 = vmul.f32 %v7531_v1, %v3987_v28 }
 0x8e1   :  { %v5198_v10 = vpop.eup %5197 }
 0x8e2   :  { %v4159_v19 = vadd.f32 %v4114_v12, %v4113_v36  ;;  %v5200_v46 = vpop.eup %5199  ;;  %v3995_v60 = vadd.f32 1.0, %v5198_v10 }
 0x8e3   :  { %v4007_v55 = vadd.f32 1.0, %v5200_v46  ;;  %v5202_v17 = vpop.eup %5201 }
 0x8e4   :  { %5215 = vrcp.f32 %v3995_v60  ;;  %v3996_v2 = vadd.f32 1.0, %v5202_v17  ;;  %v5204_v20 = vpop.eup %5203 }
 0x8e5   :  { %5217 = vrcp.f32 %v4007_v55  ;;  %v5206_v40 = vpop.eup %5205  ;;  %v4008_v63 = vadd.f32 1.0, %v5204_v20 }
 0x8e6   :  { %5219 = vpow2.f32 %v4550_v13  ;;  %v5208_v9 = vpop.eup %5207 }
 0x8e7   :  { %5221 = vrcp.f32 %v3996_v2  ;;  %v3988_v53 = vmul.f32 %v5208_v9, %v5206_v40  ;;  %v5210_v30 = vpop.eup %5209 }
 0x8e8   :  { %5223 = vrcp.f32 %v4008_v63  ;;  %v5212_v52 = vpop.eup %5211 }
 0x8e9   :  { %v4115_v31 = vmul.f32 %v7531_v1, %v3988_v53  ;;  %v5214_v15 = vpop.eup %5213  ;;  %v4021_v47 = vadd.f32 1.0, %v5212_v52 }
 0x8eb   :  { %v4162_v41 = vadd.f32 %v4116_v61, %v4115_v31  ;;  %5225 = vrcp.f32 %v4021_v47 }
 0x8ed   :  { %4163 = vadd.xlane.f32.xlu1 %v4162_v41 }
 0x8ee   :  { %v5216_v8 = vpop.eup %5215 }
 0x8ef   :  { %v5218_v6 = vpop.eup %5217  ;;  %v4029_v58 = vmul.f32 %v5216_v8, %v5210_v30 }
 0x8f0   :  { %v5220_v54 = vpop.eup %5219  ;;  %v4027_v37 = vmul.f32 %v5218_v6, %v8043_v45 }
 0x8f1   :  { %v5222_v48 = vpop.eup %5221  ;;  %v4022_v34 = vadd.f32 1.0, %v5220_v54 }
 0x8f2   :  { %v4030_v18 = vmul.f32 %v5222_v48, %v5214_v15  ;;  %v4031_v57 = vadd.f32 %v4029_v58, %v4027_v37  ;;  %v5224_v35 = vpop.eup %5223 }
 0x8f3   :  { %v4028_v56 = vmul.f32 %v5224_v35, %v8051_v59  ;;  %v4087_v59 = vmul.f32 %v7531_v1, %v8632_v38 }
 0x8f4   :  { %5227 = vtanh.f32 %v4031_v57 }
 0x8f5   :  { %v4032_v43 = vadd.f32 %v4030_v18, %v4028_v56  ;;  %5229 = vrcp.f32 %v4022_v34  ;;  %v5226_v7 = vpop.eup %5225 }
 0x8f7   :  { %5231 = vtanh.f32 %v4032_v43 }
 0x8fe   :  { %v5228_v27 = vpop.eup %5227 }
 0x8ff   :  { %v4035_v14 = vmul.f32 %v5228_v27, %v5226_v7  ;;  %v5230_v22 = vpop.eup %5229 }
 0x901   :  { %v4086_v45 = vmul.f32 %v7535_v16, %v4035_v14  ;;  %v5232_v21 = vpop.eup %5231 }
 0x902   :  { %v4036_v0 = vmul.f32 %v5232_v21, %v5230_v22 }
 0x903   :  { %v4117_v50 = vadd.f32 %v4086_v45, %v4085_v24 }
 0x904   :  { %v4088_v4 = vmul.f32 %v7535_v16, %v4036_v0 }
 0x905   :  { %4118 = vadd.xlane.f32.xlu0 %v4117_v50 }
 0x906   :  { %v4120_v39 = vadd.f32 %v4088_v4, %v4087_v59 }
 0x909   :  { %4121 = vadd.xlane.f32.xlu0 %v4120_v39 }
 0x90d   :  { %4160 = vadd.xlane.f32.xlu0 %v4159_v19 }
 0x97a   :  { %v4164_v32 = vpop.xlane.xlu1 %4163 }
 0x97b   :  { %v4187_v23 = vadd.f32 %v8074_v44, %v4164_v32 }
 0x97d   :  { %v4567_v29 = vmul.f32 -1.442695, %v4187_v23 }
 0x97f   :  { %5233 = vpow2.f32 %v4567_v29 }
 0x989   :  { %v5234_v26 = vpop.eup %5233 }
 0x98a   :  { %v4251_v3 = vadd.f32 1.0, %v5234_v26 }
 0x98c   :  { %5235 = vrcp.f32 %v4251_v3 }
 0x992   :  { %v4119_v25 = vpop.xlane.xlu0 %4118 }
 0x993   :  { %v4172_v42 = vadd.f32 %v8074_v44, %v4119_v25 }
 0x995   :  { %v4552_v49 = vmul.f32 -1.442695, %v4172_v42 }
 0x996   :  { %v4122_v62 = vpop.xlane.xlu0 %4121  ;;  %v5236_v16 = vpop.eup %5235 }
 0x997   :  { %5237 = vpow2.f32 %v4552_v49  ;;  %v4173_v1 = vadd.f32 %v8074_v44, %v4122_v62  ;;  %4300 = vst.msk [vmem:[%s8155_s7 + $0x78] sm:$0xff] %vm4284_vm0, %v5236_v16 }
 0x999   :  { %v4553_v28 = vmul.f32 -1.442695, %v4173_v1 }
 0x99a   :  { %v4161_v5 = vpop.xlane.xlu0 %4160 }
 0x99b   :  { %5239 = vpow2.f32 %v4553_v28  ;;  %v4186_v36 = vadd.f32 %v8074_v44, %v4161_v5 }
 0x99d   :  { %v4566_v33 = vmul.f32 -1.442695, %v4186_v36 }
 0x99f   :  { %5241 = vpow2.f32 %v4566_v33 }
 0x9a1   :  { %v5238_v12 = vpop.eup %5237 }
 0x9a2   :  { %v4236_v10 = vadd.f32 1.0, %v5238_v12 }
 0x9a4   :  { %5243 = vrcp.f32 %v4236_v10 }
 0x9a5   :  { %v5240_v19 = vpop.eup %5239 }
 0x9a6   :  { %v4237_v46 = vadd.f32 1.0, %v5240_v19 }
 0x9a8   :  { %5245 = vrcp.f32 %v4237_v46 }
 0x9a9   :  { %v5242_v60 = vpop.eup %5241 }
 0x9aa   :  { %v4250_v13 = vadd.f32 1.0, %v5242_v60 }
 0x9ac   :  { %5247 = vrcp.f32 %v4250_v13 }
 0x9ae   :  { %v5244_v55 = vpop.eup %5243 }
 0x9af   :  { %4285 = vst.msk [vmem:[%s8155_s7] sm:$0xff] %vm4284_vm0, %v5244_v55 }
 0x9b2   :  { %v5246_v17 = vpop.eup %5245 }
 0x9b3   :  { %4286 = vst.msk [vmem:[%s8155_s7 + $0x8] sm:$0xff] %vm4284_vm0, %v5246_v17 }
 0x9b6   :  { %v5248_v44 = vpop.eup %5247 }
 0x9b7   :  { %4299 = vst.msk [vmem:[%s8155_s7 + $0x70] sm:$0xff] %vm4284_vm0, %v5248_v44 }

</bundles_post_ra>
